<compile_context>
chip_gen: v6e
topology: v6e:2x2x1
jax: 0.10.0
libtpu: 0.0.40
codegen_flags: <defaults>
</compile_context>

<pallas_src>
import functools

import jax
import jax.numpy as jnp
from jax.experimental import pallas as pl
from jax.experimental.pallas import tpu as pltpu

# ---------------- scaled-down architecture constants ----------------
IMG = 32                           # original: 1024
C_IN = 4                           # 1 (linear branch) + 3 (image x2)
LIN_K_PAD = 128                    # K of nn.Linear(1, .) padded (lane-dense)
CONV_CH = (16, 32, 64, 128, 256)   # original: (64, 128, 256, 512, 1024)
FC_HIDDEN = 64                     # original: 1024
LEAKY_SLOPE = 0.01                 # F.leaky_relu default
BN_EPS = 1e-5                      # nn.BatchNorm2d default
VMEM_LIMIT_BYTES = 32 * 1024 * 1024


def _round_up(x, m):
    return (x + m - 1) // m * m


@functools.lru_cache(maxsize=1)
def _tn_pref():
    # v6e/v7x MXU is 256 lanes wide -> prefer TN=256; v5e MXU is 128-wide.
    try:
        kind = jax.devices()[0].device_kind.lower()
    except Exception:
        return 256
    if "v5 lite" in kind or "v5e" in kind or "v5lite" in kind:
        return 128
    return 256


def _pick_tm(m):
    if m % 256 == 0:
        return 256
    if m % 128 == 0:
        return 128
    return _round_up(m, 16)        # bf16 A packs two rows per sublane


def _pick_tn(n):
    if _tn_pref() == 256 and n % 256 == 0:
        return 256
    if n % 128 == 0:
        return 128
    return n


def _pick_tk(k):
    if k <= 1024:                  # cap full-K tiles (VMEM-safe on v7x)
        return k
    for tk in (512, 384, 256, 128):
        if k % tk == 0:
            return tk
    return k                       # unreachable: all K padded to 128 multiples


# -------- fused matmul + bias + activation (+ per-tile BN-stat) kernel --------
def _mm_kernel(a_ref, w_ref, b_ref, *refs, act, nk, emit_stats, m_true,
               slope=LEAKY_SLOPE):
    if emit_stats:
        o_ref, sum_ref, ssq_ref = refs[0], refs[1], refs[2]
        scratch = refs[3:]
    else:
        o_ref = refs[0]
        sum_ref = ssq_ref = None
        scratch = refs[1:]
    acc_ref = scratch[0] if nk > 1 else None

    m = pl.program_id(1)
    k = pl.program_id(2)

    def finalize(acc):
        y = acc + b_ref[...]                       # f32
        if act == "leaky_relu":
            y = jnp.where(y >= 0, y, slope * y)
        elif act == "relu":
            y = jnp.maximum(y, 0.0)
        o_ref[...] = y.astype(o_ref.dtype)         # bf16 store: half the traffic
        if emit_stats:
            ys = y
            if m_true is not None:                 # mask rows from M padding
                rows = (jax.lax.broadcasted_iota(jnp.int32, (y.shape[0], 1), 0)
                        + m * y.shape[0])
                ys = jnp.where(rows < m_true, y, 0.0)
            s_row = jnp.sum(ys, axis=0, keepdims=True)
            q_row = jnp.sum(ys * ys, axis=0, keepdims=True)
            pad = jnp.zeros((7, s_row.shape[1]), jnp.float32)
            sum_ref[...] = jnp.concatenate([s_row, pad], axis=0)
            ssq_ref[...] = jnp.concatenate([q_row, pad], axis=0)

    if nk == 1:
        finalize(jnp.dot(a_ref[...], w_ref[...],
                         preferred_element_type=jnp.float32))
    else:
        @pl.when(k == 0)
        def _init():
            acc_ref[...] = jnp.zeros_like(acc_ref)

        acc_ref[...] += jnp.dot(a_ref[...], w_ref[...],
                                preferred_element_type=jnp.float32)

        @pl.when(k == nk - 1)
        def _fin():
            finalize(acc_ref[...])


def matmul_fused(a, w, b, *, act, emit_stats=False, out_dtype=jnp.bfloat16):
    """(M,K)bf16 @ (K,N)bf16 + f32 bias + activation -> bf16.

    Optionally emits per-M-tile (sum, sum_of_squares) rows (row 0 of each
    8-row stat block) for a following BatchNorm; reduced outside the kernel."""
    M, K = a.shape
    Kw, N = w.shape
    assert K == Kw and b.shape == (1, N)
    TM, TN, TK = _pick_tm(M), _pick_tn(N), _pick_tk(K)
    assert N % TN == 0 and K % TK == 0
    nM = (M + TM - 1) // TM
    Mp = nM * TM
    nN, nK = N // TN, K // TK

    a_p = a if Mp == M else jnp.pad(a, ((0, Mp - M), (0, 0)))
    m_true = M if (emit_stats and Mp != M) else None

    kernel = functools.partial(_mm_kernel, act=act, nk=nK,
                               emit_stats=emit_stats, m_true=m_true)
    o_spec = pl.BlockSpec((TM, TN), lambda n, m, k: (m, n))
    if emit_stats:
        # Per-M-tile partial stats (one 8-row block per M tile) keep the M
        # grid axis "parallel" -> megacore sharding on v7x.
        stat_spec = pl.BlockSpec((8, TN), lambda n, m, k: (m, n))
        out_shape = (jax.ShapeDtypeStruct((Mp, N), out_dtype),
                     jax.ShapeDtypeStruct((nM * 8, N), jnp.float32),
                     jax.ShapeDtypeStruct((nM * 8, N), jnp.float32))
        out_specs = (o_spec, stat_spec, stat_spec)
    else:
        out_shape = jax.ShapeDtypeStruct((Mp, N), out_dtype)
        out_specs = o_spec

    res = pl.pallas_call(
        kernel,
        out_shape=out_shape,
        grid=(nN, nM, nK),
        in_specs=[
            pl.BlockSpec((TM, TK), lambda n, m, k: (m, k)),   # A
            pl.BlockSpec((TK, TN), lambda n, m, k: (k, n)),   # W (BN pre-folded)
            pl.BlockSpec((1, TN), lambda n, m, k: (0, n)),    # bias
        ],
        out_specs=out_specs,
        scratch_shapes=([pltpu.VMEM((TM, TN), jnp.float32)] if nK > 1 else []),
        compiler_params=pltpu.CompilerParams(
            dimension_semantics=("parallel", "parallel", "arbitrary"),
            vmem_limit_bytes=VMEM_LIMIT_BYTES),
    )(a_p, w, b)

    if emit_stats:
        o, s, ss = res
    else:
        o = res
    if Mp != M:
        o = o[:M]
    return (o, s, ss) if emit_stats else o


# ---------------- fused fc1 -> relu -> fc2 -> sigmoid head ----------------
def _fc_head_kernel(a_ref, w1_ref, b1_ref, w2_ref, b2_ref, o_ref):
    h = jnp.dot(a_ref[...], w1_ref[...], preferred_element_type=jnp.float32)
    h = jnp.maximum(h + b1_ref[...], 0.0)
    y = jnp.dot(h.astype(jnp.bfloat16), w2_ref[...],
                preferred_element_type=jnp.float32)
    y = y + b2_ref[...]
    o_ref[...] = 1.0 / (1.0 + jnp.exp(-y))          # exact sigmoid


def fc_head(x, w1, b1, w2, b2):
    """Single pallas_call for the whole tiny tail (weights resident in VMEM)."""
    M, K = x.shape
    Mp = _round_up(M, 16)
    xp = x if Mp == M else jnp.pad(x, ((0, Mp - M), (0, 0)))
    N2 = w2.shape[1]
    out = pl.pallas_call(
        _fc_head_kernel,
        out_shape=jax.ShapeDtypeStruct((Mp, N2), jnp.float32),
        grid=(1,),
        in_specs=[pl.BlockSpec(xp.shape, lambda i: (0, 0)),
                  pl.BlockSpec(w1.shape, lambda i: (0, 0)),
                  pl.BlockSpec(b1.shape, lambda i: (0, 0)),
                  pl.BlockSpec(w2.shape, lambda i: (0, 0)),
                  pl.BlockSpec(b2.shape, lambda i: (0, 0))],
        out_specs=pl.BlockSpec((Mp, N2), lambda i: (0, 0)),
        compiler_params=pltpu.CompilerParams(
            vmem_limit_bytes=VMEM_LIMIT_BYTES),
    )(xp, w1, b1, w2, b2)
    return out[:M]


# ---------------- glue: im2col for 3x3 / stride-2 / pad-1 conv ----------------
def _im2col_s2p1(x_nhwc):
    B, H, W, C = x_nhwc.shape
    Ho, Wo = H // 2, W // 2
    xp = jnp.pad(x_nhwc, ((0, 0), (1, 1), (1, 1), (0, 0)))
    cols = [xp[:, ky:ky + 2 * Ho:2, kx:kx + 2 * Wo:2, :]
            for ky in range(3) for kx in range(3)]
    patches = jnp.concatenate(cols, axis=-1)            # (B, Ho, Wo, 9*C)
    return patches.reshape(B * Ho * Wo, 9 * C), (B, Ho, Wo)


def conv3x3_s2_layer(x, w, b, c_in, k_pad, mean=None, inv_std=None,
                     emit_stats=False):
    """3x3/s2/p1 conv + leaky_relu.  The preceding BatchNorm is folded as:
    centering before the zero pad (exact borders), the 1/sqrt(var+eps) scale
    folded once into the weight's K rows (no per-step A pre-scale)."""
    x = x[..., :c_in]                                    # drop lane padding
    if mean is not None:
        x = x.astype(jnp.float32) - mean.reshape(1, 1, 1, c_in)
    x = x.astype(jnp.bfloat16)
    patches, (B, Ho, Wo) = _im2col_s2p1(x)               # (M, 9*c_in)
    K = 9 * c_in
    if k_pad > K:
        patches = jnp.pad(patches, ((0, 0), (0, k_pad - K)))
    w_eff = w
    if inv_std is not None:
        col_scale = jnp.concatenate(
            [jnp.tile(inv_std, 9), jnp.ones((k_pad - K,), jnp.float32)])
        w_eff = (w.astype(jnp.float32) * col_scale[:, None]).astype(jnp.bfloat16)
    res = matmul_fused(patches, w_eff, b, act="leaky_relu",
                       emit_stats=emit_stats)
    if emit_stats:
        o, s, ss = res
        return o.reshape(B, Ho, Wo, -1), s, ss
    return res.reshape(B, Ho, Wo, -1)


def _bn_fold(s, ss, count, c_real):
    """Per-channel mean / 1/sqrt(var+eps) from in-kernel per-tile partials
    (train-mode BatchNorm2d, biased variance, gamma=1, beta=0)."""
    s = jnp.sum(s, axis=0)[:c_real]
    ss = jnp.sum(ss, axis=0)[:c_real]
    mean = s / count
    var = jnp.maximum(ss / count - mean * mean, 0.0)
    return mean, jax.lax.rsqrt(var + BN_EPS)


# ---------------- deterministic parameter init (padded once, bf16) ----------------
def _uniform(key, shape, fan_in):
    bound = 1.0 / float(fan_in) ** 0.5
    return jax.random.uniform(key, shape, jnp.float32, -bound, bound)


def init_params(key):
    ks = jax.random.split(key, 16)
    p = {}
    # nn.Linear(1, IMG*IMG): stored transposed, K padded to LIN_K_PAD
    w = _uniform(ks[0], (1, IMG * IMG), 1)
    p["linear_w"] = (jnp.zeros((LIN_K_PAD, IMG * IMG), jnp.float32)
                     .at[:1, :].set(w).astype(jnp.bfloat16))
    p["linear_b"] = _uniform(ks[1], (1, IMG * IMG), 1)

    cin = C_IN
    for idx, cout in enumerate(CONV_CH):
        K = 9 * cin
        k_pad = _round_up(K, 128)
        cout_pad = _round_up(cout, 128)
        w = _uniform(ks[2 + 2 * idx], (3, 3, cin, cout), K)
        b = _uniform(ks[3 + 2 * idx], (cout,), K)
        wp = (jnp.zeros((k_pad, cout_pad), jnp.float32)
              .at[:K, :cout].set(w.reshape(K, cout)))
        p[f"conv{idx + 1}_w"] = wp.astype(jnp.bfloat16)
        p[f"conv{idx + 1}_b"] = (jnp.zeros((1, cout_pad), jnp.float32)
                                 .at[0, :cout].set(b))
        cin = cout

    # fc1: spatial is 1x1 at this scale so flatten == channel axis
    fc1_in = CONV_CH[-1] * (IMG // 32) ** 2
    hid_pad = _round_up(FC_HIDDEN, 128)
    w = _uniform(ks[12], (fc1_in, FC_HIDDEN), fc1_in)
    p["fc1_w"] = (jnp.zeros((fc1_in, hid_pad), jnp.float32)
                  .at[:, :FC_HIDDEN].set(w).astype(jnp.bfloat16))
    p["fc1_b"] = (jnp.zeros((1, hid_pad), jnp.float32)
                  .at[0, :FC_HIDDEN].set(_uniform(ks[13], (FC_HIDDEN,), fc1_in)))
    # fc2: Linear(FC_HIDDEN, 1), N padded to 128 (sliced back after sigmoid)
    w2 = _uniform(ks[14], (FC_HIDDEN, 1), FC_HIDDEN)
    p["fc2_w"] = (jnp.zeros((hid_pad, 128), jnp.float32)
                  .at[:FC_HIDDEN, :1].set(w2).astype(jnp.bfloat16))
    p["fc2_b"] = (jnp.zeros((1, 128), jnp.float32)
                  .at[0, :1].set(_uniform(ks[15], (1,), FC_HIDDEN)))
    return p


# ---------------- forward pass ----------------
def discriminator_forward(params, x1, x2_nchw):
    B = x1.shape[0]

    # x1 = leaky_relu(linear(x1)); view(-1, 1, IMG, IMG)
    a1 = jnp.pad(x1.astype(jnp.bfloat16), ((0, 0), (0, LIN_K_PAD - 1)))
    h1 = matmul_fused(a1, params["linear_w"], params["linear_b"],
                      act="leaky_relu")                        # (B, IMG*IMG) bf16

    # channels-last concat [x1_map, x2]  (C=4, no channel padding carried)
    x1_hwc = h1.reshape(B, IMG, IMG, 1)
    x2_hwc = jnp.transpose(x2_nchw, (0, 2, 3, 1)).astype(jnp.bfloat16)
    x = jnp.concatenate([x1_hwc, x2_hwc], axis=-1)             # (B,IMG,IMG,4)

    # TODO(synk): F.dropout2d defaults to training=True (random channel
    # dropout); its PyTorch RNG cannot be matched bit-wise, so dropout is
    # applied as identity (eval-mode semantics).
    c_ins = (C_IN,) + CONV_CH[:-1]
    mean = inv = None
    for idx in range(5):
        emit = idx >= 1                     # conv2..conv5 feed a BatchNorm
        res = conv3x3_s2_layer(
            x, params[f"conv{idx + 1}_w"], params[f"conv{idx + 1}_b"],
            c_in=c_ins[idx], k_pad=_round_up(9 * c_ins[idx], 128),
            mean=mean, inv_std=inv, emit_stats=emit)
        if emit:
            x, s, ss = res
            count = x.shape[0] * x.shape[1] * x.shape[2]
            mean, inv = _bn_fold(s, ss, count, CONV_CH[idx])   # bn1..bn4
        else:
            x = res
            mean = inv = None

    # bn4 folded into the fc input (spatial is 1x1 here: flatten == channels)
    c5 = CONV_CH[-1]
    xf = ((x[..., :c5].astype(jnp.float32) - mean) * inv).reshape(B, -1)
    out = fc_head(xf.astype(jnp.bfloat16),
                  params["fc1_w"], params["fc1_b"],
                  params["fc2_w"], params["fc2_b"])
    return out[:, :1]                        # drop padded sigmoid lanes -> (B,1)


if __name__ == "__main__":
    key = jax.random.PRNGKey(0)
    kp, k1, k2 = jax.random.split(key, 3)
    params = init_params(kp)

    B = 2
    x1 = jax.random.normal(k1, (B, 1), jnp.float32)
    x2 = jax.random.normal(k2, (B, 3, IMG, IMG), jnp.float32)

    fwd = jax.jit(discriminator_forward)
    out = jax.block_until_ready(fwd(params, x1, x2))

    assert out.shape == (B, 1), out.shape
    assert out.dtype == jnp.float32
    assert bool(jnp.all(jnp.isfinite(out)))
    assert bool(jnp.all((out >= 0.0) & (out <= 1.0)))   # sigmoid range
    print("KERNEL_OK")
</pallas_src>

<mosaic_0001>
module attributes {stable_mosaic.version = 11 : i64} {
  func.func @_mm_kernel(%arg0: i32, %arg1: i32, %arg2: i32, %arg3: memref<16x128xbf16, #tpu.memory_space<vmem>>, %arg4: memref<128x256xbf16, #tpu.memory_space<vmem>>, %arg5: memref<1x256xf32, #tpu.memory_space<vmem>>, %arg6: memref<16x256xbf16, #tpu.memory_space<vmem>>) attributes {dimension_semantics = [#tpu.dimension_semantics<parallel>, #tpu.dimension_semantics<parallel>, #tpu.dimension_semantics<arbitrary>], iteration_bounds = array<i64: 4, 1, 1>, scalar_prefetch = 0 : i64, scratch_operands = 0 : i64, tpu.core_type = #tpu.core_type<tc>, window_params = [{transform_indices = @transform_0, window_bounds = array<i64: 16, 128>}, {transform_indices = @transform_1, window_bounds = array<i64: 128, 256>}, {transform_indices = @transform_2, window_bounds = array<i64: 1, 256>}, {transform_indices = @transform_3, window_bounds = array<i64: 16, 256>}]} {
    %c0 = arith.constant 0 : index
    %c0_0 = arith.constant 0 : index
    %0 = vector.load %arg3[%c0, %c0_0] : memref<16x128xbf16, #tpu.memory_space<vmem>>, vector<16x128xbf16>
    %c0_1 = arith.constant 0 : index
    %c0_2 = arith.constant 0 : index
    %1 = vector.load %arg4[%c0_1, %c0_2] : memref<128x256xbf16, #tpu.memory_space<vmem>>, vector<128x256xbf16>
    %cst = arith.constant dense<0.000000e+00> : vector<16x256xf32>
    %2 = tpu.matmul %0, %1, %cst {dimension_numbers = #tpu.dot_dimension_numbers<[1], [0], [0], [1], [0, 0, 1, 1], [], []>} : vector<16x128xbf16>, vector<128x256xbf16>, vector<16x256xf32> -> vector<16x256xf32>
    %c0_3 = arith.constant 0 : index
    %c0_4 = arith.constant 0 : index
    %3 = vector.load %arg5[%c0_3, %c0_4] : memref<1x256xf32, #tpu.memory_space<vmem>>, vector<1x256xf32>
    %4 = vector.broadcast %3 : vector<1x256xf32> to vector<16x256xf32>
    %5 = arith.addf %2, %4 : vector<16x256xf32>
    %cst_5 = arith.constant 0.000000e+00 : f32
    %6 = vector.broadcast %cst_5 : f32 to vector<16x256xf32>
    %7 = arith.cmpf oge, %5, %6 : vector<16x256xf32>
    %cst_6 = arith.constant 0.00999999977 : f32
    %8 = vector.broadcast %cst_6 : f32 to vector<16x256xf32>
    %9 = arith.mulf %8, %5 : vector<16x256xf32>
    %10 = arith.select %7, %5, %9 : vector<16x256xi1>, vector<16x256xf32>
    %11 = arith.truncf %10 : vector<16x256xf32> to vector<16x256xbf16>
    %c0_7 = arith.constant 0 : index
    %c0_8 = arith.constant 0 : index
    %12 = vector.load %arg6[%c0_7, %c0_8] : memref<16x256xbf16, #tpu.memory_space<vmem>>, vector<16x256xbf16>
    tpu.vector_store %arg6[%c0_7, %c0_8], %11 {strides = array<i32>} : memref<16x256xbf16, #tpu.memory_space<vmem>>, vector<16x256xbf16>,
    return
  }
  func.func @transform_0(%arg0: i32, %arg1: i32, %arg2: i32) -> (i32, i32) {
    %c0_i32 = arith.constant 0 : i32
    return %arg1, %arg2 : i32, i32
  }
  func.func @transform_1(%arg0: i32, %arg1: i32, %arg2: i32) -> (i32, i32) {
    %c0_i32 = arith.constant 0 : i32
    return %arg2, %arg0 : i32, i32
  }
  func.func @transform_2(%arg0: i32, %arg1: i32, %arg2: i32) -> (i32, i32) {
    %c0_i32 = arith.constant 0 : i32
    %c0_i32_0 = arith.constant 0 : i32
    return %c0_i32, %arg0 : i32, i32
  }
  func.func @transform_3(%arg0: i32, %arg1: i32, %arg2: i32) -> (i32, i32) {
    %c0_i32 = arith.constant 0 : i32
    return %arg1, %arg0 : i32, i32
  }
}

module attributes {stable_mosaic.version = 11 : i64} {
  func.func @_mm_kernel(%arg0: i32, %arg1: i32, %arg2: i32, %arg3: memref<256x128xbf16, #tpu.memory_space<vmem>>, %arg4: memref<128x128xbf16, #tpu.memory_space<vmem>>, %arg5: memref<1x128xf32, #tpu.memory_space<vmem>>, %arg6: memref<256x128xbf16, #tpu.memory_space<vmem>>) attributes {dimension_semantics = [#tpu.dimension_semantics<parallel>, #tpu.dimension_semantics<parallel>, #tpu.dimension_semantics<arbitrary>], iteration_bounds = array<i64: 1, 2, 1>, scalar_prefetch = 0 : i64, scratch_operands = 0 : i64, tpu.core_type = #tpu.core_type<tc>, window_params = [{transform_indices = @transform_0, window_bounds = array<i64: 256, 128>}, {transform_indices = @transform_1, window_bounds = array<i64: 128, 128>}, {transform_indices = @transform_2, window_bounds = array<i64: 1, 128>}, {transform_indices = @transform_3, window_bounds = array<i64: 256, 128>}]} {
    %c0 = arith.constant 0 : index
    %c0_0 = arith.constant 0 : index
    %0 = vector.load %arg3[%c0, %c0_0] : memref<256x128xbf16, #tpu.memory_space<vmem>>, vector<256x128xbf16>
    %c0_1 = arith.constant 0 : index
    %c0_2 = arith.constant 0 : index
    %1 = vector.load %arg4[%c0_1, %c0_2] : memref<128x128xbf16, #tpu.memory_space<vmem>>, vector<128x128xbf16>
    %cst = arith.constant dense<0.000000e+00> : vector<256x128xf32>
    %2 = tpu.matmul %0, %1, %cst {dimension_numbers = #tpu.dot_dimension_numbers<[1], [0], [0], [1], [0, 0, 1, 1], [], []>} : vector<256x128xbf16>, vector<128x128xbf16>, vector<256x128xf32> -> vector<256x128xf32>
    %c0_3 = arith.constant 0 : index
    %c0_4 = arith.constant 0 : index
    %3 = vector.load %arg5[%c0_3, %c0_4] : memref<1x128xf32, #tpu.memory_space<vmem>>, vector<1x128xf32>
    %4 = vector.broadcast %3 : vector<1x128xf32> to vector<256x128xf32>
    %5 = arith.addf %2, %4 : vector<256x128xf32>
    %cst_5 = arith.constant 0.000000e+00 : f32
    %6 = vector.broadcast %cst_5 : f32 to vector<256x128xf32>
    %7 = arith.cmpf oge, %5, %6 : vector<256x128xf32>
    %cst_6 = arith.constant 0.00999999977 : f32
    %8 = vector.broadcast %cst_6 : f32 to vector<256x128xf32>
    %9 = arith.mulf %8, %5 : vector<256x128xf32>
    %10 = arith.select %7, %5, %9 : vector<256x128xi1>, vector<256x128xf32>
    %11 = arith.truncf %10 : vector<256x128xf32> to vector<256x128xbf16>
    %c0_7 = arith.constant 0 : index
    %c0_8 = arith.constant 0 : index
    %12 = vector.load %arg6[%c0_7, %c0_8] : memref<256x128xbf16, #tpu.memory_space<vmem>>, vector<256x128xbf16>
    tpu.vector_store %arg6[%c0_7, %c0_8], %11 {strides = array<i32>} : memref<256x128xbf16, #tpu.memory_space<vmem>>, vector<256x128xbf16>,
    return
  }
  func.func @transform_0(%arg0: i32, %arg1: i32, %arg2: i32) -> (i32, i32) {
    %c0_i32 = arith.constant 0 : i32
    return %arg1, %arg2 : i32, i32
  }
  func.func @transform_1(%arg0: i32, %arg1: i32, %arg2: i32) -> (i32, i32) {
    %c0_i32 = arith.constant 0 : i32
    return %arg2, %arg0 : i32, i32
  }
  func.func @transform_2(%arg0: i32, %arg1: i32, %arg2: i32) -> (i32, i32) {
    %c0_i32 = arith.constant 0 : i32
    %c0_i32_0 = arith.constant 0 : i32
    return %c0_i32, %arg0 : i32, i32
  }
  func.func @transform_3(%arg0: i32, %arg1: i32, %arg2: i32) -> (i32, i32) {
    %c0_i32 = arith.constant 0 : i32
    return %arg1, %arg0 : i32, i32
  }
}

module attributes {stable_mosaic.version = 11 : i64} {
  func.func @_mm_kernel(%arg0: i32, %arg1: i32, %arg2: i32, %arg3: memref<128x256xbf16, #tpu.memory_space<vmem>>, %arg4: memref<256x128xbf16, #tpu.memory_space<vmem>>, %arg5: memref<1x128xf32, #tpu.memory_space<vmem>>, %arg6: memref<128x128xbf16, #tpu.memory_space<vmem>>, %arg7: memref<8x128xf32, #tpu.memory_space<vmem>>, %arg8: memref<8x128xf32, #tpu.memory_space<vmem>>) attributes {dimension_semantics = [#tpu.dimension_semantics<parallel>, #tpu.dimension_semantics<parallel>, #tpu.dimension_semantics<arbitrary>], iteration_bounds = array<i64: 1, 1, 1>, scalar_prefetch = 0 : i64, scratch_operands = 0 : i64, tpu.core_type = #tpu.core_type<tc>, window_params = [{transform_indices = @transform_0, window_bounds = array<i64: 128, 256>}, {transform_indices = @transform_1, window_bounds = array<i64: 256, 128>}, {transform_indices = @transform_2, window_bounds = array<i64: 1, 128>}, {transform_indices = @transform_3, window_bounds = array<i64: 128, 128>}, {transform_indices = @transform_4, window_bounds = array<i64: 8, 128>}, {transform_indices = @transform_5, window_bounds = array<i64: 8, 128>}]} {
    %c0 = arith.constant 0 : index
    %c0_0 = arith.constant 0 : index
    %0 = vector.load %arg3[%c0, %c0_0] : memref<128x256xbf16, #tpu.memory_space<vmem>>, vector<128x256xbf16>
    %c0_1 = arith.constant 0 : index
    %c0_2 = arith.constant 0 : index
    %1 = vector.load %arg4[%c0_1, %c0_2] : memref<256x128xbf16, #tpu.memory_space<vmem>>, vector<256x128xbf16>
    %cst = arith.constant dense<0.000000e+00> : vector<128x128xf32>
    %2 = tpu.matmul %0, %1, %cst {dimension_numbers = #tpu.dot_dimension_numbers<[1], [0], [0], [1], [0, 0, 1, 1], [], []>} : vector<128x256xbf16>, vector<256x128xbf16>, vector<128x128xf32> -> vector<128x128xf32>
    %c0_3 = arith.constant 0 : index
    %c0_4 = arith.constant 0 : index
    %3 = vector.load %arg5[%c0_3, %c0_4] : memref<1x128xf32, #tpu.memory_space<vmem>>, vector<1x128xf32>
    %4 = vector.broadcast %3 : vector<1x128xf32> to vector<128x128xf32>
    %5 = arith.addf %2, %4 : vector<128x128xf32>
    %cst_5 = arith.constant 0.000000e+00 : f32
    %6 = vector.broadcast %cst_5 : f32 to vector<128x128xf32>
    %7 = arith.cmpf oge, %5, %6 : vector<128x128xf32>
    %cst_6 = arith.constant 0.00999999977 : f32
    %8 = vector.broadcast %cst_6 : f32 to vector<128x128xf32>
    %9 = arith.mulf %8, %5 : vector<128x128xf32>
    %10 = arith.select %7, %5, %9 : vector<128x128xi1>, vector<128x128xf32>
    %11 = arith.truncf %10 : vector<128x128xf32> to vector<128x128xbf16>
    %c0_7 = arith.constant 0 : index
    %c0_8 = arith.constant 0 : index
    %12 = vector.load %arg6[%c0_7, %c0_8] : memref<128x128xbf16, #tpu.memory_space<vmem>>, vector<128x128xbf16>
    tpu.vector_store %arg6[%c0_7, %c0_8], %11 {strides = array<i32>} : memref<128x128xbf16, #tpu.memory_space<vmem>>, vector<128x128xbf16>,
    %cst_9 = arith.constant dense<0.000000e+00> : vector<128xf32>
    %13 = vector.multi_reduction <add>, %10, %cst_9 [0] : vector<128x128xf32> to vector<128xf32>
    %14 = vector.shape_cast %13 : vector<128xf32> to vector<1x128xf32>
    %15 = arith.mulf %10, %10 : vector<128x128xf32>
    %cst_10 = arith.constant dense<0.000000e+00> : vector<128xf32>
    %16 = vector.multi_reduction <add>, %15, %cst_10 [0] : vector<128x128xf32> to vector<128xf32>
    %17 = vector.shape_cast %16 : vector<128xf32> to vector<1x128xf32>
    %cst_11 = arith.constant 0.000000e+00 : f32
    %18 = vector.broadcast %cst_11 : f32 to vector<7x128xf32>
    %19 = tpu.concatenate %14, %18 in 0 : vector<1x128xf32>, vector<7x128xf32> -> vector<8x128xf32>
    %c0_12 = arith.constant 0 : index
    %c0_13 = arith.constant 0 : index
    %20 = vector.load %arg7[%c0_12, %c0_13] : memref<8x128xf32, #tpu.memory_space<vmem>>, vector<8x128xf32>
    tpu.vector_store %arg7[%c0_12, %c0_13], %19 {strides = array<i32>} : memref<8x128xf32, #tpu.memory_space<vmem>>, vector<8x128xf32>,
    %21 = tpu.concatenate %17, %18 in 0 : vector<1x128xf32>, vector<7x128xf32> -> vector<8x128xf32>
    %c0_14 = arith.constant 0 : index
    %c0_15 = arith.constant 0 : index
    %22 = vector.load %arg8[%c0_14, %c0_15] : memref<8x128xf32, #tpu.memory_space<vmem>>, vector<8x128xf32>
    tpu.vector_store %arg8[%c0_14, %c0_15], %21 {strides = array<i32>} : memref<8x128xf32, #tpu.memory_space<vmem>>, vector<8x128xf32>,
    return
  }
  func.func @transform_0(%arg0: i32, %arg1: i32, %arg2: i32) -> (i32, i32) {
    %c0_i32 = arith.constant 0 : i32
    return %arg1, %arg2 : i32, i32
  }
  func.func @transform_1(%arg0: i32, %arg1: i32, %arg2: i32) -> (i32, i32) {
    %c0_i32 = arith.constant 0 : i32
    return %arg2, %arg0 : i32, i32
  }
  func.func @transform_2(%arg0: i32, %arg1: i32, %arg2: i32) -> (i32, i32) {
    %c0_i32 = arith.constant 0 : i32
    %c0_i32_0 = arith.constant 0 : i32
    return %c0_i32, %arg0 : i32, i32
  }
  func.func @transform_3(%arg0: i32, %arg1: i32, %arg2: i32) -> (i32, i32) {
    %c0_i32 = arith.constant 0 : i32
    return %arg1, %arg0 : i32, i32
  }
  func.func @transform_4(%arg0: i32, %arg1: i32, %arg2: i32) -> (i32, i32) {
    %c0_i32 = arith.constant 0 : i32
    return %arg1, %arg0 : i32, i32
  }
  func.func @transform_5(%arg0: i32, %arg1: i32, %arg2: i32) -> (i32, i32) {
    %c0_i32 = arith.constant 0 : i32
    return %arg1, %arg0 : i32, i32
  }
}

module attributes {stable_mosaic.version = 11 : i64} {
  func.func @_mm_kernel(%arg0: i32, %arg1: i32, %arg2: i32, %arg3: memref<32x384xbf16, #tpu.memory_space<vmem>>, %arg4: memref<384x128xbf16, #tpu.memory_space<vmem>>, %arg5: memref<1x128xf32, #tpu.memory_space<vmem>>, %arg6: memref<32x128xbf16, #tpu.memory_space<vmem>>, %arg7: memref<8x128xf32, #tpu.memory_space<vmem>>, %arg8: memref<8x128xf32, #tpu.memory_space<vmem>>) attributes {dimension_semantics = [#tpu.dimension_semantics<parallel>, #tpu.dimension_semantics<parallel>, #tpu.dimension_semantics<arbitrary>], iteration_bounds = array<i64: 1, 1, 1>, scalar_prefetch = 0 : i64, scratch_operands = 0 : i64, tpu.core_type = #tpu.core_type<tc>, window_params = [{transform_indices = @transform_0, window_bounds = array<i64: 32, 384>}, {transform_indices = @transform_1, window_bounds = array<i64: 384, 128>}, {transform_indices = @transform_2, window_bounds = array<i64: 1, 128>}, {transform_indices = @transform_3, window_bounds = array<i64: 32, 128>}, {transform_indices = @transform_4, window_bounds = array<i64: 8, 128>}, {transform_indices = @transform_5, window_bounds = array<i64: 8, 128>}]} {
    %c0 = arith.constant 0 : index
    %c0_0 = arith.constant 0 : index
    %0 = vector.load %arg3[%c0, %c0_0] : memref<32x384xbf16, #tpu.memory_space<vmem>>, vector<32x384xbf16>
    %c0_1 = arith.constant 0 : index
    %c0_2 = arith.constant 0 : index
    %1 = vector.load %arg4[%c0_1, %c0_2] : memref<384x128xbf16, #tpu.memory_space<vmem>>, vector<384x128xbf16>
    %cst = arith.constant dense<0.000000e+00> : vector<32x128xf32>
    %2 = tpu.matmul %0, %1, %cst {dimension_numbers = #tpu.dot_dimension_numbers<[1], [0], [0], [1], [0, 0, 1, 1], [], []>} : vector<32x384xbf16>, vector<384x128xbf16>, vector<32x128xf32> -> vector<32x128xf32>
    %c0_3 = arith.constant 0 : index
    %c0_4 = arith.constant 0 : index
    %3 = vector.load %arg5[%c0_3, %c0_4] : memref<1x128xf32, #tpu.memory_space<vmem>>, vector<1x128xf32>
    %4 = vector.broadcast %3 : vector<1x128xf32> to vector<32x128xf32>
    %5 = arith.addf %2, %4 : vector<32x128xf32>
    %cst_5 = arith.constant 0.000000e+00 : f32
    %6 = vector.broadcast %cst_5 : f32 to vector<32x128xf32>
    %7 = arith.cmpf oge, %5, %6 : vector<32x128xf32>
    %cst_6 = arith.constant 0.00999999977 : f32
    %8 = vector.broadcast %cst_6 : f32 to vector<32x128xf32>
    %9 = arith.mulf %8, %5 : vector<32x128xf32>
    %10 = arith.select %7, %5, %9 : vector<32x128xi1>, vector<32x128xf32>
    %11 = arith.truncf %10 : vector<32x128xf32> to vector<32x128xbf16>
    %c0_7 = arith.constant 0 : index
    %c0_8 = arith.constant 0 : index
    %12 = vector.load %arg6[%c0_7, %c0_8] : memref<32x128xbf16, #tpu.memory_space<vmem>>, vector<32x128xbf16>
    tpu.vector_store %arg6[%c0_7, %c0_8], %11 {strides = array<i32>} : memref<32x128xbf16, #tpu.memory_space<vmem>>, vector<32x128xbf16>,
    %cst_9 = arith.constant dense<0.000000e+00> : vector<128xf32>
    %13 = vector.multi_reduction <add>, %10, %cst_9 [0] : vector<32x128xf32> to vector<128xf32>
    %14 = vector.shape_cast %13 : vector<128xf32> to vector<1x128xf32>
    %15 = arith.mulf %10, %10 : vector<32x128xf32>
    %cst_10 = arith.constant dense<0.000000e+00> : vector<128xf32>
    %16 = vector.multi_reduction <add>, %15, %cst_10 [0] : vector<32x128xf32> to vector<128xf32>
    %17 = vector.shape_cast %16 : vector<128xf32> to vector<1x128xf32>
    %cst_11 = arith.constant 0.000000e+00 : f32
    %18 = vector.broadcast %cst_11 : f32 to vector<7x128xf32>
    %19 = tpu.concatenate %14, %18 in 0 : vector<1x128xf32>, vector<7x128xf32> -> vector<8x128xf32>
    %c0_12 = arith.constant 0 : index
    %c0_13 = arith.constant 0 : index
    %20 = vector.load %arg7[%c0_12, %c0_13] : memref<8x128xf32, #tpu.memory_space<vmem>>, vector<8x128xf32>
    tpu.vector_store %arg7[%c0_12, %c0_13], %19 {strides = array<i32>} : memref<8x128xf32, #tpu.memory_space<vmem>>, vector<8x128xf32>,
    %21 = tpu.concatenate %17, %18 in 0 : vector<1x128xf32>, vector<7x128xf32> -> vector<8x128xf32>
    %c0_14 = arith.constant 0 : index
    %c0_15 = arith.constant 0 : index
    %22 = vector.load %arg8[%c0_14, %c0_15] : memref<8x128xf32, #tpu.memory_space<vmem>>, vector<8x128xf32>
    tpu.vector_store %arg8[%c0_14, %c0_15], %21 {strides = array<i32>} : memref<8x128xf32, #tpu.memory_space<vmem>>, vector<8x128xf32>,
    return
  }
  func.func @transform_0(%arg0: i32, %arg1: i32, %arg2: i32) -> (i32, i32) {
    %c0_i32 = arith.constant 0 : i32
    return %arg1, %arg2 : i32, i32
  }
  func.func @transform_1(%arg0: i32, %arg1: i32, %arg2: i32) -> (i32, i32) {
    %c0_i32 = arith.constant 0 : i32
    return %arg2, %arg0 : i32, i32
  }
  func.func @transform_2(%arg0: i32, %arg1: i32, %arg2: i32) -> (i32, i32) {
    %c0_i32 = arith.constant 0 : i32
    %c0_i32_0 = arith.constant 0 : i32
    return %c0_i32, %arg0 : i32, i32
  }
  func.func @transform_3(%arg0: i32, %arg1: i32, %arg2: i32) -> (i32, i32) {
    %c0_i32 = arith.constant 0 : i32
    return %arg1, %arg0 : i32, i32
  }
  func.func @transform_4(%arg0: i32, %arg1: i32, %arg2: i32) -> (i32, i32) {
    %c0_i32 = arith.constant 0 : i32
    return %arg1, %arg0 : i32, i32
  }
  func.func @transform_5(%arg0: i32, %arg1: i32, %arg2: i32) -> (i32, i32) {
    %c0_i32 = arith.constant 0 : i32
    return %arg1, %arg0 : i32, i32
  }
}

module attributes {stable_mosaic.version = 11 : i64} {
  func.func @_mm_kernel(%arg0: i32, %arg1: i32, %arg2: i32, %arg3: memref<16x640xbf16, #tpu.memory_space<vmem>>, %arg4: memref<640x128xbf16, #tpu.memory_space<vmem>>, %arg5: memref<1x128xf32, #tpu.memory_space<vmem>>, %arg6: memref<16x128xbf16, #tpu.memory_space<vmem>>, %arg7: memref<8x128xf32, #tpu.memory_space<vmem>>, %arg8: memref<8x128xf32, #tpu.memory_space<vmem>>) attributes {dimension_semantics = [#tpu.dimension_semantics<parallel>, #tpu.dimension_semantics<parallel>, #tpu.dimension_semantics<arbitrary>], iteration_bounds = array<i64: 1, 1, 1>, scalar_prefetch = 0 : i64, scratch_operands = 0 : i64, tpu.core_type = #tpu.core_type<tc>, window_params = [{transform_indices = @transform_0, window_bounds = array<i64: 16, 640>}, {transform_indices = @transform_1, window_bounds = array<i64: 640, 128>}, {transform_indices = @transform_2, window_bounds = array<i64: 1, 128>}, {transform_indices = @transform_3, window_bounds = array<i64: 16, 128>}, {transform_indices = @transform_4, window_bounds = array<i64: 8, 128>}, {transform_indices = @transform_5, window_bounds = array<i64: 8, 128>}]} {
    %c0 = arith.constant 0 : index
    %c0_0 = arith.constant 0 : index
    %0 = vector.load %arg3[%c0, %c0_0] : memref<16x640xbf16, #tpu.memory_space<vmem>>, vector<16x640xbf16>
    %c0_1 = arith.constant 0 : index
    %c0_2 = arith.constant 0 : index
    %1 = vector.load %arg4[%c0_1, %c0_2] : memref<640x128xbf16, #tpu.memory_space<vmem>>, vector<640x128xbf16>
    %cst = arith.constant dense<0.000000e+00> : vector<16x128xf32>
    %2 = tpu.matmul %0, %1, %cst {dimension_numbers = #tpu.dot_dimension_numbers<[1], [0], [0], [1], [0, 0, 1, 1], [], []>} : vector<16x640xbf16>, vector<640x128xbf16>, vector<16x128xf32> -> vector<16x128xf32>
    %c0_3 = arith.constant 0 : index
    %c0_4 = arith.constant 0 : index
    %3 = vector.load %arg5[%c0_3, %c0_4] : memref<1x128xf32, #tpu.memory_space<vmem>>, vector<1x128xf32>
    %4 = vector.broadcast %3 : vector<1x128xf32> to vector<16x128xf32>
    %5 = arith.addf %2, %4 : vector<16x128xf32>
    %cst_5 = arith.constant 0.000000e+00 : f32
    %6 = vector.broadcast %cst_5 : f32 to vector<16x128xf32>
    %7 = arith.cmpf oge, %5, %6 : vector<16x128xf32>
    %cst_6 = arith.constant 0.00999999977 : f32
    %8 = vector.broadcast %cst_6 : f32 to vector<16x128xf32>
    %9 = arith.mulf %8, %5 : vector<16x128xf32>
    %10 = arith.select %7, %5, %9 : vector<16x128xi1>, vector<16x128xf32>
    %11 = arith.truncf %10 : vector<16x128xf32> to vector<16x128xbf16>
    %c0_7 = arith.constant 0 : index
    %c0_8 = arith.constant 0 : index
    %12 = vector.load %arg6[%c0_7, %c0_8] : memref<16x128xbf16, #tpu.memory_space<vmem>>, vector<16x128xbf16>
    tpu.vector_store %arg6[%c0_7, %c0_8], %11 {strides = array<i32>} : memref<16x128xbf16, #tpu.memory_space<vmem>>, vector<16x128xbf16>,
    %13 = tpu.iota {dimensions = array<i32: 0>} : vector<16x1xi32>
    %c16_i32 = arith.constant 16 : i32
    %14 = arith.muli %arg1, %c16_i32 : i32
    %15 = vector.broadcast %14 : i32 to vector<16x1xi32>
    %16 = arith.addi %13, %15 : vector<16x1xi32>
    %c8_i32 = arith.constant 8 : i32
    %17 = vector.broadcast %c8_i32 : i32 to vector<16x1xi32>
    %18 = arith.cmpi slt, %16, %17 : vector<16x1xi32>
    %cst_9 = arith.constant 0.000000e+00 : f32
    %19 = vector.shape_cast %18 : vector<16x1xi1> to vector<16x1xi1>
    %20 = vector.broadcast %19 : vector<16x1xi1> to vector<16x128xi1>
    %21 = vector.broadcast %cst_9 : f32 to vector<16x128xf32>
    %22 = arith.select %20, %10, %21 : vector<16x128xi1>, vector<16x128xf32>
    %cst_10 = arith.constant dense<0.000000e+00> : vector<128xf32>
    %23 = vector.multi_reduction <add>, %22, %cst_10 [0] : vector<16x128xf32> to vector<128xf32>
    %24 = vector.shape_cast %23 : vector<128xf32> to vector<1x128xf32>
    %25 = arith.mulf %22, %22 : vector<16x128xf32>
    %cst_11 = arith.constant dense<0.000000e+00> : vector<128xf32>
    %26 = vector.multi_reduction <add>, %25, %cst_11 [0] : vector<16x128xf32> to vector<128xf32>
    %27 = vector.shape_cast %26 : vector<128xf32> to vector<1x128xf32>
    %cst_12 = arith.constant 0.000000e+00 : f32
    %28 = vector.broadcast %cst_12 : f32 to vector<7x128xf32>
    %29 = tpu.concatenate %24, %28 in 0 : vector<1x128xf32>, vector<7x128xf32> -> vector<8x128xf32>
    %c0_13 = arith.constant 0 : index
    %c0_14 = arith.constant 0 : index
    %30 = vector.load %arg7[%c0_13, %c0_14] : memref<8x128xf32, #tpu.memory_space<vmem>>, vector<8x128xf32>
    tpu.vector_store %arg7[%c0_13, %c0_14], %29 {strides = array<i32>} : memref<8x128xf32, #tpu.memory_space<vmem>>, vector<8x128xf32>,
    %31 = tpu.concatenate %27, %28 in 0 : vector<1x128xf32>, vector<7x128xf32> -> vector<8x128xf32>
    %c0_15 = arith.constant 0 : index
    %c0_16 = arith.constant 0 : index
    %32 = vector.load %arg8[%c0_15, %c0_16] : memref<8x128xf32, #tpu.memory_space<vmem>>, vector<8x128xf32>
    tpu.vector_store %arg8[%c0_15, %c0_16], %31 {strides = array<i32>} : memref<8x128xf32, #tpu.memory_space<vmem>>, vector<8x128xf32>,
    return
  }
  func.func @transform_0(%arg0: i32, %arg1: i32, %arg2: i32) -> (i32, i32) {
    %c0_i32 = arith.constant 0 : i32
    return %arg1, %arg2 : i32, i32
  }
  func.func @transform_1(%arg0: i32, %arg1: i32, %arg2: i32) -> (i32, i32) {
    %c0_i32 = arith.constant 0 : i32
    return %arg2, %arg0 : i32, i32
  }
  func.func @transform_2(%arg0: i32, %arg1: i32, %arg2: i32) -> (i32, i32) {
    %c0_i32 = arith.constant 0 : i32
    %c0_i32_0 = arith.constant 0 : i32
    return %c0_i32, %arg0 : i32, i32
  }
  func.func @transform_3(%arg0: i32, %arg1: i32, %arg2: i32) -> (i32, i32) {
    %c0_i32 = arith.constant 0 : i32
    return %arg1, %arg0 : i32, i32
  }
  func.func @transform_4(%arg0: i32, %arg1: i32, %arg2: i32) -> (i32, i32) {
    %c0_i32 = arith.constant 0 : i32
    return %arg1, %arg0 : i32, i32
  }
  func.func @transform_5(%arg0: i32, %arg1: i32, %arg2: i32) -> (i32, i32) {
    %c0_i32 = arith.constant 0 : i32
    return %arg1, %arg0 : i32, i32
  }
}

module attributes {stable_mosaic.version = 11 : i64} {
  func.func @_mm_kernel(%arg0: i32, %arg1: i32, %arg2: i32, %arg3: memref<16x384xbf16, #tpu.memory_space<vmem>>, %arg4: memref<384x256xbf16, #tpu.memory_space<vmem>>, %arg5: memref<1x256xf32, #tpu.memory_space<vmem>>, %arg6: memref<16x256xbf16, #tpu.memory_space<vmem>>, %arg7: memref<8x256xf32, #tpu.memory_space<vmem>>, %arg8: memref<8x256xf32, #tpu.memory_space<vmem>>, %arg9: memref<16x256xf32, #tpu.memory_space<vmem>>) attributes {dimension_semantics = [#tpu.dimension_semantics<parallel>, #tpu.dimension_semantics<parallel>, #tpu.dimension_semantics<arbitrary>], iteration_bounds = array<i64: 1, 1, 3>, scalar_prefetch = 0 : i64, scratch_operands = 1 : i64, tpu.core_type = #tpu.core_type<tc>, window_params = [{transform_indices = @transform_0, window_bounds = array<i64: 16, 384>}, {transform_indices = @transform_1, window_bounds = array<i64: 384, 256>}, {transform_indices = @transform_2, window_bounds = array<i64: 1, 256>}, {transform_indices = @transform_3, window_bounds = array<i64: 16, 256>}, {transform_indices = @transform_4, window_bounds = array<i64: 8, 256>}, {transform_indices = @transform_5, window_bounds = array<i64: 8, 256>}]} {
    %c0_i32 = arith.constant 0 : i32
    %0 = arith.cmpi eq, %arg2, %c0_i32 : i32
    %1 = arith.extui %0 : i1 to i32
    %c0_i32_0 = arith.constant 0 : i32
    %2 = arith.cmpi ne, %1, %c0_i32_0 : i32
    scf.if %2 {
      %cst_9 = arith.constant 0.000000e+00 : f32
      %12 = vector.broadcast %cst_9 : f32 to vector<16x256xf32>
      %c0_10 = arith.constant 0 : index
      %c0_11 = arith.constant 0 : index
      %13 = vector.load %arg9[%c0_10, %c0_11] : memref<16x256xf32, #tpu.memory_space<vmem>>, vector<16x256xf32>
      tpu.vector_store %arg9[%c0_10, %c0_11], %12 {strides = array<i32>} : memref<16x256xf32, #tpu.memory_space<vmem>>, vector<16x256xf32>,
    } else {
    }
    %c0 = arith.constant 0 : index
    %c0_1 = arith.constant 0 : index
    %3 = vector.load %arg9[%c0, %c0_1] : memref<16x256xf32, #tpu.memory_space<vmem>>, vector<16x256xf32>
    %c0_2 = arith.constant 0 : index
    %c0_3 = arith.constant 0 : index
    %4 = vector.load %arg3[%c0_2, %c0_3] : memref<16x384xbf16, #tpu.memory_space<vmem>>, vector<16x384xbf16>
    %c0_4 = arith.constant 0 : index
    %c0_5 = arith.constant 0 : index
    %5 = vector.load %arg4[%c0_4, %c0_5] : memref<384x256xbf16, #tpu.memory_space<vmem>>, vector<384x256xbf16>
    %cst = arith.constant dense<0.000000e+00> : vector<16x256xf32>
    %6 = tpu.matmul %4, %5, %cst {dimension_numbers = #tpu.dot_dimension_numbers<[1], [0], [0], [1], [0, 0, 1, 1], [], []>} : vector<16x384xbf16>, vector<384x256xbf16>, vector<16x256xf32> -> vector<16x256xf32>
    %7 = arith.addf %3, %6 : vector<16x256xf32>
    %c0_6 = arith.constant 0 : index
    %c0_7 = arith.constant 0 : index
    %8 = vector.load %arg9[%c0_6, %c0_7] : memref<16x256xf32, #tpu.memory_space<vmem>>, vector<16x256xf32>
    tpu.vector_store %arg9[%c0_6, %c0_7], %7 {strides = array<i32>} : memref<16x256xf32, #tpu.memory_space<vmem>>, vector<16x256xf32>,
    %c2_i32 = arith.constant 2 : i32
    %9 = arith.cmpi eq, %arg2, %c2_i32 : i32
    %10 = arith.extui %9 : i1 to i32
    %c0_i32_8 = arith.constant 0 : i32
    %11 = arith.cmpi ne, %10, %c0_i32_8 : i32
    scf.if %11 {
      %c0_9 = arith.constant 0 : index
      %c0_10 = arith.constant 0 : index
      %12 = vector.load %arg9[%c0_9, %c0_10] : memref<16x256xf32, #tpu.memory_space<vmem>>, vector<16x256xf32>
      %c0_11 = arith.constant 0 : index
      %c0_12 = arith.constant 0 : index
      %13 = vector.load %arg5[%c0_11, %c0_12] : memref<1x256xf32, #tpu.memory_space<vmem>>, vector<1x256xf32>
      %14 = vector.broadcast %13 : vector<1x256xf32> to vector<16x256xf32>
      %15 = arith.addf %12, %14 : vector<16x256xf32>
      %cst_13 = arith.constant 0.000000e+00 : f32
      %16 = vector.broadcast %cst_13 : f32 to vector<16x256xf32>
      %17 = arith.cmpf oge, %15, %16 : vector<16x256xf32>
      %cst_14 = arith.constant 0.00999999977 : f32
      %18 = vector.broadcast %cst_14 : f32 to vector<16x256xf32>
      %19 = arith.mulf %18, %15 : vector<16x256xf32>
      %20 = arith.select %17, %15, %19 : vector<16x256xi1>, vector<16x256xf32>
      %21 = arith.truncf %20 : vector<16x256xf32> to vector<16x256xbf16>
      %c0_15 = arith.constant 0 : index
      %c0_16 = arith.constant 0 : index
      %22 = vector.load %arg6[%c0_15, %c0_16] : memref<16x256xbf16, #tpu.memory_space<vmem>>, vector<16x256xbf16>
      tpu.vector_store %arg6[%c0_15, %c0_16], %21 {strides = array<i32>} : memref<16x256xbf16, #tpu.memory_space<vmem>>, vector<16x256xbf16>,
      %23 = tpu.iota {dimensions = array<i32: 0>} : vector<16x1xi32>
      %c16_i32 = arith.constant 16 : i32
      %24 = arith.muli %arg1, %c16_i32 : i32
      %25 = vector.broadcast %24 : i32 to vector<16x1xi32>
      %26 = arith.addi %23, %25 : vector<16x1xi32>
      %c2_i32_17 = arith.constant 2 : i32
      %27 = vector.broadcast %c2_i32_17 : i32 to vector<16x1xi32>
      %28 = arith.cmpi slt, %26, %27 : vector<16x1xi32>
      %cst_18 = arith.constant 0.000000e+00 : f32
      %29 = vector.shape_cast %28 : vector<16x1xi1> to vector<16x1xi1>
      %30 = vector.broadcast %29 : vector<16x1xi1> to vector<16x256xi1>
      %31 = vector.broadcast %cst_18 : f32 to vector<16x256xf32>
      %32 = arith.select %30, %20, %31 : vector<16x256xi1>, vector<16x256xf32>
      %cst_19 = arith.constant dense<0.000000e+00> : vector<256xf32>
      %33 = vector.multi_reduction <add>, %32, %cst_19 [0] : vector<16x256xf32> to vector<256xf32>
      %34 = vector.shape_cast %33 : vector<256xf32> to vector<1x256xf32>
      %35 = arith.mulf %32, %32 : vector<16x256xf32>
      %cst_20 = arith.constant dense<0.000000e+00> : vector<256xf32>
      %36 = vector.multi_reduction <add>, %35, %cst_20 [0] : vector<16x256xf32> to vector<256xf32>
      %37 = vector.shape_cast %36 : vector<256xf32> to vector<1x256xf32>
      %cst_21 = arith.constant 0.000000e+00 : f32
      %38 = vector.broadcast %cst_21 : f32 to vector<7x256xf32>
      %39 = tpu.concatenate %34, %38 in 0 : vector<1x256xf32>, vector<7x256xf32> -> vector<8x256xf32>
      %c0_22 = arith.constant 0 : index
      %c0_23 = arith.constant 0 : index
      %40 = vector.load %arg7[%c0_22, %c0_23] : memref<8x256xf32, #tpu.memory_space<vmem>>, vector<8x256xf32>
      tpu.vector_store %arg7[%c0_22, %c0_23], %39 {strides = array<i32>} : memref<8x256xf32, #tpu.memory_space<vmem>>, vector<8x256xf32>,
      %41 = tpu.concatenate %37, %38 in 0 : vector<1x256xf32>, vector<7x256xf32> -> vector<8x256xf32>
      %c0_24 = arith.constant 0 : index
      %c0_25 = arith.constant 0 : index
      %42 = vector.load %arg8[%c0_24, %c0_25] : memref<8x256xf32, #tpu.memory_space<vmem>>, vector<8x256xf32>
      tpu.vector_store %arg8[%c0_24, %c0_25], %41 {strides = array<i32>} : memref<8x256xf32, #tpu.memory_space<vmem>>, vector<8x256xf32>,
    } else {
    }
    return
  }
  func.func @transform_0(%arg0: i32, %arg1: i32, %arg2: i32) -> (i32, i32) {
    %c0_i32 = arith.constant 0 : i32
    return %arg1, %arg2 : i32, i32
  }
  func.func @transform_1(%arg0: i32, %arg1: i32, %arg2: i32) -> (i32, i32) {
    %c0_i32 = arith.constant 0 : i32
    return %arg2, %arg0 : i32, i32
  }
  func.func @transform_2(%arg0: i32, %arg1: i32, %arg2: i32) -> (i32, i32) {
    %c0_i32 = arith.constant 0 : i32
    %c0_i32_0 = arith.constant 0 : i32
    return %c0_i32, %arg0 : i32, i32
  }
  func.func @transform_3(%arg0: i32, %arg1: i32, %arg2: i32) -> (i32, i32) {
    %c0_i32 = arith.constant 0 : i32
    return %arg1, %arg0 : i32, i32
  }
  func.func @transform_4(%arg0: i32, %arg1: i32, %arg2: i32) -> (i32, i32) {
    %c0_i32 = arith.constant 0 : i32
    return %arg1, %arg0 : i32, i32
  }
  func.func @transform_5(%arg0: i32, %arg1: i32, %arg2: i32) -> (i32, i32) {
    %c0_i32 = arith.constant 0 : i32
    return %arg1, %arg0 : i32, i32
  }
}

module attributes {stable_mosaic.version = 11 : i64} {
  func.func @_fc_head_kernel(%arg0: i32, %arg1: memref<16x256xbf16, #tpu.memory_space<vmem>>, %arg2: memref<256x128xbf16, #tpu.memory_space<vmem>>, %arg3: memref<1x128xf32, #tpu.memory_space<vmem>>, %arg4: memref<128x128xbf16, #tpu.memory_space<vmem>>, %arg5: memref<1x128xf32, #tpu.memory_space<vmem>>, %arg6: memref<16x128xf32, #tpu.memory_space<vmem>>) attributes {dimension_semantics = [#tpu.dimension_semantics<arbitrary>], iteration_bounds = array<i64: 1>, scalar_prefetch = 0 : i64, scratch_operands = 0 : i64, tpu.core_type = #tpu.core_type<tc>, window_params = [{pipeline_mode = #tpu.pipeline_mode<synchronous>, transform_indices = @transform_0, window_bounds = array<i64: 16, 256>}, {pipeline_mode = #tpu.pipeline_mode<synchronous>, transform_indices = @transform_1, window_bounds = array<i64: 256, 128>}, {pipeline_mode = #tpu.pipeline_mode<synchronous>, transform_indices = @transform_2, window_bounds = array<i64: 1, 128>}, {pipeline_mode = #tpu.pipeline_mode<synchronous>, transform_indices = @transform_3, window_bounds = array<i64: 128, 128>}, {pipeline_mode = #tpu.pipeline_mode<synchronous>, transform_indices = @transform_4, window_bounds = array<i64: 1, 128>}, {pipeline_mode = #tpu.pipeline_mode<synchronous>, transform_indices = @transform_5, window_bounds = array<i64: 16, 128>}]} {
    %c0 = arith.constant 0 : index
    %c0_0 = arith.constant 0 : index
    %0 = vector.load %arg1[%c0, %c0_0] : memref<16x256xbf16, #tpu.memory_space<vmem>>, vector<16x256xbf16>
    %c0_1 = arith.constant 0 : index
    %c0_2 = arith.constant 0 : index
    %1 = vector.load %arg2[%c0_1, %c0_2] : memref<256x128xbf16, #tpu.memory_space<vmem>>, vector<256x128xbf16>
    %cst = arith.constant dense<0.000000e+00> : vector<16x128xf32>
    %2 = tpu.matmul %0, %1, %cst {dimension_numbers = #tpu.dot_dimension_numbers<[1], [0], [0], [1], [0, 0, 1, 1], [], []>} : vector<16x256xbf16>, vector<256x128xbf16>, vector<16x128xf32> -> vector<16x128xf32>
    %c0_3 = arith.constant 0 : index
    %c0_4 = arith.constant 0 : index
    %3 = vector.load %arg3[%c0_3, %c0_4] : memref<1x128xf32, #tpu.memory_space<vmem>>, vector<1x128xf32>
    %4 = vector.broadcast %3 : vector<1x128xf32> to vector<16x128xf32>
    %5 = arith.addf %2, %4 : vector<16x128xf32>
    %cst_5 = arith.constant 0.000000e+00 : f32
    %6 = vector.broadcast %cst_5 : f32 to vector<16x128xf32>
    %7 = arith.maximumf %5, %6 : vector<16x128xf32>
    %8 = arith.truncf %7 : vector<16x128xf32> to vector<16x128xbf16>
    %c0_6 = arith.constant 0 : index
    %c0_7 = arith.constant 0 : index
    %9 = vector.load %arg4[%c0_6, %c0_7] : memref<128x128xbf16, #tpu.memory_space<vmem>>, vector<128x128xbf16>
    %cst_8 = arith.constant dense<0.000000e+00> : vector<16x128xf32>
    %10 = tpu.matmul %8, %9, %cst_8 {dimension_numbers = #tpu.dot_dimension_numbers<[1], [0], [0], [1], [0, 0, 1, 1], [], []>} : vector<16x128xbf16>, vector<128x128xbf16>, vector<16x128xf32> -> vector<16x128xf32>
    %c0_9 = arith.constant 0 : index
    %c0_10 = arith.constant 0 : index
    %11 = vector.load %arg5[%c0_9, %c0_10] : memref<1x128xf32, #tpu.memory_space<vmem>>, vector<1x128xf32>
    %12 = vector.broadcast %11 : vector<1x128xf32> to vector<16x128xf32>
    %13 = arith.addf %10, %12 : vector<16x128xf32>
    %cst_11 = arith.constant 0.000000e+00 : f32
    %14 = vector.broadcast %cst_11 : f32 to vector<16x128xf32>
    %15 = arith.subf %14, %13 : vector<16x128xf32>
    %16 = math.exp %15 : vector<16x128xf32>
    %cst_12 = arith.constant 1.000000e+00 : f32
    %17 = vector.broadcast %cst_12 : f32 to vector<16x128xf32>
    %18 = arith.addf %17, %16 : vector<16x128xf32>
    %cst_13 = arith.constant 1.000000e+00 : f32
    %19 = vector.broadcast %cst_13 : f32 to vector<16x128xf32>
    %20 = arith.divf %19, %18 : vector<16x128xf32>
    %c0_14 = arith.constant 0 : index
    %c0_15 = arith.constant 0 : index
    %21 = vector.load %arg6[%c0_14, %c0_15] : memref<16x128xf32, #tpu.memory_space<vmem>>, vector<16x128xf32>
    tpu.vector_store %arg6[%c0_14, %c0_15], %20 {strides = array<i32>} : memref<16x128xf32, #tpu.memory_space<vmem>>, vector<16x128xf32>,
    return
  }
  func.func @transform_0(%arg0: i32) -> (i32, i32) {
    %c0_i32 = arith.constant 0 : i32
    %c0_i32_0 = arith.constant 0 : i32
    %c0_i32_1 = arith.constant 0 : i32
    return %c0_i32, %c0_i32_0 : i32, i32
  }
  func.func @transform_1(%arg0: i32) -> (i32, i32) {
    %c0_i32 = arith.constant 0 : i32
    %c0_i32_0 = arith.constant 0 : i32
    %c0_i32_1 = arith.constant 0 : i32
    return %c0_i32, %c0_i32_0 : i32, i32
  }
  func.func @transform_2(%arg0: i32) -> (i32, i32) {
    %c0_i32 = arith.constant 0 : i32
    %c0_i32_0 = arith.constant 0 : i32
    %c0_i32_1 = arith.constant 0 : i32
    return %c0_i32, %c0_i32_0 : i32, i32
  }
  func.func @transform_3(%arg0: i32) -> (i32, i32) {
    %c0_i32 = arith.constant 0 : i32
    %c0_i32_0 = arith.constant 0 : i32
    %c0_i32_1 = arith.constant 0 : i32
    return %c0_i32, %c0_i32_0 : i32, i32
  }
  func.func @transform_4(%arg0: i32) -> (i32, i32) {
    %c0_i32 = arith.constant 0 : i32
    %c0_i32_0 = arith.constant 0 : i32
    %c0_i32_1 = arith.constant 0 : i32
    return %c0_i32, %c0_i32_0 : i32, i32
  }
  func.func @transform_5(%arg0: i32) -> (i32, i32) {
    %c0_i32 = arith.constant 0 : i32
    %c0_i32_0 = arith.constant 0 : i32
    %c0_i32_1 = arith.constant 0 : i32
    return %c0_i32, %c0_i32_0 : i32, i32
  }
}

</mosaic_0001>

<bundles_post_ra>
// kernel: discriminator_forward.7
= control target key start
LH: loop header
LB: loop body
LE: loop exit
PB: predicated region body
PF: predicated region fallthrough
CT: control target
= control target key end

     0   :  { %8 = vsyncpa [#allocation3], 0  ;;  %s1076_s0 = inlined_call_operand.vmem [shape: bf16[16,128], index: 0, kind: input, shape index: {}]   ;;  %s1077_s1 = inlined_call_operand.hbm [shape: bf16[128,1024], index: 1, kind: input, shape index: {}]   ;;  %s1078_s2 = inlined_call_operand.hbm [shape: f32[1,1024], index: 2, kind: input, shape index: {}]   ;;  %s1079_s3 = inlined_call_operand.vmem [shape: bf16[16,1024], index: 3, kind: output, shape index: {}]  }
   0x1   :  { %10 = vsyncpa [#allocation3 + $0x1], 0 }
   0x2   :  { %11 = vsyncpa [#allocation5], 0 }
   0x3   :  { %13 = vsyncpa [#allocation5 + $0x1], 0  ;;  %s914_s12 = smov 0   ;;  %s916_s13 = smov 0  }
   0x4   :  { %s918_s14 = smov 0   ;;  %s920_s15 = smov 0  }
   0x5   :  { %s922_s16 = smov 0   ;;  %s924_s17 = smov 0  }
   0x6 LB: > { %s643_s18 = sadd.s32 4294967295, %s886_s17   ;;  %s38_s19 = sadd.s32 1, %s882_s16  ;;  %s886_s17 = sphi %s924_s17, %s19_s17   ;;  %s882_s16 = sphi %s922_s16, %s1089_s16   ;;  %s878_s15 = sphi %s920_s15, %s1088_s15   ;;  %s874_s14 = sphi %s918_s14, %s1087_s14   ;;  %s870_s13 = sphi %s916_s13, %s1086_s13   ;;  %s866_s12 = sphi %s914_s12, %s1085_s12  }
   0x7   : > { %p40_p0 = scmp.ge.s32.totalorder %s38_s19, 4  ;;  %s75_s20 = sadd.s32 1, %s874_s14 }
   0x8   : > { %p82_p1 = scmp.ne.s32.totalorder %s874_s14, %s870_s13  ;;  %p83_p2 = scmp.eq.s32.totalorder %s886_s17, 0 }
   0x9   : > { %s1091_s19 = smov (%p40_p0, %s38_s19), 0  ;;  %p88_p4 = scmp.ne.s32.totalorder %s870_s13, %s866_s12 }
   0xa   : > { %p950_p3 = por %p83_p2, %p82_p1  ;;  %s71_s22 = ssub.s32 %s882_s16, %s1091_s19 }
   0xb   : > { %p89_p5 = scmp.eq.s32.totalorder %s643_s18, 0  ;;  %p73_p6 = scmp.eq.s32.totalorder %s71_s22, 0 }
   0xc   : > { %p140_p7 = scmp.eq.s32.totalorder %s643_s18, 3  ;;  %p698_p10 = scmp.lt.s32.totalorder %s886_s17, 4 }
   0xd   : > { %p957_p8 = por %p89_p5, %p88_p4  ;;  %s970_s26 = sand.u32 1, %s874_s14  }
   0xe   : > { %s962_s24 = scalar_select %p73_p6, %s874_s14, %s75_s20  }
   0xf   : > { %p964_p9 = por %p140_p7, %p82_p1  ;;  %s682_s27 = sshll.u32 %s882_s16, 7 }
  0x10   : > { %s648_s28 = sshll.u32 %s970_s26, 7  ;;  %s191_s4 = scalar_lea.hbm %s1077_s1, %s682_s27 }
  0x11   : > { %s182_s5 = scalar_lea.vmem [#allocation2], %s648_s28  ;;  %p979_p11 = pnand %p698_p10, %p950_p3 }
  0x12   : > { %s192_s6 = sshll.u32 %s182_s5, 4  ;;  %p654_p12 = scmp.ge.s32.totalorder %s886_s17, 1  ;;  %s193_s6 = int_to_ptr.vmem [resolvable:$true] %s192_s6 }
  0x13   : > { %s179_s8 = scalar_lea.sflag [#allocation3], %s970_s26  ;;  %p778_p13 = pneg %p979_p11 }
  0x14   : > { %s789_s9 = scalar_lea.vmem %s193_s6, 2048  ;;  %s888_s10 = smov [#allocation2]  }
  0x15   : > { %p790_p0 = scmp.ne.s32.totalorder %s193_s6, %s789_s9  ;;  %s794_s11 = sshll.u32 %s888_s10, 4  ;;  %s795_s11 = int_to_ptr.vmem [resolvable:$false] %s794_s11 }
  0x16   : > { %s796_s12 = scalar_lea.vmem %s795_s11, 4096  ;;  %p797_p3 = scmp.lt.s32.totalorder %s193_s6, %s795_s11 }
  0x17   : > { %p792_p1 = pnand %p790_p0, %p778_p13  ;;  %p798_p4 = scmp.lt.s32.totalorder %s796_s12, %s789_s9 }
  0x19   : > { %p793_p2 = pneg %p792_p1  ;;  %p799_p5 = por %p798_p4, %p797_p3 }
  0x1b   : > { %p800_p6 = pnand %p799_p5, %p793_p2 }
  0x1d   : > { %803 = shalt.err (!%p800_p6)
}
  0x1e   : > { %s889_s18 = smov 512   ;;  %s890_s20 = smov 128  }
  0x1f   : > { %s891_s21 = smov 8   ;;  %p219_p7 = scmp.lt.s32.totalorder %s886_s17, 5 }
  0x20   : > { %694 = dma.hbm_to_vmem [thread:$0]  (!%p979_p11), %s191_s4, 2048, %s193_s6, %s179_s8, %s889_s18, %s890_s20, %s891_s21  }
  0x21   : > { %s651_s22 = sshll.u32 %s970_s26, 1  ;;  %s683_s27 = sshll.u32 %s882_s16, 5 }
  0x22   : > { %p997_p10 = pnand %p654_p12, %p219_p7  ;;  %s212_s5 = scalar_lea.hbm %s1078_s2, %s683_s27 }
  0x23   : > { %s206_s9 = scalar_lea.vmem [#allocation4], %s651_s22  ;;  %s203_s11 = scalar_lea.sflag [#allocation5], %s970_s26 }
  0x24   : > { %s214_s10 = sshll.u32 %s206_s9, 4  ;;  %s892_s4 = smov [#allocation4]   ;;  %s215_s10 = int_to_ptr.vmem [resolvable:$true] %s214_s10 }
  0x25   : > { %s817_s12 = scalar_lea.vmem %s215_s10, 32  ;;  %s822_s6 = sshll.u32 %s892_s4, 4  ;;  %s823_s6 = int_to_ptr.vmem [resolvable:$false] %s822_s6 }
  0x26   : > { %p818_p0 = scmp.ne.s32.totalorder %s215_s10, %s817_s12  ;;  %s824_s8 = scalar_lea.vmem %s823_s6, 64 }
  0x27   : > { %p825_p12 = scmp.lt.s32.totalorder %s215_s10, %s823_s6  ;;  %p826_p3 = scmp.lt.s32.totalorder %s824_s8, %s817_s12 }
  0x28   : > { %p820_p1 = pnand %p818_p0, %p778_p13 }
  0x29   : > { %p827_p4 = por %p826_p3, %p825_p12 }
  0x2a   : > { %p821_p2 = pneg %p820_p1 }
  0x2c   : > { %p828_p5 = pnand %p827_p4, %p821_p2 }
  0x2e   : > { %831 = shalt.err (!%p828_p5)
}
  0x2f   : > { %697 = dma.hbm_to_vmem [thread:$0]  (!%p979_p11), %s212_s5, 32, %s215_s10, %s203_s11  }
  0x30   : > { %223 = sbr.rel (%p997_p10) target bundleno = 305 (0x131), region = 32  ;;  %s1013_s26 = sand.u32 (!%p997_p10), 1, %s870_s13  }
  0x31   : > { %s655_s18 = sshll.u32 (!%p997_p10), %s1013_s26, 7  ;;  %s226_s20 = scalar_lea.sflag (!%p997_p10), [#allocation3], %s1013_s26 }
  0x32   : > { %s1017_s21 = scalar_lea.vmem (!%p997_p10), [#allocation2], %s655_s18 }
  0x35   : > { %857 = dma.done.wait (%p957_p8), %s226_s20, 2048  }
  0x36   : > { %859 = vsyncadd (%p957_p8), %s226_s20, 4294965248  ;;  %s656_s7 = sshll.u32 %s1013_s26, 1  ;;  %s235_s22 = scalar_lea.sflag [#allocation5], %s1013_s26 }
  0x37   : > { %s1025_s27 = scalar_lea.vmem [#allocation4], %s656_s7 }
  0x38   : > { %861 = dma.done.wait (%p957_p8), %s235_s22, 32  }
  0x39   : > { %863 = vsyncadd (%p957_p8), %s235_s22, 4294967264  ;;  %v893_v0 = vmov 0   ;;  %v751_v1 = vld [vmem:[%s1017_s21 + $0x74] ss:$8 sps:$4 sm:$0xff]   ;;  %v753_v2 = vld [vmem:[%s1017_s21 + $0x70] ss:$8 sps:$4 sm:$0xff]   ;;  %v308_v18 = vlaneseq }
  0x3a   : > { %436 = vmatprep.mubr.bf16.mxu0 %v893_v0  ;;  %404 = vmatprep.subr.bf16.mxu0 %v751_v1  ;;  %v754_v3 = vld [vmem:[%s1017_s21 + $0x64] ss:$8 sps:$4 sm:$0xff]   ;;  %v756_v4 = vld [vmem:[%s1017_s21 + $0x60] ss:$8 sps:$4 sm:$0xff]   ;;  %v757_v5 = vld [vmem:[%s1017_s21 + $0x54] ss:$8 sps:$4 sm:$0xff]  }
  0x3b   : > { %405 = vmatpush1.bf16.msra.mxu0 %v753_v2  ;;  %v759_v6 = vld [vmem:[%s1017_s21 + $0x50] ss:$8 sps:$4 sm:$0xff]   ;;  %v760_v7 = vld [vmem:[%s1017_s21 + $0x44] ss:$8 sps:$4 sm:$0xff]   ;;  %v762_v8 = vld [vmem:[%s1017_s21 + $0x40] ss:$8 sps:$4 sm:$0xff]  }
  0x3c   : > { %406 = vmatprep.subr.bf16.mxu0 %v754_v3  ;;  %v763_v9 = vld [vmem:[%s1017_s21 + $0x34] ss:$8 sps:$4 sm:$0xff]   ;;  %v765_v10 = vld [vmem:[%s1017_s21 + $0x30] ss:$8 sps:$4 sm:$0xff]   ;;  %v766_v11 = vld [vmem:[%s1017_s21 + $0x24] ss:$8 sps:$4 sm:$0xff]  }
  0x3d   : > { %v768_v12 = vld [vmem:[%s1017_s21 + $0x20] ss:$8 sps:$4 sm:$0xff]   ;;  %v769_v13 = vld [vmem:[%s1017_s21 + $0x14] ss:$8 sps:$4 sm:$0xff]   ;;  %v771_v14 = vld [vmem:[%s1017_s21 + $0x10] ss:$8 sps:$4 sm:$0xff]  }
  0x3e   : > { %v772_v15 = vld [vmem:[%s1017_s21 + $0x4] ss:$8 sps:$4 sm:$0xff]   ;;  %v774_v16 = vld [vmem:[%s1017_s21] ss:$8 sps:$4 sm:$0xff]   ;;  %v309_v19 = vshrl.u32 %v308_v18, 7  ;;  %s657_s29 = sshll.u32 %s1013_s26, 4 }
  0x3f   : > { %407 = vmatpush1.bf16.msra.mxu0 %v756_v4  ;;  %v775_v17 = vld [vmem:[%s1076_s0] sm:$0xff]   ;;  %s272_s30 = scalar_lea.vmem [#allocation6], %s657_s29  ;;  %s686_s5 = sshll.u32 (%p964_p9), %s878_s15, 3 }
  0x40   : > { %408 = vmatprep.subr.bf16.mxu0 %v757_v5  ;;  %v310_v20 = vsub.s32 0, %v309_v19  ;;  %v306_v21 = vld [vmem:[%s1025_s27] sm:$0x3]  ;;  %v314_v22 = vsub.s32 1, %v309_v19  ;;  %s485_s11 = scalar_lea.vmem (%p964_p9), %s1079_s3, %s686_s5 }
  0x42   : > { %v311_v23 = vrot.slane %v306_v21, %v310_v20  ;;  %v315_v24 = vrot.slane %v306_v21, %v314_v22 }
  0x43   : > { %409 = vmatpush1.bf16.msra.mxu0 %v759_v6 }
  0x44   : > { %410 = vmatprep.subr.bf16.mxu0 %v760_v7 }
  0x47   : > { %411 = vmatpush1.bf16.msra.mxu0 %v762_v8 }
  0x48   : > { %412 = vmatprep.subr.bf16.mxu0 %v763_v9 }
  0x4b   : > { %413 = vmatpush1.bf16.msra.mxu0 %v765_v10 }
  0x4c   : > { %414 = vmatprep.subr.bf16.mxu0 %v766_v11 }
  0x4f   : > { %415 = vmatpush1.bf16.msra.mxu0 %v768_v12 }
  0x50   : > { %416 = vmatprep.subr.bf16.mxu0 %v769_v13 }
  0x53   : > { %417 = vmatpush1.bf16.msra.mxu0 %v771_v14 }
  0x54   : > { %418 = vmatprep.subr.bf16.mxu0 %v772_v15 }
  0x57   : > { %419 = vmatpush1.bf16.msra.mxu0 %v774_v16 }
  0x5a   : > { %437 = vmatmul.mubr.bf16.vlgmr.msra.gmra.mxu0 %v775_v17 }
 0x11a   : > { %v438_v25 = vpop.f32.mrf.mxu0 }
 0x11b   : > { %v439_v26 = vadd.f32 %v438_v25, %v311_v23 }
 0x11c   : > { %v440_v27 = vpop.f32.mrf.mxu0 }
 0x11d   : > { %v451_v28 = vmul.f32 0.01, %v439_v26  ;;  %v441_v29 = vadd.f32 %v440_v27, %v315_v24  ;;  %vm447_vm0 = vcmp.ge.f32.partialorder %v439_v26, 0.0 }
 0x11e   : > { %v442_v30 = vpop.f32.mrf.mxu0 }
 0x11f   : > { %vm448_vm1 = vcmp.ge.f32.partialorder %v441_v29, 0.0  ;;  %v452_v31 = vmul.f32 0.01, %v441_v29  ;;  %v443_v32 = vadd.f32 %v442_v30, %v311_v23  ;;  %v455_v34 = vsel %vm447_vm0, %v439_v26, %v451_v28 }
 0x120   : > { %v444_v33 = vpop.f32.mrf.mxu0 }
 0x121   : > { %v456_v35 = vsel %vm448_vm1, %v441_v29, %v452_v31  ;;  %v453_v36 = vmul.f32 0.01, %v443_v32  ;;  %v445_v37 = vadd.f32 %v444_v33, %v315_v24  ;;  %vm449_vm2 = vcmp.ge.f32.partialorder %v443_v32, 0.0 }
 0x122   : > { %v684_v38 = vpack.c.bf16 %v456_v35, %v455_v34 }
 0x123   : > { %vm450_vm3 = vcmp.ge.f32.partialorder %v445_v37, 0.0  ;;  %v454_v39 = vmul.f32 0.01, %v445_v37  ;;  %v457_v40 = vsel %vm449_vm2, %v443_v32, %v453_v36 }
 0x124   : > { %471 = vst [vmem:[%s272_s30] sm:$0xff] %v684_v38  ;;  %479 = sbr.rel (!%p964_p9) target bundleno = 305 (0x131), region = 44 }
 0x125   : > { %v458_v41 = vsel %vm450_vm3, %v445_v37, %v454_v39 }
 0x126   : > { %v685_v42 = vpack.c.bf16 %v458_v41, %v457_v40 }
 0x128   : > { %472 = vst [vmem:[%s272_s30 + $0x8] sm:$0xff] %v685_v42 }
 0x12b   : > { %v516_v43 = vld [vmem:[%s272_s30] sm:$0xff] }
 0x12c   : > { %517 = vst [vmem:[%s485_s11] sm:$0xff] %v516_v43 }
 0x12f   : > { %v518_v44 = vld [vmem:[%s272_s30 + $0x8] sm:$0xff] }
 0x130   : > { %519 = vst [vmem:[%s485_s11 + $0x20] sm:$0xff] %v518_v44 }
 0x131 PF: > { %s19_s17 = sadd.s32 1, %s886_s17   ;;  %s1085_s12 = smov %s870_s13 }
 0x132   : > { %p16_p8 = scmp.ge.s32.totalorder %s19_s17, 6   ;;  %s1086_s13 = smov %s874_s14 }
 0x133   : > { %s1087_s14 = smov %s962_s24  ;;  %s1088_s15 = smov %s882_s16 }
 0x134   : > { %s1089_s16 = smov %s1091_s19  ;;  %18 = sbr.rel (!%p16_p8) target bundleno = 6 (0x6), region = 126 }
 0x139   :  { %535 = vsyncpa [#allocation3], 1 }
 0x13a   :  { %537 = vsyncpa [#allocation3 + $0x1], 1 }
 0x13b   :  { %538 = vsyncpa [#allocation5], 1 }
 0x13c   :  { %540 = vsyncpa [#allocation5 + $0x1], 1 }

// kernel: discriminator_forward.8
= control target key start
LH: loop header
LB: loop body
LE: loop exit
PB: predicated region body
PF: predicated region fallthrough
CT: control target
= control target key end

     0   :  { %s1364_s12 = smov 0   ;;  %s1366_s13 = smov 0   ;;  %s1505_s0 = inlined_call_operand.vmem [shape: bf16[512,128], index: 0, kind: input, shape index: {}]   ;;  %s1506_s1 = inlined_call_operand.vmem [shape: bf16[128,128], index: 1, kind: input, shape index: {}]   ;;  %s1507_s2 = inlined_call_operand.vmem [shape: f32[1,128], index: 2, kind: input, shape index: {}]   ;;  %s1508_s3 = inlined_call_operand.vmem [shape: bf16[512,128], index: 3, kind: output, shape index: {}]  }
   0x1   :  { %s1368_s14 = smov 0  }
   0x2 LB: > { %s28_s15 = sadd.s32 1, %s1338_s13  ;;  %p993_p0 = scmp.ge.s32.totalorder %s1342_s14, 1  ;;  %s1342_s14 = sphi %s1368_s14, %s13_s14   ;;  %s1338_s13 = sphi %s1366_s13, %s1510_s13   ;;  %s1334_s12 = sphi %s1364_s12, %s1509_s12  }
   0x3   : > { %p30_p1 = scmp.ge.s32.totalorder %s28_s15, 2  ;;  %p188_p2 = scmp.lt.s32.totalorder %s1342_s14, 3 }
   0x5   : > { %s1512_s15 = smov (%p30_p1, %s28_s15), 0  ;;  %p189_p3 = pnand %p993_p0, %p188_p2 }
   0x6   : > { %s994_s18 = sshll.u32 (!%p189_p3), %s1334_s12, 5 }
   0x7   : > { %192 = sbr.rel (%p189_p3) target bundleno = 280 (0x118), region = 32  ;;  %p230_p4 = scmp.lt.s32.totalorder (!%p189_p3), %s994_s18, 63 }
   0xc   : > { %v1296_v0 = vld [vmem:[%s1506_s1 + $0x38] sm:$0xff]   ;;  %v1297_v1 = vld [vmem:[%s1506_s1 + $0x30] sm:$0xff]   ;;  %s1514_s18 = smov (!%p230_p4, %s994_s18), 63  ;;  %v1298_v2 = vld [vmem:[%s1506_s1 + $0x28] sm:$0xff]  }
   0xd   : > { %1208 = vmatprep.subr.bf16.mxu0 %v1296_v0  ;;  %1256 = vmatprep.subr.bf16.mxu1 %v1296_v0  ;;  %s995_s23 = sshll.u32 %s1514_s18, 2  ;;  %v1299_v3 = vld [vmem:[%s1506_s1 + $0x20] sm:$0xff]   ;;  %v1300_v6 = vld [vmem:[%s1506_s1 + $0x18] sm:$0xff]   ;;  %v1301_v7 = vld [vmem:[%s1506_s1 + $0x10] sm:$0xff]  }
   0xe   : > { %1209 = vmatpush3.bf16.msra.mxu0 %v1296_v0  ;;  %1264 = vmatpush3.bf16.msra.mxu1 %v1296_v0  ;;  %s1399_s26 = scalar_lea.vmem %s1505_s0, %s995_s23  ;;  %v1302_v8 = vld [vmem:[%s1506_s1 + $0x8] sm:$0xff]   ;;  %v1303_v9 = vld [vmem:[%s1506_s1] sm:$0xff]   ;;  %s1450_s17 = scalar_lea.vmem %s1508_s3, %s995_s23 }
   0xf   : > { %1210 = vmatprep.subr.bf16.mxu0 %v1297_v1  ;;  %1257 = vmatprep.subr.bf16.mxu1 %v1297_v1  ;;  %v1304_v4 = vld [vmem:[%s1399_s26] sm:$0xff]   ;;  %v1306_v10 = vld [vmem:[%s1399_s26 + $0x8] sm:$0xff]   ;;  %v1308_v12 = vld [vmem:[%s1399_s26 + $0x10] sm:$0xff]  }
  0x10   : > { %v1305_v5 = vld [vmem:[%s1399_s26 + $0x40] sm:$0xff]   ;;  %1224 = vmatprep.mubr.bf16.mxu0 %v1304_v4  ;;  %v1307_v11 = vld [vmem:[%s1399_s26 + $0x48] sm:$0xff]   ;;  %v1309_v13 = vld [vmem:[%s1399_s26 + $0x50] sm:$0xff]  }
  0x11   : > { %1240 = vmatprep.mubr.bf16.mxu1 %v1305_v5  ;;  %v1310_v14 = vld [vmem:[%s1399_s26 + $0x18] sm:$0xff]   ;;  %v1312_v16 = vld [vmem:[%s1399_s26 + $0x20] sm:$0xff]   ;;  %v1314_v18 = vld [vmem:[%s1399_s26 + $0x28] sm:$0xff]  }
  0x12   : > { %1211 = vmatpush3.bf16.msra.mxu0 %v1297_v1  ;;  %1265 = vmatpush3.bf16.msra.mxu1 %v1297_v1  ;;  %v1311_v15 = vld [vmem:[%s1399_s26 + $0x58] sm:$0xff]   ;;  %v1313_v17 = vld [vmem:[%s1399_s26 + $0x60] sm:$0xff]   ;;  %v1315_v19 = vld [vmem:[%s1399_s26 + $0x68] sm:$0xff]  }
  0x13   : > { %1212 = vmatprep.subr.bf16.mxu0 %v1298_v2  ;;  %1258 = vmatprep.subr.bf16.mxu1 %v1298_v2  ;;  %v1316_v20 = vld [vmem:[%s1399_s26 + $0x30] sm:$0xff]   ;;  %v1318_v22 = vld [vmem:[%s1399_s26 + $0x38] sm:$0xff]   ;;  %v1435_v24 = vld [vmem:[%s1507_s2] ss:$0 sm:$0xff] }
  0x14   : > { %v1317_v21 = vld [vmem:[%s1399_s26 + $0x70] sm:$0xff]   ;;  %v1319_v23 = vld [vmem:[%s1399_s26 + $0x78] sm:$0xff]  }
  0x16   : > { %1213 = vmatpush3.bf16.msra.mxu0 %v1298_v2  ;;  %1266 = vmatpush3.bf16.msra.mxu1 %v1298_v2 }
  0x17   : > { %1214 = vmatprep.subr.bf16.mxu0 %v1299_v3  ;;  %1259 = vmatprep.subr.bf16.mxu1 %v1299_v3 }
  0x1a   : > { %1215 = vmatpush3.bf16.msra.mxu0 %v1299_v3  ;;  %1267 = vmatpush3.bf16.msra.mxu1 %v1299_v3 }
  0x1b   : > { %1216 = vmatprep.subr.bf16.mxu0 %v1300_v6  ;;  %1260 = vmatprep.subr.bf16.mxu1 %v1300_v6 }
  0x1e   : > { %1217 = vmatpush3.bf16.msra.mxu0 %v1300_v6  ;;  %1268 = vmatpush3.bf16.msra.mxu1 %v1300_v6 }
  0x1f   : > { %1218 = vmatprep.subr.bf16.mxu0 %v1301_v7  ;;  %1261 = vmatprep.subr.bf16.mxu1 %v1301_v7 }
  0x22   : > { %1219 = vmatpush3.bf16.msra.mxu0 %v1301_v7  ;;  %1269 = vmatpush3.bf16.msra.mxu1 %v1301_v7 }
  0x23   : > { %1220 = vmatprep.subr.bf16.mxu0 %v1302_v8  ;;  %1262 = vmatprep.subr.bf16.mxu1 %v1302_v8 }
  0x26   : > { %1221 = vmatpush3.bf16.msra.mxu0 %v1302_v8  ;;  %1270 = vmatpush3.bf16.msra.mxu1 %v1302_v8 }
  0x27   : > { %1222 = vmatprep.subr.bf16.mxu0 %v1303_v9  ;;  %1263 = vmatprep.subr.bf16.mxu1 %v1303_v9 }
  0x2a   : > { %1223 = vmatpush3.bf16.msra.mxu0 %v1303_v9  ;;  %1271 = vmatpush3.bf16.msra.mxu1 %v1303_v9 }
  0x2d   : > { %1225 = vmatmul.mubr.bf16.vlgmr.msra.gmra.mxu0 %v1306_v10  ;;  %1241 = vmatmul.mubr.bf16.vlgmr.msra.gmra.mxu1 %v1307_v11 }
  0x2e   : > { %1228 = vmatprep.mubr.bf16.mxu0 %v1308_v12  ;;  %1244 = vmatprep.mubr.bf16.mxu1 %v1309_v13 }
  0x35   : > { %1229 = vmatmul.mubr.bf16.gmra.mxu0 %v1310_v14  ;;  %1245 = vmatmul.mubr.bf16.gmra.mxu1 %v1311_v15 }
  0x36   : > { %1232 = vmatprep.mubr.bf16.mxu0 %v1312_v16  ;;  %1248 = vmatprep.mubr.bf16.mxu1 %v1313_v17 }
  0x3d   : > { %1233 = vmatmul.mubr.bf16.gmra.mxu0 %v1314_v18  ;;  %1249 = vmatmul.mubr.bf16.gmra.mxu1 %v1315_v19 }
  0x3e   : > { %1236 = vmatprep.mubr.bf16.mxu0 %v1316_v20  ;;  %1252 = vmatprep.mubr.bf16.mxu1 %v1317_v21 }
  0x45   : > { %1237 = vmatmul.mubr.bf16.gmra.mxu0 %v1318_v22  ;;  %1253 = vmatmul.mubr.bf16.gmra.mxu1 %v1319_v23 }
  0xed   : > { %v1226_v25 = vpop.f32.mrf.mxu0  ;;  %v1242_v26 = vpop.f32.mrf.mxu1 }
  0xee   : > { %v502_v27 = vadd.f32 %v1226_v25, %v1435_v24  ;;  %v566_v28 = vadd.f32 %v1242_v26, %v1435_v24 }
  0xef   : > { %v493_v29 = vpop.f32.mrf.mxu0  ;;  %v557_v30 = vpop.f32.mrf.mxu1 }
  0xf0   : > { %vm622_vm0 = vcmp.ge.f32.partialorder %v502_v27, 0.0  ;;  %v654_v31 = vmul.f32 0.01, %v502_v27  ;;  %vm638_vm1 = vcmp.ge.f32.partialorder %v566_v28, 0.0  ;;  %v670_v32 = vmul.f32 0.01, %v566_v28 }
  0xf1   : > { %v494_v33 = vadd.f32 %v1435_v24, %v493_v29  ;;  %v558_v34 = vadd.f32 %v1435_v24, %v557_v30  ;;  %v1227_v35 = vpop.f32.mrf.mxu0  ;;  %v1243_v36 = vpop.f32.mrf.mxu1 }
  0xf2   : > { %v686_v37 = vsel %vm622_vm0, %v502_v27, %v654_v31  ;;  %v505_v38 = vadd.f32 %v1227_v35, %v1435_v24  ;;  %v569_v39 = vadd.f32 %v1243_v36, %v1435_v24  ;;  %v702_v40 = vsel %vm638_vm1, %v566_v28, %v670_v32 }
  0xf3   : > { %vm620_vm2 = vcmp.ge.f32.partialorder %v494_v33, 0.0  ;;  %v652_v41 = vmul.f32 0.01, %v494_v33  ;;  %vm636_vm3 = vcmp.ge.f32.partialorder %v558_v34, 0.0  ;;  %v496_v42 = vpop.f32.mrf.mxu0  ;;  %v560_v43 = vpop.f32.mrf.mxu1  ;;  %v668_v47 = vmul.f32 0.01, %v558_v34 }
  0xf4   : > { %vm623_vm4 = vcmp.ge.f32.partialorder %v505_v38, 0.0  ;;  %v655_v44 = vmul.f32 0.01, %v505_v38  ;;  %vm639_vm5 = vcmp.ge.f32.partialorder %v569_v39, 0.0  ;;  %v671_v45 = vmul.f32 0.01, %v569_v39 }
  0xf5   : > { %v684_v46 = vsel %vm620_vm2, %v494_v33, %v652_v41  ;;  %v497_v48 = vadd.f32 %v1435_v24, %v496_v42  ;;  %v561_v49 = vadd.f32 %v1435_v24, %v560_v43  ;;  %v1230_v50 = vpop.f32.mrf.mxu0  ;;  %v1246_v51 = vpop.f32.mrf.mxu1  ;;  %v700_v63 = vsel %vm636_vm3, %v558_v34, %v668_v47 }
  0xf6   : > { %v687_v52 = vsel %vm623_vm4, %v505_v38, %v655_v44  ;;  %v703_v53 = vsel %vm639_vm5, %v569_v39, %v671_v45  ;;  %v518_v54 = vadd.f32 %v1230_v50, %v1435_v24  ;;  %v582_v55 = vadd.f32 %v1246_v51, %v1435_v24 }
  0xf7   : > { %v1097_v56 = vpack.c.bf16 %v687_v52, %v686_v37  ;;  %v1137_v57 = vpack.c.bf16 %v703_v53, %v702_v40  ;;  %vm621_vm6 = vcmp.ge.f32.partialorder %v497_v48, 0.0  ;;  %v653_v58 = vmul.f32 0.01, %v497_v48  ;;  %v509_v59 = vpop.f32.mrf.mxu0  ;;  %v573_v60 = vpop.f32.mrf.mxu1 }
  0xf8   : > { %vm637_vm7 = vcmp.ge.f32.partialorder %v561_v49, 0.0  ;;  %v669_v61 = vmul.f32 0.01, %v561_v49  ;;  %vm626_vm8 = vcmp.ge.f32.partialorder %v518_v54, 0.0  ;;  %v658_v62 = vmul.f32 0.01, %v518_v54 }
  0xf9   : > { %1169 = vst [vmem:[%s1450_s17 + $0x8] sm:$0xff] %v1097_v56   ;;  %1177 = vst [vmem:[%s1450_s17 + $0x48] sm:$0xff] %v1137_v57   ;;  %v685_v0 = vsel %vm621_vm6, %v497_v48, %v653_v58  ;;  %v674_v1 = vmul.f32 0.01, %v582_v55  ;;  %v510_v2 = vadd.f32 %v1435_v24, %v509_v59  ;;  %v1231_v3 = vpop.f32.mrf.mxu0  ;;  %v1247_v4 = vpop.f32.mrf.mxu1  ;;  %vm642_vm9 = vcmp.ge.f32.partialorder %v582_v55, 0.0 }
  0xfa   : > { %v1092_v5 = vpack.c.bf16 %v685_v0, %v684_v46  ;;  %v701_v6 = vsel %vm637_vm7, %v561_v49, %v669_v61  ;;  %v574_v7 = vadd.f32 %v1435_v24, %v573_v60  ;;  %v690_v9 = vsel %vm626_vm8, %v518_v54, %v658_v62 }
  0xfb   : > { %v1132_v8 = vpack.c.bf16 %v701_v6, %v700_v63  ;;  %vm624_vm10 = vcmp.ge.f32.partialorder %v510_v2, 0.0  ;;  %v656_v10 = vmul.f32 0.01, %v510_v2  ;;  %v512_v11 = vpop.f32.mrf.mxu0  ;;  %v576_v12 = vpop.f32.mrf.mxu1  ;;  %v521_v14 = vadd.f32 %v1231_v3, %v1435_v24 }
  0xfc   : > { %1093 = vst [vmem:[%s1450_s17] sm:$0xff] %v1092_v5   ;;  %vm640_vm11 = vcmp.ge.f32.partialorder %v574_v7, 0.0  ;;  %v672_v13 = vmul.f32 0.01, %v574_v7  ;;  %v585_v15 = vadd.f32 %v1247_v4, %v1435_v24  ;;  %v706_v16 = vsel %vm642_vm9, %v582_v55, %v674_v1 }
  0xfd   : > { %1176 = vst [vmem:[%s1450_s17 + $0x40] sm:$0xff] %v1132_v8   ;;  %v688_v17 = vsel %vm624_vm10, %v510_v2, %v656_v10  ;;  %v513_v18 = vadd.f32 %v1435_v24, %v512_v11  ;;  %v577_v19 = vadd.f32 %v1435_v24, %v576_v12  ;;  %v1234_v20 = vpop.f32.mrf.mxu0  ;;  %v1250_v21 = vpop.f32.mrf.mxu1  ;;  %vm627_vm12 = vcmp.ge.f32.partialorder %v521_v14, 0.0 }
  0xfe   : > { %v704_v22 = vsel %vm640_vm11, %v574_v7, %v672_v13  ;;  %v659_v23 = vmul.f32 0.01, %v521_v14  ;;  %vm643_vm13 = vcmp.ge.f32.partialorder %v585_v15, 0.0  ;;  %v675_v25 = vmul.f32 0.01, %v585_v15 }
  0xff   : > { %vm625_vm14 = vcmp.ge.f32.partialorder %v513_v18, 0.0  ;;  %v657_v26 = vmul.f32 0.01, %v513_v18  ;;  %vm641_vm15 = vcmp.ge.f32.partialorder %v577_v19, 0.0  ;;  %v525_v27 = vpop.f32.mrf.mxu0  ;;  %v589_v28 = vpop.f32.mrf.mxu1  ;;  %v673_v30 = vmul.f32 0.01, %v577_v19 }
 0x100   : > { %v691_v29 = vsel %vm627_vm12, %v521_v14, %v659_v23  ;;  %v534_v31 = vadd.f32 %v1234_v20, %v1435_v24  ;;  %v598_v32 = vadd.f32 %v1250_v21, %v1435_v24  ;;  %v707_v34 = vsel %vm643_vm13, %v585_v15, %v675_v25 }
 0x101   : > { %v1107_v33 = vpack.c.bf16 %v691_v29, %v690_v9  ;;  %v689_v35 = vsel %vm625_vm14, %v513_v18, %v657_v26  ;;  %v526_v36 = vadd.f32 %v1435_v24, %v525_v27  ;;  %v1235_v37 = vpop.f32.mrf.mxu0  ;;  %v1251_v38 = vpop.f32.mrf.mxu1  ;;  %v1147_v39 = vpack.c.bf16 %v707_v34, %v706_v16 }
 0x102   : > { %v1102_v40 = vpack.c.bf16 %v689_v35, %v688_v17  ;;  %v705_v41 = vsel %vm641_vm15, %v577_v19, %v673_v30  ;;  %vm630_vm0 = vcmp.ge.f32.partialorder %v534_v31, 0.0  ;;  %v662_v43 = vmul.f32 0.01, %v534_v31 }
 0x103   : > { %1171 = vst [vmem:[%s1450_s17 + $0x18] sm:$0xff] %v1107_v33   ;;  %v1142_v42 = vpack.c.bf16 %v705_v41, %v704_v22  ;;  %vm646_vm1 = vcmp.ge.f32.partialorder %v598_v32, 0.0  ;;  %v678_v44 = vmul.f32 0.01, %v598_v32  ;;  %v528_v45 = vpop.f32.mrf.mxu0  ;;  %v592_v46 = vpop.f32.mrf.mxu1  ;;  %1179 = vst [vmem:[%s1450_s17 + $0x58] sm:$0xff] %v1147_v39   ;;  %vm628_vm2 = vcmp.ge.f32.partialorder %v526_v36, 0.0 }
 0x104   : > { %1170 = vst [vmem:[%s1450_s17 + $0x10] sm:$0xff] %v1102_v40   ;;  %v660_v47 = vmul.f32 0.01, %v526_v36  ;;  %v590_v48 = vadd.f32 %v1435_v24, %v589_v28  ;;  %v537_v49 = vadd.f32 %v1235_v37, %v1435_v24  ;;  %v694_v50 = vsel %vm630_vm0, %v534_v31, %v662_v43 }
 0x105   : > { %1178 = vst [vmem:[%s1450_s17 + $0x50] sm:$0xff] %v1142_v42   ;;  %v601_v51 = vadd.f32 %v1251_v38, %v1435_v24  ;;  %v529_v52 = vadd.f32 %v1435_v24, %v528_v45  ;;  %v1238_v53 = vpop.f32.mrf.mxu0  ;;  %v1254_v54 = vpop.f32.mrf.mxu1  ;;  %v710_v55 = vsel %vm646_vm1, %v598_v32, %v678_v44  ;;  %v593_v63 = vadd.f32 %v1435_v24, %v592_v46 }
 0x106   : > { %v692_v56 = vsel %vm628_vm2, %v526_v36, %v660_v47  ;;  %vm644_vm3 = vcmp.ge.f32.partialorder %v590_v48, 0.0  ;;  %vm631_vm4 = vcmp.ge.f32.partialorder %v537_v49, 0.0  ;;  %v663_v57 = vmul.f32 0.01, %v537_v49 }
 0x107   : > { %vm647_vm5 = vcmp.ge.f32.partialorder %v601_v51, 0.0  ;;  %v679_v58 = vmul.f32 0.01, %v601_v51  ;;  %vm629_vm6 = vcmp.ge.f32.partialorder %v529_v52, 0.0  ;;  %v541_v59 = vpop.f32.mrf.mxu0  ;;  %v605_v60 = vpop.f32.mrf.mxu1  ;;  %v676_v61 = vmul.f32 0.01, %v590_v48 }
 0x108   : > { %v661_v62 = vmul.f32 0.01, %v529_v52  ;;  %v550_v0 = vadd.f32 %v1238_v53, %v1435_v24  ;;  %v695_v1 = vsel %vm631_vm4, %v537_v49, %v663_v57  ;;  %v614_v3 = vadd.f32 %v1254_v54, %v1435_v24 }
 0x109   : > { %v711_v2 = vsel %vm647_vm5, %v601_v51, %v679_v58  ;;  %v542_v4 = vadd.f32 %v1435_v24, %v541_v59  ;;  %v1239_v5 = vpop.f32.mrf.mxu0  ;;  %v1255_v6 = vpop.f32.mrf.mxu1  ;;  %v1117_v7 = vpack.c.bf16 %v695_v1, %v694_v50  ;;  %vm645_vm7 = vcmp.ge.f32.partialorder %v593_v63, 0.0 }
 0x10a   : > { %v1157_v8 = vpack.c.bf16 %v711_v2, %v710_v55  ;;  %v693_v9 = vsel %vm629_vm6, %v529_v52, %v661_v62  ;;  %v677_v11 = vmul.f32 0.01, %v593_v63  ;;  %v666_v12 = vmul.f32 0.01, %v550_v0 }
 0x10b   : > { %v1112_v10 = vpack.c.bf16 %v693_v9, %v692_v56  ;;  %v708_v13 = vsel %vm644_vm3, %v590_v48, %v676_v61  ;;  %1173 = vst [vmem:[%s1450_s17 + $0x28] sm:$0xff] %v1117_v7   ;;  %vm634_vm8 = vcmp.ge.f32.partialorder %v550_v0, 0.0  ;;  %v682_v15 = vmul.f32 0.01, %v614_v3  ;;  %v544_v18 = vpop.f32.mrf.mxu0  ;;  %v608_v19 = vpop.f32.mrf.mxu1 }
 0x10c   : > { %1181 = vst [vmem:[%s1450_s17 + $0x68] sm:$0xff] %v1157_v8   ;;  %v709_v14 = vsel %vm645_vm7, %v593_v63, %v677_v11  ;;  %v606_v16 = vadd.f32 %v1435_v24, %v605_v60  ;;  %v553_v17 = vadd.f32 %v1239_v5, %v1435_v24  ;;  %vm650_vm9 = vcmp.ge.f32.partialorder %v614_v3, 0.0 }
 0x10d   : > { %1172 = vst [vmem:[%s1450_s17 + $0x20] sm:$0xff] %v1112_v10   ;;  %v1152_v20 = vpack.c.bf16 %v709_v14, %v708_v13  ;;  %vm632_vm10 = vcmp.ge.f32.partialorder %v542_v4, 0.0  ;;  %v617_v21 = vadd.f32 %v1255_v6, %v1435_v24  ;;  %v698_v22 = vsel %vm634_vm8, %v550_v0, %v666_v12 }
 0x10e   : > { %v664_v23 = vmul.f32 0.01, %v542_v4  ;;  %vm635_vm11 = vcmp.ge.f32.partialorder %v553_v17, 0.0  ;;  %v667_v25 = vmul.f32 0.01, %v553_v17  ;;  %v545_v27 = vadd.f32 %v1435_v24, %v544_v18 }
 0x10f   : > { %1180 = vst [vmem:[%s1450_s17 + $0x60] sm:$0xff] %v1152_v20   ;;  %vm651_vm12 = vcmp.ge.f32.partialorder %v617_v21, 0.0  ;;  %v683_v26 = vmul.f32 0.01, %v617_v21  ;;  %v609_v28 = vadd.f32 %v1435_v24, %v608_v19  ;;  %v714_v29 = vsel %vm650_vm9, %v614_v3, %v682_v15 }
 0x110   : > { %vm648_vm13 = vcmp.ge.f32.partialorder %v606_v16, 0.0  ;;  %v680_v30 = vmul.f32 0.01, %v606_v16  ;;  %v699_v31 = vsel %vm635_vm11, %v553_v17, %v667_v25  ;;  %vm633_vm14 = vcmp.ge.f32.partialorder %v545_v27, 0.0 }
 0x111   : > { %v1127_v32 = vpack.c.bf16 %v699_v31, %v698_v22  ;;  %v715_v33 = vsel %vm651_vm12, %v617_v21, %v683_v26  ;;  %v665_v34 = vmul.f32 0.01, %v545_v27  ;;  %vm649_vm15 = vcmp.ge.f32.partialorder %v609_v28, 0.0 }
 0x112   : > { %v1167_v35 = vpack.c.bf16 %v715_v33, %v714_v29  ;;  %v681_v36 = vmul.f32 0.01, %v609_v28  ;;  %v696_v37 = vsel %vm632_vm10, %v542_v4, %v664_v23  ;;  %v712_v39 = vsel %vm648_vm13, %v606_v16, %v680_v30 }
 0x113   : > { %1175 = vst [vmem:[%s1450_s17 + $0x38] sm:$0xff] %v1127_v32   ;;  %v697_v38 = vsel %vm633_vm14, %v545_v27, %v665_v34 }
 0x114   : > { %1183 = vst [vmem:[%s1450_s17 + $0x78] sm:$0xff] %v1167_v35   ;;  %v1122_v24 = vpack.c.bf16 %v697_v38, %v696_v37  ;;  %v713_v40 = vsel %vm649_vm15, %v609_v28, %v681_v36 }
 0x115   : > { %v1162_v41 = vpack.c.bf16 %v713_v40, %v712_v39 }
 0x116   : > { %1174 = vst [vmem:[%s1450_s17 + $0x30] sm:$0xff] %v1122_v24  }
 0x117   : > { %1182 = vst [vmem:[%s1450_s17 + $0x70] sm:$0xff] %v1162_v41  }
 0x118 PF: > { %s13_s14 = sadd.s32 1, %s1342_s14   ;;  %s1509_s12 = smov %s1338_s13 }
 0x119   : > { %p10_p5 = scmp.ge.s32.totalorder %s13_s14, 4   ;;  %s1510_s13 = smov %s1512_s15 }
 0x11b   :  { %12 = sbr.rel (!%p10_p5) target bundleno = 2 (0x2), region = 68 }

// kernel: tile.18
= control target key start
LH: loop header
LB: loop body
LE: loop exit
PB: predicated region body
PF: predicated region fallthrough
CT: control target
= control target key end

     0   :  { %s28_s0 = inlined_call_operand.vmem [shape: f32[32], index: 0, kind: input, shape index: {}]   ;;  %s29_s1 = inlined_call_operand.vmem [shape: f32[9,32], index: 1, kind: output, shape index: {}]  }
   0x1   :  { %v4_v0 = vld [vmem:[%s28_s0] ss:$0 sm:$0xff] }
   0x2   :  { %5 = vst [vmem:[%s29_s1] sm:$0xff] %v4_v0  ;;  %8 = vst [vmem:[%s29_s1 + $0x8] sm:$0xff] %v4_v0 }

// kernel: tile.19
= control target key start
LH: loop header
LB: loop body
LE: loop exit
PB: predicated region body
PF: predicated region fallthrough
CT: control target
= control target key end

     0   :  { %s6_s6 = smov 3  ;;  %s13_s11 = smov 3  ;;  %vm3_vm0 = vcmask 261120   ;;  %vm10_vm1 = vcmask 1048320   ;;  %vm17_vm2 = vcmask 785920   ;;  %vm24_vm3 = vcmask 523520   ;;  %s68_s0 = inlined_call_operand.vmem [shape: f32[9,32], index: 0, kind: input, shape index: {}]   ;;  %s69_s1 = inlined_call_operand.vmem [shape: f32[288], index: 1, kind: output, shape index: {}]  }
   0x1   :  { %v2_v0 = vld [vmem:[%s68_s0] ss:$4 sm:$0x7]   ;;  %v34_v1 = vld [vmem:[%s68_s0 + $0x3] ss:$4 sm:%s6_s6]   ;;  %s40_s12 = smov 96  }
   0x2   :  { %8 = vrot.lane.b32.xlu0 %v34_v1, %s40_s12  ;;  %s20_s13 = smov 3  ;;  %4 = vst.msk [vmem:[#allocation0] sm:$0x7] %vm3_vm0, %v2_v0   ;;  %v35_v2 = vld [vmem:[%s68_s0 + $0x2] ss:$4 sm:%s13_s11]   ;;  %s42_s18 = smov 64  }
   0x3   :  { %v36_v3 = vld [vmem:[%s68_s0 + $0x1] ss:$4 sm:%s20_s13]   ;;  %s41_s0 = smov 32  }
   0x4   :  { %22 = vrot.lane.b32.xlu1 %v36_v3, %s41_s0 }
   0x6   :  { %15 = vrot.lane.b32.xlu0 %v35_v2, %s42_s18 }
  0x74   :  { %v9_v4 = vpop.permute.xlu0 %8  }
  0x75   :  { %11 = vst.msk [vmem:[#allocation0] sm:$0x3] %vm10_vm1, %v9_v4  }
  0x76   :  { %v23_v5 = vpop.permute.xlu1 %22  }
  0x78   :  { %v16_v6 = vpop.permute.xlu0 %15  }
  0x79   :  { %18 = vst.msk [vmem:[#allocation0] sm:$0x3] %vm17_vm2, %v16_v6  }
  0x7a   :  { %25 = vst.msk [vmem:[#allocation0] sm:$0x3] %vm24_vm3, %v23_v5  }
  0x81   :  { %v30_v7 = vld [vmem:[#allocation0] sm:$0xf] }
  0x82   :  { %33 = vst [vmem:[%s69_s1] sm:$0xf] %v30_v7 }

// kernel: discriminator_forward.9
= control target key start
LH: loop header
LB: loop body
LE: loop exit
PB: predicated region body
PF: predicated region fallthrough
CT: control target
= control target key end

     0   :  { %s984_s1 = inlined_call_operand.vmem [shape: bf16[256,128], index: 1, kind: input, shape index: {}]   ;;  %s985_s0 = inlined_call_operand.vmem [shape: bf16[128,256], index: 0, kind: input, shape index: {}]   ;;  %s986_s2 = inlined_call_operand.vmem [shape: f32[1,128], index: 2, kind: input, shape index: {}]   ;;  %s987_s3 = inlined_call_operand.vmem [shape: bf16[128,128], index: 3, kind: output, shape index: {0}]   ;;  %s988_s4 = inlined_call_operand.vmem [shape: f32[8,128], index: 4, kind: output, shape index: {1}]   ;;  %s989_s5 = inlined_call_operand.vmem [shape: f32[8,128], index: 5, kind: output, shape index: {2}]  }
   0x1   :  { %v741_v0 = vld [vmem:[%s984_s1 + $0x78] sm:$0xff]   ;;  %v743_v2 = vld [vmem:[%s984_s1 + $0x70] sm:$0xff]   ;;  %v745_v4 = vld [vmem:[%s984_s1 + $0x68] sm:$0xff]  }
   0x2   :  { %v742_v1 = vld [vmem:[%s984_s1 + $0x38] sm:$0xff]   ;;  %661 = vmatprep.subr.bf16.mxu0 %v741_v0  ;;  %725 = vmatprep.subr.bf16.mxu1 %v741_v0  ;;  %v744_v3 = vld [vmem:[%s984_s1 + $0x30] sm:$0xff]   ;;  %v746_v5 = vld [vmem:[%s984_s1 + $0x28] sm:$0xff]  }
   0x3   :  { %662 = vmatpush3.bf16.msra.mxu0 %v742_v1  ;;  %733 = vmatpush3.bf16.msra.mxu1 %v742_v1  ;;  %v747_v6 = vld [vmem:[%s984_s1 + $0x60] sm:$0xff]   ;;  %v749_v8 = vld [vmem:[%s984_s1 + $0x58] sm:$0xff]   ;;  %v751_v10 = vld [vmem:[%s984_s1 + $0x50] sm:$0xff]  }
   0x4   :  { %663 = vmatprep.subr.bf16.mxu0 %v743_v2  ;;  %726 = vmatprep.subr.bf16.mxu1 %v743_v2  ;;  %v748_v7 = vld [vmem:[%s984_s1 + $0x20] sm:$0xff]   ;;  %v750_v9 = vld [vmem:[%s984_s1 + $0x18] sm:$0xff]   ;;  %v752_v12 = vld [vmem:[%s984_s1 + $0x10] sm:$0xff]  }
   0x5   :  { %v759_v11 = vld [vmem:[%s985_s0 + $0x4] ss:$8 sps:$4 sm:$0xff]   ;;  %v757_v18 = vld [vmem:[%s985_s0] ss:$8 sps:$4 sm:$0xff]   ;;  %v760_v20 = vld [vmem:[%s985_s0 + $0x14] ss:$8 sps:$4 sm:$0xff]  }
   0x6   :  { %v764_v13 = vld [vmem:[%s985_s0 + $0x44] ss:$8 sps:$4 sm:$0xff]   ;;  %281 = vmatprep.mubr.bf16.mxu0 %v759_v11  ;;  %v762_v19 = vld [vmem:[%s985_s0 + $0x40] ss:$8 sps:$4 sm:$0xff]   ;;  %v768_v21 = vld [vmem:[%s985_s0 + $0x54] ss:$8 sps:$4 sm:$0xff]  }
   0x7   :  { %664 = vmatpush3.bf16.msra.mxu0 %v744_v3  ;;  %734 = vmatpush3.bf16.msra.mxu1 %v744_v3  ;;  %v753_v14 = vld [vmem:[%s984_s1 + $0x48] sm:$0xff]   ;;  %v755_v16 = vld [vmem:[%s984_s1 + $0x40] sm:$0xff]   ;;  %v765_v22 = vld [vmem:[%s985_s0 + $0x10] ss:$8 sps:$4 sm:$0xff]  }
   0x8   :  { %665 = vmatprep.subr.bf16.mxu0 %v745_v4  ;;  %727 = vmatprep.subr.bf16.mxu1 %v745_v4  ;;  %v754_v15 = vld [vmem:[%s984_s1 + $0x8] sm:$0xff]   ;;  %v756_v17 = vld [vmem:[%s984_s1] sm:$0xff]   ;;  %v771_v23 = vld [vmem:[%s985_s0 + $0x50] ss:$8 sps:$4 sm:$0xff]  }
   0x9   :  { %313 = vmatprep.mubr.bf16.mxu1 %v764_v13  ;;  %v766_v24 = vld [vmem:[%s985_s0 + $0x24] ss:$8 sps:$4 sm:$0xff]   ;;  %v770_v26 = vld [vmem:[%s985_s0 + $0x20] ss:$8 sps:$4 sm:$0xff]   ;;  %v772_v28 = vld [vmem:[%s985_s0 + $0x34] ss:$8 sps:$4 sm:$0xff]  }
   0xa   :  { %v774_v25 = vld [vmem:[%s985_s0 + $0x64] ss:$8 sps:$4 sm:$0xff]   ;;  %v777_v27 = vld [vmem:[%s985_s0 + $0x60] ss:$8 sps:$4 sm:$0xff]   ;;  %v778_v29 = vld [vmem:[%s985_s0 + $0x74] ss:$8 sps:$4 sm:$0xff]  }
   0xb   :  { %666 = vmatpush3.bf16.msra.mxu0 %v746_v5  ;;  %735 = vmatpush3.bf16.msra.mxu1 %v746_v5  ;;  %v776_v30 = vld [vmem:[%s985_s0 + $0x30] ss:$8 sps:$4 sm:$0xff]   ;;  %v910_v34 = vld [vmem:[%s986_s2] ss:$0 sm:$0xff] }
   0xc   :  { %667 = vmatprep.subr.bf16.mxu0 %v747_v6  ;;  %728 = vmatprep.subr.bf16.mxu1 %v747_v6  ;;  %v780_v31 = vld [vmem:[%s985_s0 + $0x70] ss:$8 sps:$4 sm:$0xff]  }
   0xf   :  { %668 = vmatpush3.bf16.msra.mxu0 %v748_v7  ;;  %736 = vmatpush3.bf16.msra.mxu1 %v748_v7 }
  0x10   :  { %669 = vmatprep.subr.bf16.mxu0 %v749_v8  ;;  %729 = vmatprep.subr.bf16.mxu1 %v749_v8 }
  0x13   :  { %670 = vmatpush3.bf16.msra.mxu0 %v750_v9  ;;  %737 = vmatpush3.bf16.msra.mxu1 %v750_v9 }
  0x14   :  { %671 = vmatprep.subr.bf16.mxu0 %v751_v10  ;;  %730 = vmatprep.subr.bf16.mxu1 %v751_v10 }
  0x17   :  { %672 = vmatpush3.bf16.msra.mxu0 %v752_v12  ;;  %738 = vmatpush3.bf16.msra.mxu1 %v752_v12 }
  0x18   :  { %673 = vmatprep.subr.bf16.mxu0 %v753_v14  ;;  %731 = vmatprep.subr.bf16.mxu1 %v753_v14 }
  0x1b   :  { %674 = vmatpush3.bf16.msra.mxu0 %v754_v15  ;;  %739 = vmatpush3.bf16.msra.mxu1 %v754_v15 }
  0x1c   :  { %675 = vmatprep.subr.bf16.mxu0 %v755_v16  ;;  %732 = vmatprep.subr.bf16.mxu1 %v755_v16 }
  0x1f   :  { %676 = vmatpush3.bf16.msra.mxu0 %v756_v17  ;;  %740 = vmatpush3.bf16.msra.mxu1 %v756_v17 }
  0x22   :  { %282 = vmatmul.mubr.bf16.vlgmr.msra.gmra.mxu0 %v757_v18  ;;  %314 = vmatmul.mubr.bf16.vlgmr.msra.gmra.mxu1 %v762_v19 }
  0x23   :  { %289 = vmatprep.mubr.bf16.mxu0 %v760_v20  ;;  %321 = vmatprep.mubr.bf16.mxu1 %v768_v21 }
  0x2a   :  { %290 = vmatmul.mubr.bf16.gmra.mxu0 %v765_v22  ;;  %322 = vmatmul.mubr.bf16.gmra.mxu1 %v771_v23 }
  0x2b   :  { %297 = vmatprep.mubr.bf16.mxu0 %v766_v24  ;;  %329 = vmatprep.mubr.bf16.mxu1 %v774_v25 }
  0x32   :  { %298 = vmatmul.mubr.bf16.gmra.mxu0 %v770_v26  ;;  %330 = vmatmul.mubr.bf16.gmra.mxu1 %v777_v27 }
  0x33   :  { %305 = vmatprep.mubr.bf16.mxu0 %v772_v28  ;;  %337 = vmatprep.mubr.bf16.mxu1 %v778_v29 }
  0x3a   :  { %306 = vmatmul.mubr.bf16.gmra.mxu0 %v776_v30  ;;  %338 = vmatmul.mubr.bf16.gmra.mxu1 %v780_v31 }
  0xe2   :  { %v677_v32 = vpop.f32.mrf.mxu0  ;;  %v701_v33 = vpop.f32.mrf.mxu1 }
  0xe4   :  { %v678_v35 = vpop.f32.mrf.mxu0  ;;  %v702_v36 = vpop.f32.mrf.mxu1 }
  0xe5   :  { %v679_v37 = vadd.f32 %v678_v35, %v677_v32  ;;  %v703_v38 = vadd.f32 %v702_v36, %v701_v33 }
  0xe6   :  { %v680_v39 = vpop.f32.mrf.mxu0  ;;  %v704_v40 = vpop.f32.mrf.mxu1 }
  0xe7   :  { %v284_v41 = vadd.f32 %v679_v37, %v910_v34  ;;  %v316_v42 = vadd.f32 %v703_v38, %v910_v34 }
  0xe8   :  { %v681_v43 = vpop.f32.mrf.mxu0  ;;  %v705_v44 = vpop.f32.mrf.mxu1 }
  0xe9   :  { %v682_v45 = vadd.f32 %v681_v43, %v680_v39  ;;  %v370_v47 = vmul.f32 0.01, %v316_v42  ;;  %v706_v48 = vadd.f32 %v705_v44, %v704_v40  ;;  %v362_v50 = vmul.f32 0.01, %v284_v41 }
  0xea   :  { %v683_v46 = vpop.f32.mrf.mxu0  ;;  %v707_v49 = vpop.f32.mrf.mxu1  ;;  %vm354_vm0 = vcmp.ge.f32.partialorder %v316_v42, 0.0  ;;  %vm346_vm1 = vcmp.ge.f32.partialorder %v284_v41, 0.0 }
  0xeb   :  { %v287_v51 = vadd.f32 %v682_v45, %v910_v34  ;;  %v319_v53 = vadd.f32 %v706_v48, %v910_v34  ;;  %v916_v57 = vsel %vm354_vm0, %v316_v42, %v370_v47  ;;  %v378_v62 = vsel %vm346_vm1, %v284_v41, %v362_v50 }
  0xec   :  { %v684_v52 = vpop.f32.mrf.mxu0  ;;  %v708_v54 = vpop.f32.mrf.mxu1  ;;  %v495_v19 = vmul.f32 %v378_v62, %v378_v62  ;;  %vm532_vm0 = vcmask 1040384  }
  0xed   :  { %vm347_vm2 = vcmp.ge.f32.partialorder %v287_v51, 0.0  ;;  %v363_v55 = vmul.f32 0.01, %v287_v51  ;;  %v685_v56 = vadd.f32 %v684_v52, %v683_v46  ;;  %vm355_vm3 = vcmp.ge.f32.partialorder %v319_v53, 0.0 }
  0xee   :  { %v686_v58 = vpop.f32.mrf.mxu0  ;;  %v371_v59 = vmul.f32 0.01, %v319_v53  ;;  %v709_v60 = vadd.f32 %v708_v54, %v707_v49  ;;  %v710_v61 = vpop.f32.mrf.mxu1 }
  0xef   :  { %v379_v63 = vsel %vm347_vm2, %v287_v51, %v363_v55  ;;  %v292_v0 = vadd.f32 %v685_v56, %v910_v34 }
  0xf0   :  { %v617_v1 = vpack.c.bf16 %v379_v63, %v378_v62  ;;  %v687_v2 = vpop.f32.mrf.mxu0  ;;  %v919_v3 = vsel %vm355_vm3, %v319_v53, %v371_v59  ;;  %v711_v4 = vpop.f32.mrf.mxu1  ;;  %v324_v8 = vadd.f32 %v709_v60, %v910_v34  ;;  %v496_v20 = vmul.f32 %v379_v63, %v379_v63 }
  0xf1   :  { %v688_v5 = vadd.f32 %v687_v2, %v686_v58  ;;  %v637_v6 = vpack.c.bf16 %v919_v3, %v916_v57  ;;  %v712_v9 = vadd.f32 %v711_v4, %v710_v61  ;;  %v364_v11 = vmul.f32 0.01, %v292_v0 }
  0xf2   :  { %618 = vst [vmem:[%s987_s3] sm:$0xff] %v617_v1   ;;  %v689_v7 = vpop.f32.mrf.mxu0  ;;  %v713_v10 = vpop.f32.mrf.mxu1  ;;  %vm348_vm4 = vcmp.ge.f32.partialorder %v292_v0, 0.0  ;;  %vm356_vm5 = vcmp.ge.f32.partialorder %v324_v8, 0.0  ;;  %v372_v14 = vmul.f32 0.01, %v324_v8  ;;  %v474_v27 = vadd.f32 %v379_v63, %v378_v62 }
  0xf3   :  { %v295_v12 = vadd.f32 %v688_v5, %v910_v34  ;;  %657 = vst [vmem:[%s987_s3 + $0x20] sm:$0xff] %v637_v6   ;;  %v327_v18 = vadd.f32 %v712_v9, %v910_v34  ;;  %v380_v24 = vsel %vm348_vm4, %v292_v0, %v364_v11  ;;  %v511_v42 = vadd.f32 %v496_v20, %v495_v19 }
  0xf4   :  { %v690_v13 = vpop.f32.mrf.mxu0  ;;  %v714_v15 = vpop.f32.mrf.mxu1  ;;  %v934_v29 = vsel %vm356_vm5, %v324_v8, %v372_v14  ;;  %v497_v37 = vmul.f32 %v380_v24, %v380_v24  ;;  %v475_v43 = vadd.f32 %v474_v27, %v380_v24 }
  0xf5   :  { %vm349_vm6 = vcmp.ge.f32.partialorder %v295_v12, 0.0  ;;  %v365_v16 = vmul.f32 0.01, %v295_v12  ;;  %v691_v17 = vadd.f32 %v690_v13, %v689_v7  ;;  %v715_v22 = vadd.f32 %v714_v15, %v713_v10 }
  0xf6   :  { %v692_v21 = vpop.f32.mrf.mxu0  ;;  %v716_v23 = vpop.f32.mrf.mxu1  ;;  %vm357_vm7 = vcmp.ge.f32.partialorder %v327_v18, 0.0  ;;  %v373_v31 = vmul.f32 0.01, %v327_v18  ;;  %v512_v54 = vadd.f32 %v511_v42, %v497_v37  ;;  %v504_v37 = vmul.f32 %v919_v3, %v919_v3 }
  0xf7   :  { %v381_v25 = vsel %vm349_vm6, %v295_v12, %v365_v16  ;;  %v300_v26 = vadd.f32 %v691_v17, %v910_v34  ;;  %v332_v36 = vadd.f32 %v715_v22, %v910_v34 }
  0xf8   :  { %v622_v28 = vpack.c.bf16 %v381_v25, %v380_v24  ;;  %v693_v30 = vpop.f32.mrf.mxu0  ;;  %v717_v32 = vpop.f32.mrf.mxu1  ;;  %v940_v38 = vsel %vm357_vm7, %v327_v18, %v373_v31  ;;  %v498_v46 = vmul.f32 %v381_v25, %v381_v25  ;;  %v476_v55 = vadd.f32 %v475_v43, %v381_v25 }
  0xf9   :  { %vm350_vm8 = vcmp.ge.f32.partialorder %v300_v26, 0.0  ;;  %v366_v33 = vmul.f32 0.01, %v300_v26  ;;  %v694_v35 = vadd.f32 %v693_v30, %v692_v21  ;;  %v718_v40 = vadd.f32 %v717_v32, %v716_v23 }
  0xfa   :  { %654 = vst [vmem:[%s987_s3 + $0x8] sm:$0xff] %v622_v28   ;;  %v695_v39 = vpop.f32.mrf.mxu0  ;;  %v719_v41 = vpop.f32.mrf.mxu1  ;;  %v642_v45 = vpack.c.bf16 %v940_v38, %v934_v29  ;;  %vm358_vm9 = vcmp.ge.f32.partialorder %v332_v36, 0.0  ;;  %v374_v49 = vmul.f32 0.01, %v332_v36  ;;  %v513_v63 = vadd.f32 %v512_v54, %v498_v46 }
  0xfb   :  { %v303_v44 = vadd.f32 %v694_v35, %v910_v34  ;;  %v382_v47 = vsel %vm350_vm8, %v300_v26, %v366_v33  ;;  %v335_v53 = vadd.f32 %v718_v40, %v910_v34  ;;  %v503_v33 = vmul.f32 %v916_v57, %v916_v57 }
  0xfc   :  { %v696_v48 = vpop.f32.mrf.mxu0  ;;  %v720_v50 = vpop.f32.mrf.mxu1  ;;  %658 = vst [vmem:[%s987_s3 + $0x28] sm:$0xff] %v642_v45   ;;  %v499_v60 = vmul.f32 %v382_v47, %v382_v47  ;;  %v390_v1 = vsel %vm358_vm9, %v332_v36, %v374_v49  ;;  %v477_v9 = vadd.f32 %v476_v55, %v382_v47 }
  0xfd   :  { %vm351_vm10 = vcmp.ge.f32.partialorder %v303_v44, 0.0  ;;  %v367_v51 = vmul.f32 0.01, %v303_v44  ;;  %v697_v52 = vadd.f32 %v696_v48, %v695_v39  ;;  %v721_v58 = vadd.f32 %v720_v50, %v719_v41 }
  0xfe   :  { %v698_v56 = vpop.f32.mrf.mxu0  ;;  %v722_v59 = vpop.f32.mrf.mxu1  ;;  %vm359_vm11 = vcmp.ge.f32.partialorder %v335_v53, 0.0  ;;  %v375_v4 = vmul.f32 0.01, %v335_v53  ;;  %v514_v13 = vadd.f32 %v513_v63, %v499_v60  ;;  %v505_v41 = vmul.f32 %v934_v29, %v934_v29 }
  0xff   :  { %v383_v61 = vsel %vm351_vm10, %v303_v44, %v367_v51  ;;  %v308_v62 = vadd.f32 %v697_v52, %v910_v34  ;;  %v340_v8 = vadd.f32 %v721_v58, %v910_v34  ;;  %v507_v46 = vmul.f32 %v390_v1, %v390_v1 }
 0x100   :  { %v627_v0 = vpack.c.bf16 %v383_v61, %v382_v47  ;;  %v699_v2 = vpop.f32.mrf.mxu0  ;;  %v723_v5 = vpop.f32.mrf.mxu1  ;;  %v500_v10 = vmul.f32 %v383_v61, %v383_v61  ;;  %v391_v11 = vsel %vm359_vm11, %v335_v53, %v375_v4  ;;  %v478_v17 = vadd.f32 %v477_v9, %v383_v61 }
 0x101   :  { %vm352_vm12 = vcmp.ge.f32.partialorder %v308_v62, 0.0  ;;  %v368_v6 = vmul.f32 0.01, %v308_v62  ;;  %v700_v7 = vadd.f32 %v699_v2, %v698_v56  ;;  %v724_v12 = vadd.f32 %v723_v5, %v722_v59 }
 0x102   :  { %655 = vst [vmem:[%s987_s3 + $0x10] sm:$0xff] %v627_v0   ;;  %v647_v16 = vpack.c.bf16 %v391_v11, %v390_v1  ;;  %vm360_vm13 = vcmp.ge.f32.partialorder %v340_v8, 0.0  ;;  %v376_v19 = vmul.f32 0.01, %v340_v8  ;;  %v515_v22 = vadd.f32 %v514_v13, %v500_v10 }
 0x103   :  { %v384_v14 = vsel %vm352_vm12, %v308_v62, %v368_v6  ;;  %v311_v15 = vadd.f32 %v700_v7, %v910_v34  ;;  %v343_v21 = vadd.f32 %v724_v12, %v910_v34  ;;  %v508_v49 = vmul.f32 %v391_v11, %v391_v11 }
 0x104   :  { %v501_v18 = vmul.f32 %v384_v14, %v384_v14  ;;  %659 = vst [vmem:[%s987_s3 + $0x30] sm:$0xff] %v647_v16   ;;  %v479_v23 = vadd.f32 %v478_v17, %v384_v14  ;;  %v392_v25 = vsel %vm360_vm13, %v340_v8, %v376_v19 }
 0x105   :  { %vm353_vm14 = vcmp.ge.f32.partialorder %v311_v15, 0.0  ;;  %v369_v20 = vmul.f32 0.01, %v311_v15  ;;  %vm361_vm15 = vcmp.ge.f32.partialorder %v343_v21, 0.0  ;;  %v377_v26 = vmul.f32 0.01, %v343_v21 }
 0x106   :  { %v516_v27 = vadd.f32 %v515_v22, %v501_v18  ;;  %v509_v53 = vmul.f32 %v392_v25, %v392_v25 }
 0x107   :  { %v385_v24 = vsel %vm353_vm14, %v311_v15, %v369_v20  ;;  %v393_v32 = vsel %vm361_vm15, %v343_v21, %v377_v26 }
 0x108   :  { %v632_v28 = vpack.c.bf16 %v385_v24, %v384_v14  ;;  %v480_v30 = vadd.f32 %v479_v23, %v385_v24  ;;  %v502_v31 = vmul.f32 %v385_v24, %v385_v24  ;;  %v652_v36 = vpack.c.bf16 %v393_v32, %v392_v25 }
 0x109   :  { %v510_v56 = vmul.f32 %v393_v32, %v393_v32 }
 0x10a   :  { %656 = vst [vmem:[%s987_s3 + $0x18] sm:$0xff] %v632_v28   ;;  %v481_v34 = vadd.f32 %v480_v30, %v916_v57  ;;  %v517_v35 = vadd.f32 %v516_v27, %v502_v31  ;;  %660 = vst [vmem:[%s987_s3 + $0x38] sm:$0xff] %v652_v36   ;;  %v506_v57 = vmul.f32 %v940_v38, %v940_v38 }
 0x10c   :  { %v482_v39 = vadd.f32 %v481_v34, %v919_v3  ;;  %v518_v40 = vadd.f32 %v517_v35, %v503_v33 }
 0x10e   :  { %v519_v42 = vadd.f32 %v518_v40, %v504_v37  ;;  %v483_v43 = vadd.f32 %v482_v39, %v934_v29 }
 0x110   :  { %v484_v44 = vadd.f32 %v483_v43, %v940_v38  ;;  %v520_v45 = vadd.f32 %v519_v42, %v505_v41 }
 0x112   :  { %v485_v47 = vadd.f32 %v484_v44, %v390_v1  ;;  %v521_v3 = vadd.f32 %v520_v45, %v506_v57 }
 0x114   :  { %v486_v48 = vadd.f32 %v485_v47, %v391_v11  ;;  %v522_v50 = vadd.f32 %v521_v3, %v507_v46 }
 0x116   :  { %v523_v51 = vadd.f32 %v522_v50, %v508_v49  ;;  %v487_v52 = vadd.f32 %v486_v48, %v392_v25 }
 0x118   :  { %v524_v54 = vadd.f32 %v523_v51, %v509_v53  ;;  %v488_v55 = vadd.f32 %v487_v52, %v393_v32 }
 0x11a   :  { %v489_v58 = vrot.slane %v488_v55, 4  ;;  %v525_v29 = vadd.f32 %v524_v54, %v510_v56 }
 0x11c   :  { %v490_v59 = vadd.f32 %v489_v58, %v488_v55  ;;  %v526_v60 = vrot.slane %v525_v29, 4 }
 0x11e   :  { %v491_v61 = vrot.slane %v490_v59, 2  ;;  %v527_v62 = vadd.f32 %v526_v60, %v525_v29 }
 0x120   :  { %v492_v38 = vadd.f32 %v491_v61, %v490_v59  ;;  %v528_v63 = vrot.slane %v527_v62, 2 }
 0x122   :  { %v493_v0 = vrot.slane %v492_v38, 1  ;;  %v529_v1 = vadd.f32 %v528_v63, %v527_v62 }
 0x124   :  { %v494_v2 = vadd.f32 %v493_v0, %v492_v38  ;;  %v530_v4 = vrot.slane %v529_v1, 1 }
 0x126   :  { %v531_v5 = vadd.f32 %v530_v4, %v529_v1  ;;  %v533_v6 = vsel %vm532_vm0, %v494_v2, 0.0 }
 0x127   :  { %534 = vst [vmem:[%s988_s4] sm:$0xff] %v533_v6 }
 0x128   :  { %v535_v7 = vsel %vm532_vm0, %v531_v5, 0.0 }
 0x129   :  { %536 = vst [vmem:[%s989_s5] sm:$0xff] %v535_v7 }

// kernel: tile.24
= control target key start
LH: loop header
LB: loop body
LE: loop exit
PB: predicated region body
PF: predicated region fallthrough
CT: control target
= control target key end

     0   :  { %vm3_vm0 = vcmask 523264   ;;  %s13_s11 = smov 64   ;;  %vm9_vm1 = vcmask 1048064   ;;  %s36_s0 = inlined_call_operand.vmem [shape: f32[9,64], index: 0, kind: input, shape index: {}]   ;;  %s37_s1 = inlined_call_operand.vmem [shape: f32[576], index: 1, kind: output, shape index: {}]  }
   0x1   :  { %v2_v0 = vld [vmem:[%s36_s0] ss:$2 sm:$0x1f]   ;;  %v11_v1 = vld [vmem:[%s36_s0 + $0x1] ss:$2 sm:$0xf]  }
   0x2   :  { %4 = vst.msk [vmem:[%s37_s1] sm:$0x1f] %vm3_vm0, %v2_v0   ;;  %7 = vrot.lane.b32.xlu0 %v11_v1, %s13_s11 }
  0x74   :  { %v8_v2 = vpop.permute.xlu0 %7  }
  0x75   :  { %10 = vst.msk [vmem:[%s37_s1] sm:$0xf] %vm9_vm1, %v8_v2  }

// kernel: tile.23
= control target key start
LH: loop header
LB: loop body
LE: loop exit
PB: predicated region body
PF: predicated region fallthrough
CT: control target
= control target key end

     0   :  { %s28_s0 = inlined_call_operand.vmem [shape: f32[64], index: 0, kind: input, shape index: {}]   ;;  %s29_s1 = inlined_call_operand.vmem [shape: f32[9,64], index: 1, kind: output, shape index: {}]  }
   0x1   :  { %v4_v0 = vld [vmem:[%s28_s0] ss:$0 sm:$0xff] }
   0x2   :  { %5 = vst [vmem:[%s29_s1] sm:$0xff] %v4_v0  ;;  %8 = vst [vmem:[%s29_s1 + $0x8] sm:$0xff] %v4_v0 }

// kernel: discriminator_forward.10
= control target key start
LH: loop header
LB: loop body
LE: loop exit
PB: predicated region body
PF: predicated region fallthrough
CT: control target
= control target key end

     0   :  { %vm409_vm4 = vcmask 1040384   ;;  %s701_s1 = inlined_call_operand.vmem [shape: bf16[384,128], index: 1, kind: input, shape index: {}]   ;;  %s702_s0 = inlined_call_operand.vmem [shape: bf16[32,384], index: 0, kind: input, shape index: {}]   ;;  %s703_s2 = inlined_call_operand.vmem [shape: f32[1,128], index: 2, kind: input, shape index: {}]   ;;  %s704_s3 = inlined_call_operand.vmem [shape: bf16[32,128], index: 3, kind: output, shape index: {0}]   ;;  %s705_s4 = inlined_call_operand.vmem [shape: f32[8,128], index: 4, kind: output, shape index: {1}]   ;;  %s706_s5 = inlined_call_operand.vmem [shape: f32[8,128], index: 5, kind: output, shape index: {2}]  }
   0x1   :  { %v534_v0 = vld [vmem:[%s701_s1 + $0x78] sm:$0xff]   ;;  %v537_v3 = vld [vmem:[%s701_s1 + $0x70] sm:$0xff]   ;;  %v540_v6 = vld [vmem:[%s701_s1 + $0x68] sm:$0xff]  }
   0x2   :  { %v535_v1 = vld [vmem:[%s701_s1 + $0x38] sm:$0xff]   ;;  %476 = vmatprep.subr.bf16.mxu0 %v534_v0  ;;  %v538_v4 = vld [vmem:[%s701_s1 + $0x30] sm:$0xff]   ;;  %v541_v7 = vld [vmem:[%s701_s1 + $0x28] sm:$0xff]  }
   0x3   :  { %v536_v2 = vld [vmem:[%s701_s1 + $0xb8] sm:$0xff]   ;;  %477 = vmatpush3.bf16.msra.mxu0 %v535_v1  ;;  %v539_v5 = vld [vmem:[%s701_s1 + $0xb0] sm:$0xff]   ;;  %v542_v8 = vld [vmem:[%s701_s1 + $0xa8] sm:$0xff]  }
   0x4   :  { %514 = vmatprep.subr.bf16.mxu1 %v536_v2  ;;  %478 = vmatprep.subr.bf16.mxu0 %v537_v3  ;;  %v543_v9 = vld [vmem:[%s701_s1 + $0x60] sm:$0xff]   ;;  %v546_v12 = vld [vmem:[%s701_s1 + $0x58] sm:$0xff]   ;;  %v549_v15 = vld [vmem:[%s701_s1 + $0x50] sm:$0xff]  }
   0x5   :  { %515 = vmatpush3.bf16.msra.mxu1 %v536_v2  ;;  %v544_v10 = vld [vmem:[%s701_s1 + $0x20] sm:$0xff]   ;;  %v548_v13 = vld [vmem:[%s701_s1 + $0x98] sm:$0xff]   ;;  %v551_v16 = vld [vmem:[%s701_s1 + $0x90] sm:$0xff]  }
   0x6   :  { %516 = vmatprep.subr.bf16.mxu1 %v539_v5  ;;  %v545_v11 = vld [vmem:[%s701_s1 + $0xa0] sm:$0xff]   ;;  %v547_v14 = vld [vmem:[%s701_s1 + $0x18] sm:$0xff]   ;;  %v550_v17 = vld [vmem:[%s701_s1 + $0x10] sm:$0xff]  }
   0x7   :  { %479 = vmatpush3.bf16.msra.mxu0 %v538_v4  ;;  %v552_v18 = vld [vmem:[%s701_s1 + $0x48] sm:$0xff]   ;;  %v555_v21 = vld [vmem:[%s701_s1 + $0x40] sm:$0xff]  }
   0x8   :  { %480 = vmatprep.subr.bf16.mxu0 %v540_v6  ;;  %v553_v19 = vld [vmem:[%s701_s1 + $0x8] sm:$0xff]   ;;  %v557_v22 = vld [vmem:[%s701_s1 + $0x80] sm:$0xff]  }
   0x9   :  { %517 = vmatpush3.bf16.msra.mxu1 %v539_v5  ;;  %v554_v20 = vld [vmem:[%s701_s1 + $0x88] sm:$0xff]   ;;  %v560_v23 = vld [vmem:[%s702_s0 + $0x4] ss:$12 sps:$4 sm:$0xff]   ;;  %v426_v33 = vld [vmem:[%s703_s2] ss:$0 sm:$0xff] }
   0xa   :  { %518 = vmatprep.subr.bf16.mxu1 %v542_v8  ;;  %v561_v24 = vld [vmem:[%s702_s0 + $0x8] ss:$12 sps:$4 sm:$0xff]   ;;  %v556_v25 = vld [vmem:[%s701_s1] sm:$0xff]   ;;  %289 = vmatprep.mubr.bf16.mxu0 %v560_v23 }
   0xb   :  { %481 = vmatpush3.bf16.msra.mxu0 %v541_v7  ;;  %530 = vmatprep.mubr.bf16.mxu1 %v561_v24  ;;  %v558_v26 = vld [vmem:[%s702_s0] ss:$12 sps:$4 sm:$0xff]   ;;  %v563_v27 = vld [vmem:[%s702_s0 + $0x1c] ss:$12 sps:$4 sm:$0xff]   ;;  %v565_v29 = vld [vmem:[%s702_s0 + $0x18] ss:$12 sps:$4 sm:$0xff]  }
   0xc   :  { %482 = vmatprep.subr.bf16.mxu0 %v543_v9  ;;  %v562_v28 = vld [vmem:[%s702_s0 + $0x20] ss:$12 sps:$4 sm:$0xff]  }
   0xd   :  { %519 = vmatpush3.bf16.msra.mxu1 %v542_v8 }
   0xe   :  { %520 = vmatprep.subr.bf16.mxu1 %v545_v11 }
   0xf   :  { %483 = vmatpush3.bf16.msra.mxu0 %v544_v10 }
  0x10   :  { %484 = vmatprep.subr.bf16.mxu0 %v546_v12 }
  0x11   :  { %521 = vmatpush3.bf16.msra.mxu1 %v545_v11 }
  0x12   :  { %522 = vmatprep.subr.bf16.mxu1 %v548_v13 }
  0x13   :  { %485 = vmatpush3.bf16.msra.mxu0 %v547_v14 }
  0x14   :  { %486 = vmatprep.subr.bf16.mxu0 %v549_v15 }
  0x15   :  { %523 = vmatpush3.bf16.msra.mxu1 %v548_v13 }
  0x16   :  { %524 = vmatprep.subr.bf16.mxu1 %v551_v16 }
  0x17   :  { %487 = vmatpush3.bf16.msra.mxu0 %v550_v17 }
  0x18   :  { %488 = vmatprep.subr.bf16.mxu0 %v552_v18 }
  0x19   :  { %525 = vmatpush3.bf16.msra.mxu1 %v551_v16 }
  0x1a   :  { %526 = vmatprep.subr.bf16.mxu1 %v554_v20 }
  0x1b   :  { %489 = vmatpush3.bf16.msra.mxu0 %v553_v19 }
  0x1c   :  { %490 = vmatprep.subr.bf16.mxu0 %v555_v21 }
  0x1d   :  { %527 = vmatpush3.bf16.msra.mxu1 %v554_v20 }
  0x1e   :  { %528 = vmatprep.subr.bf16.mxu1 %v557_v22 }
  0x1f   :  { %491 = vmatpush3.bf16.msra.mxu0 %v556_v25 }
  0x21   :  { %529 = vmatpush3.bf16.msra.mxu1 %v557_v22 }
  0x22   :  { %290 = vmatmul.mubr.bf16.vlgmr.msra.gmra.mxu0 %v558_v26 }
  0x23   :  { %297 = vmatprep.mubr.bf16.mxu0 %v563_v27 }
  0x24   :  { %531 = vmatmul.mubr.bf16.vlgmr.msra.gmra.mxu1 %v562_v28 }
  0x2a   :  { %298 = vmatmul.mubr.bf16.gmra.mxu0 %v565_v29 }
  0xe2   :  { %v492_v30 = vpop.f32.mrf.mxu0 }
  0xe4   :  { %v493_v31 = vpop.f32.mrf.mxu0  ;;  %v532_v32 = vpop.f32.mrf.mxu1 }
  0xe5   :  { %v494_v34 = vadd.f32 %v493_v31, %v492_v30 }
  0xe6   :  { %v495_v35 = vpop.f32.mrf.mxu0  ;;  %v340_v36 = vpop.f32.mrf.mxu1 }
  0xe7   :  { %v292_v37 = vadd.f32 %v494_v34, %v426_v33 }
  0xe8   :  { %v496_v38 = vpop.f32.mrf.mxu0  ;;  %v533_v39 = vpop.f32.mrf.mxu1 }
  0xe9   :  { %v341_v40 = vadd.f32 %v340_v36, %v292_v37  ;;  %v497_v41 = vadd.f32 %v496_v38, %v495_v35 }
  0xea   :  { %v498_v42 = vpop.f32.mrf.mxu0  ;;  %v343_v44 = vpop.f32.mrf.mxu1 }
  0xeb   :  { %v295_v43 = vadd.f32 %v497_v41, %v426_v33  ;;  %v359_v46 = vmul.f32 0.01, %v341_v40  ;;  %vm355_vm0 = vcmp.ge.f32.partialorder %v341_v40, 0.0 }
  0xec   :  { %v499_v45 = vpop.f32.mrf.mxu0 }
  0xed   :  { %v344_v47 = vadd.f32 %v343_v44, %v295_v43  ;;  %v500_v48 = vadd.f32 %v499_v45, %v498_v42  ;;  %v363_v53 = vsel %vm355_vm0, %v341_v40, %v359_v46 }
  0xee   :  { %v501_v49 = vpop.f32.mrf.mxu0  ;;  %v396_v63 = vmul.f32 %v363_v53, %v363_v53 }
  0xef   :  { %vm356_vm1 = vcmp.ge.f32.partialorder %v344_v47, 0.0  ;;  %v360_v50 = vmul.f32 0.01, %v344_v47  ;;  %v300_v51 = vadd.f32 %v500_v48, %v426_v33 }
  0xf0   :  { %v502_v52 = vpop.f32.mrf.mxu0 }
  0xf1   :  { %v364_v54 = vsel %vm356_vm1, %v344_v47, %v360_v50  ;;  %v349_v55 = vadd.f32 %v532_v32, %v300_v51  ;;  %v503_v56 = vadd.f32 %v502_v52, %v501_v49 }
  0xf2   :  { %v468_v57 = vpack.c.bf16 %v364_v54, %v363_v53  ;;  %v397_v60 = vmul.f32 %v364_v54, %v364_v54  ;;  %v387_v0 = vadd.f32 %v364_v54, %v363_v53 }
  0xf3   :  { %vm357_vm2 = vcmp.ge.f32.partialorder %v349_v55, 0.0  ;;  %v361_v58 = vmul.f32 0.01, %v349_v55  ;;  %v303_v59 = vadd.f32 %v503_v56, %v426_v33 }
  0xf4   :  { %469 = vst [vmem:[%s704_s3] sm:$0xff] %v468_v57   ;;  %v400_v3 = vadd.f32 %v397_v60, %v396_v63 }
  0xf5   :  { %v365_v61 = vsel %vm357_vm2, %v349_v55, %v361_v58  ;;  %v352_v62 = vadd.f32 %v533_v39, %v303_v59 }
  0xf6   :  { %v398_v1 = vmul.f32 %v365_v61, %v365_v61  ;;  %v388_v4 = vadd.f32 %v387_v0, %v365_v61 }
  0xf7   :  { %vm358_vm3 = vcmp.ge.f32.partialorder %v352_v62, 0.0  ;;  %v362_v2 = vmul.f32 0.01, %v352_v62 }
  0xf8   :  { %v401_v6 = vadd.f32 %v400_v3, %v398_v1 }
  0xf9   :  { %v366_v5 = vsel %vm358_vm3, %v352_v62, %v362_v2 }
  0xfa   :  { %v473_v7 = vpack.c.bf16 %v366_v5, %v365_v61  ;;  %v389_v8 = vadd.f32 %v388_v4, %v366_v5  ;;  %v399_v9 = vmul.f32 %v366_v5, %v366_v5 }
  0xfc   :  { %475 = vst [vmem:[%s704_s3 + $0x8] sm:$0xff] %v473_v7   ;;  %v390_v10 = vrot.slane %v389_v8, 4  ;;  %v402_v11 = vadd.f32 %v401_v6, %v399_v9 }
  0xfe   :  { %v391_v12 = vadd.f32 %v390_v10, %v389_v8  ;;  %v403_v13 = vrot.slane %v402_v11, 4 }
 0x100   :  { %v392_v14 = vrot.slane %v391_v12, 2  ;;  %v404_v15 = vadd.f32 %v403_v13, %v402_v11 }
 0x102   :  { %v393_v16 = vadd.f32 %v392_v14, %v391_v12  ;;  %v405_v17 = vrot.slane %v404_v15, 2 }
 0x104   :  { %v394_v18 = vrot.slane %v393_v16, 1  ;;  %v406_v19 = vadd.f32 %v405_v17, %v404_v15 }
 0x106   :  { %v395_v20 = vadd.f32 %v394_v18, %v393_v16  ;;  %v407_v21 = vrot.slane %v406_v19, 1 }
 0x108   :  { %v408_v22 = vadd.f32 %v407_v21, %v406_v19  ;;  %v410_v23 = vsel %vm409_vm4, %v395_v20, 0.0 }
 0x109   :  { %411 = vst [vmem:[%s705_s4] sm:$0xff] %v410_v23 }
 0x10a   :  { %v412_v24 = vsel %vm409_vm4, %v408_v22, 0.0 }
 0x10b   :  { %413 = vst [vmem:[%s706_s5] sm:$0xff] %v412_v24 }

// kernel: discriminator_forward.11
= control target key start
LH: loop header
LB: loop body
LE: loop exit
PB: predicated region body
PF: predicated region fallthrough
CT: control target
= control target key end

     0   :  { %v741_v33 = vmov 0.0   ;;  %vm742_vm0 = vmmov 0   ;;  %vm547_vm3 = vcmask 1040384   ;;  %s920_s1 = inlined_call_operand.vmem [shape: bf16[640,128], index: 1, kind: input, shape index: {}]   ;;  %s921_s0 = inlined_call_operand.vmem [shape: bf16[16,640], index: 0, kind: input, shape index: {}]   ;;  %s922_s2 = inlined_call_operand.vmem [shape: f32[1,128], index: 2, kind: input, shape index: {}]   ;;  %s923_s3 = inlined_call_operand.vmem [shape: bf16[16,128], index: 3, kind: output, shape index: {0}]   ;;  %s924_s4 = inlined_call_operand.vmem [shape: f32[8,128], index: 4, kind: output, shape index: {1}]   ;;  %s925_s5 = inlined_call_operand.vmem [shape: f32[8,128], index: 5, kind: output, shape index: {2}]  }
   0x1   :  { %v694_v0 = vld [vmem:[%s920_s1 + $0x78] sm:$0xff]   ;;  %v698_v4 = vld [vmem:[%s920_s1 + $0x70] sm:$0xff]   ;;  %v702_v8 = vld [vmem:[%s920_s1 + $0x68] sm:$0xff]  }
   0x2   :  { %v695_v1 = vld [vmem:[%s920_s1 + $0x38] sm:$0xff]   ;;  %619 = vmatprep.subr.bf16.mxu0 %v694_v0  ;;  %v699_v5 = vld [vmem:[%s920_s1 + $0x30] sm:$0xff]   ;;  %v703_v9 = vld [vmem:[%s920_s1 + $0x28] sm:$0xff]  }
   0x3   :  { %v696_v2 = vld [vmem:[%s920_s1 + $0xf8] sm:$0xff]   ;;  %620 = vmatpush3.bf16.msra.mxu0 %v695_v1  ;;  %v700_v6 = vld [vmem:[%s920_s1 + $0xf0] sm:$0xff]   ;;  %v704_v10 = vld [vmem:[%s920_s1 + $0xe8] sm:$0xff]  }
   0x4   :  { %v697_v3 = vld [vmem:[%s920_s1 + $0xb8] sm:$0xff]   ;;  %641 = vmatprep.subr.bf16.mxu1 %v696_v2  ;;  %621 = vmatprep.subr.bf16.mxu0 %v698_v4  ;;  %v701_v7 = vld [vmem:[%s920_s1 + $0xb0] sm:$0xff]   ;;  %v705_v11 = vld [vmem:[%s920_s1 + $0xa8] sm:$0xff]  }
   0x5   :  { %642 = vmatpush3.bf16.msra.mxu1 %v697_v3  ;;  %v706_v12 = vld [vmem:[%s920_s1 + $0x60] sm:$0xff]   ;;  %v710_v16 = vld [vmem:[%s920_s1 + $0x58] sm:$0xff]   ;;  %v714_v20 = vld [vmem:[%s920_s1 + $0x50] sm:$0xff]  }
   0x6   :  { %643 = vmatprep.subr.bf16.mxu1 %v700_v6  ;;  %v707_v13 = vld [vmem:[%s920_s1 + $0x20] sm:$0xff]   ;;  %v711_v17 = vld [vmem:[%s920_s1 + $0x18] sm:$0xff]   ;;  %v715_v21 = vld [vmem:[%s920_s1 + $0x10] sm:$0xff]  }
   0x7   :  { %622 = vmatpush3.bf16.msra.mxu0 %v699_v5  ;;  %v708_v14 = vld [vmem:[%s920_s1 + $0xe0] sm:$0xff]   ;;  %v712_v18 = vld [vmem:[%s920_s1 + $0xd8] sm:$0xff]   ;;  %v716_v22 = vld [vmem:[%s920_s1 + $0xd0] sm:$0xff]  }
   0x8   :  { %623 = vmatprep.subr.bf16.mxu0 %v702_v8  ;;  %v709_v15 = vld [vmem:[%s920_s1 + $0xa0] sm:$0xff]   ;;  %v713_v19 = vld [vmem:[%s920_s1 + $0x98] sm:$0xff]   ;;  %v717_v23 = vld [vmem:[%s920_s1 + $0x90] sm:$0xff]  }
   0x9   :  { %644 = vmatpush3.bf16.msra.mxu1 %v701_v7  ;;  %v718_v24 = vld [vmem:[%s920_s1 + $0x48] sm:$0xff]   ;;  %v722_v28 = vld [vmem:[%s920_s1 + $0x40] sm:$0xff]   ;;  %v732_v37 = vld [vmem:[%s920_s1 + $0x138] sm:$0xff]  }
   0xa   :  { %645 = vmatprep.subr.bf16.mxu1 %v704_v10  ;;  %v719_v25 = vld [vmem:[%s920_s1 + $0x8] sm:$0xff]   ;;  %v723_v29 = vld [vmem:[%s920_s1] sm:$0xff]   ;;  %v733_v38 = vld [vmem:[%s920_s1 + $0x130] sm:$0xff]  }
   0xb   :  { %624 = vmatpush3.bf16.msra.mxu0 %v703_v9  ;;  %v720_v26 = vld [vmem:[%s920_s1 + $0xc8] sm:$0xff]   ;;  %v724_v30 = vld [vmem:[%s920_s1 + $0xc0] sm:$0xff]   ;;  %v736_v41 = vld [vmem:[%s920_s1 + $0x118] sm:$0xff]  }
   0xc   :  { %625 = vmatprep.subr.bf16.mxu0 %v706_v12  ;;  %v721_v27 = vld [vmem:[%s920_s1 + $0x88] sm:$0xff]   ;;  %v725_v31 = vld [vmem:[%s921_s0] ss:$20 sps:$4 sm:$0xff]   ;;  %v727_v32 = vld [vmem:[%s921_s0 + $0x4] ss:$20 sps:$4 sm:$0xff]  }
   0xd   :  { %646 = vmatpush3.bf16.msra.mxu1 %v705_v11  ;;  %v728_v34 = vld [vmem:[%s920_s1 + $0x80] sm:$0xff]   ;;  %409 = vmatprep.mubr.bf16.mxu0 %v727_v32  ;;  %v729_v35 = vld [vmem:[%s921_s0 + $0x8] ss:$20 sps:$4 sm:$0xff]   ;;  %v737_v42 = vld [vmem:[%s920_s1 + $0x110] sm:$0xff]  }
   0xe   :  { %647 = vmatprep.subr.bf16.mxu1 %v708_v14  ;;  %v731_v36 = vld [vmem:[%s921_s0 + $0xc] ss:$20 sps:$4 sm:$0xff]   ;;  %v740_v45 = vld [vmem:[%s921_s0 + $0x10] ss:$20 sps:$4 sm:$0xff]  }
   0xf   :  { %626 = vmatpush3.bf16.msra.mxu0 %v707_v13  ;;  %450 = vmatprep.mubr.bf16.mxu1 %v731_v36  ;;  %v734_v39 = vld [vmem:[%s920_s1 + $0x128] sm:$0xff]   ;;  %v735_v40 = vld [vmem:[%s920_s1 + $0x120] sm:$0xff]  }
  0x10   :  { %627 = vmatprep.subr.bf16.mxu0 %v710_v16  ;;  %v738_v43 = vld [vmem:[%s920_s1 + $0x108] sm:$0xff]   ;;  %v739_v44 = vld [vmem:[%s920_s1 + $0x100] sm:$0xff]  }
  0x11   :  { %648 = vmatpush3.bf16.msra.mxu1 %v709_v15  ;;  %v564_v52 = vld [vmem:[%s922_s2] ss:$0 sm:$0xff] }
  0x12   :  { %649 = vmatprep.subr.bf16.mxu1 %v712_v18 }
  0x13   :  { %628 = vmatpush3.bf16.msra.mxu0 %v711_v17 }
  0x14   :  { %629 = vmatprep.subr.bf16.mxu0 %v714_v20 }
  0x15   :  { %650 = vmatpush3.bf16.msra.mxu1 %v713_v19 }
  0x16   :  { %651 = vmatprep.subr.bf16.mxu1 %v716_v22 }
  0x17   :  { %630 = vmatpush3.bf16.msra.mxu0 %v715_v21 }
  0x18   :  { %631 = vmatprep.subr.bf16.mxu0 %v718_v24 }
  0x19   :  { %652 = vmatpush3.bf16.msra.mxu1 %v717_v23 }
  0x1a   :  { %653 = vmatprep.subr.bf16.mxu1 %v720_v26 }
  0x1b   :  { %632 = vmatpush3.bf16.msra.mxu0 %v719_v25 }
  0x1c   :  { %633 = vmatprep.subr.bf16.mxu0 %v722_v28 }
  0x1d   :  { %654 = vmatpush3.bf16.msra.mxu1 %v721_v27 }
  0x1e   :  { %655 = vmatprep.subr.bf16.mxu1 %v724_v30 }
  0x1f   :  { %634 = vmatpush3.bf16.msra.mxu0 %v723_v29 }
  0x20   :  { %672 = vmatprep.subr.bf16.mxu0 %v741_v33 }
  0x21   :  { %656 = vmatpush3.bf16.msra.mxu1 %v728_v34 }
  0x22   :  { %410 = vmatmul.mubr.bf16.vlgmr.msra.gmra.mxu0 %v725_v31 }
  0x23   :  { %688 = vmatprep.mubr.msk.bf16.mxu0 %vm742_vm0, %v741_v33  ;;  %673 = vmatpush3.bf16.msra.mxu0 %v732_v37 }
  0x24   :  { %451 = vmatmul.mubr.bf16.vlgmr.msra.gmra.mxu1 %v729_v35  ;;  %674 = vmatprep.subr.bf16.mxu0 %v741_v33 }
  0x27   :  { %675 = vmatpush3.bf16.msra.mxu0 %v733_v38 }
  0x28   :  { %676 = vmatprep.subr.bf16.mxu0 %v741_v33 }
  0x2b   :  { %677 = vmatpush3.bf16.msra.mxu0 %v734_v39 }
  0x2c   :  { %678 = vmatprep.subr.bf16.mxu0 %v741_v33 }
  0x2f   :  { %679 = vmatpush3.bf16.msra.mxu0 %v735_v40 }
  0x30   :  { %680 = vmatprep.subr.bf16.mxu0 %v741_v33 }
  0x33   :  { %681 = vmatpush3.bf16.msra.mxu0 %v736_v41 }
  0x34   :  { %682 = vmatprep.subr.bf16.mxu0 %v741_v33 }
  0x37   :  { %683 = vmatpush3.bf16.msra.mxu0 %v737_v42 }
  0x38   :  { %684 = vmatprep.subr.bf16.mxu0 %v741_v33 }
  0x3b   :  { %685 = vmatpush3.bf16.msra.mxu0 %v738_v43 }
  0x3c   :  { %686 = vmatprep.subr.bf16.mxu0 %v741_v33 }
  0x3f   :  { %687 = vmatpush3.bf16.msra.mxu0 %v739_v44 }
  0x42   :  { %689 = vmatmul.mubr.bf16.vlgmr.msra.gmra.mxu0 %v740_v45 }
  0xe2   :  { %v635_v46 = vpop.f32.mrf.mxu0 }
  0xe4   :  { %v636_v47 = vpop.f32.mrf.mxu0  ;;  %v657_v48 = vpop.f32.mrf.mxu1 }
  0xe5   :  { %v637_v51 = vadd.f32 %v636_v47, %v635_v46 }
  0xe6   :  { %v638_v49 = vpop.f32.mrf.mxu0  ;;  %v658_v50 = vpop.f32.mrf.mxu1 }
  0xe7   :  { %v412_v55 = vadd.f32 %v637_v51, %v564_v52  ;;  %v659_v56 = vadd.f32 %v658_v50, %v657_v48 }
  0xe8   :  { %v639_v53 = vpop.f32.mrf.mxu0  ;;  %v660_v54 = vpop.f32.mrf.mxu1 }
  0xe9   :  { %v640_v57 = vadd.f32 %v639_v53, %v638_v49  ;;  %v453_v61 = vadd.f32 %v659_v56, %v412_v55 }
  0xea   :  { %v661_v58 = vpop.f32.mrf.mxu1 }
  0xeb   :  { %v415_v59 = vadd.f32 %v640_v57, %v564_v52  ;;  %v662_v60 = vadd.f32 %v661_v58, %v660_v54 }
  0xed   :  { %v456_v2 = vadd.f32 %v662_v60, %v415_v59 }
 0x102   :  { %v493_v62 = vpop.f32.mrf.mxu0 }
 0x103   :  { %v494_v63 = vadd.f32 %v493_v62, %v453_v61 }
 0x104   :  { %v690_v0 = vpop.f32.mrf.mxu0 }
 0x105   :  { %vm500_vm1 = vcmp.ge.f32.partialorder %v494_v63, 0.0  ;;  %v502_v1 = vmul.f32 0.01, %v494_v63 }
 0x106   :  { %v496_v3 = vpop.f32.mrf.mxu0 }
 0x107   :  { %v504_v4 = vsel %vm500_vm1, %v494_v63, %v502_v1  ;;  %v497_v5 = vadd.f32 %v496_v3, %v456_v2 }
 0x108   :  { %v532_v6 = vrot.slane %v504_v4, 4  ;;  %v538_v7 = vmul.f32 %v504_v4, %v504_v4  ;;  %v691_v8 = vpop.f32.mrf.mxu0 }
 0x109   :  { %vm501_vm2 = vcmp.ge.f32.partialorder %v497_v5, 0.0  ;;  %v503_v9 = vmul.f32 0.01, %v497_v5 }
 0x10a   :  { %v533_v10 = vadd.f32 %v532_v6, %v504_v4  ;;  %v541_v11 = vrot.slane %v538_v7, 4 }
 0x10b   :  { %v505_v12 = vsel %vm501_vm2, %v497_v5, %v503_v9 }
 0x10c   :  { %v534_v13 = vrot.slane %v533_v10, 2  ;;  %v542_v14 = vadd.f32 %v541_v11, %v538_v7  ;;  %v617_v15 = vpack.c.bf16 %v505_v12, %v504_v4 }
 0x10e   :  { %v535_v16 = vadd.f32 %v534_v13, %v533_v10  ;;  %v543_v17 = vrot.slane %v542_v14, 2  ;;  %618 = vst [vmem:[%s923_s3] sm:$0xff] %v617_v15  }
 0x110   :  { %v536_v18 = vrot.slane %v535_v16, 1  ;;  %v544_v19 = vadd.f32 %v543_v17, %v542_v14 }
 0x112   :  { %v537_v20 = vadd.f32 %v536_v18, %v535_v16  ;;  %v545_v21 = vrot.slane %v544_v19, 1 }
 0x114   :  { %v546_v22 = vadd.f32 %v545_v21, %v544_v19  ;;  %v548_v23 = vsel %vm547_vm3, %v537_v20, 0.0 }
 0x115   :  { %549 = vst [vmem:[%s924_s4] sm:$0xff] %v548_v23 }
 0x116   :  { %v550_v24 = vsel %vm547_vm3, %v546_v22, 0.0 }
 0x117   :  { %551 = vst [vmem:[%s925_s5] sm:$0xff] %v550_v24 }

// kernel: discriminator_forward.12
= control target key start
LH: loop header
LB: loop body
LE: loop exit
PB: predicated region body
PF: predicated region fallthrough
CT: control target
= control target key end

     0   :  { %s1423_s18 = smov 0   ;;  %s1425_s19 = smov 0   ;;  %s1566_s0 = inlined_call_operand.vmem [shape: bf16[16,1152], index: 0, kind: input, shape index: {}]   ;;  %s1567_s1 = inlined_call_operand.vmem [shape: bf16[1152,256], index: 1, kind: input, shape index: {}]   ;;  %s1568_s2 = inlined_call_operand.vmem [shape: f32[1,256], index: 2, kind: input, shape index: {}]   ;;  %s1569_s3 = inlined_call_operand.vmem [shape: bf16[16,256], index: 3, kind: output, shape index: {0}]   ;;  %s1570_s4 = inlined_call_operand.vmem [shape: f32[8,256], index: 4, kind: output, shape index: {1}]   ;;  %s1571_s5 = inlined_call_operand.vmem [shape: f32[8,256], index: 5, kind: output, shape index: {2}]  }
   0x1   :  { %s1427_s20 = smov 0   ;;  %s1429_s21 = smov 0  }
   0x2   :  { %s1431_s22 = smov 0  }
   0x3 LB: > { %s28_s23 = sadd.s32 1, %s1385_s21  ;;  %p51_p1 = scmp.ne.s32.totalorder %s1377_s19, %s1373_s18  ;;  %s1389_s22 = sphi %s1431_s22, %s16_s22   ;;  %s1385_s21 = sphi %s1429_s21, %s1575_s21   ;;  %s1381_s20 = sphi %s1427_s20, %s1574_s20   ;;  %s1377_s19 = sphi %s1425_s19, %s1573_s19   ;;  %s1373_s18 = sphi %s1423_s18, %s1572_s18  }
   0x4   : > { %p29_p0 = scmp.ge.s32.totalorder %s28_s23, 3  ;;  %p52_p2 = scmp.eq.s32.totalorder %s1389_s22, 0 }
   0x5   : > { %s44_s25 = sadd.s32 1, %s1377_s19  ;;  %p1155_p5 = scmp.ge.s32.totalorder %s1389_s22, 3 }
   0x6   : > { %s1577_s23 = smov (%p29_p0, %s28_s23), 0  ;;  %p53_p3 = por %p52_p2, %p51_p1 }
   0x7   : > { %s40_s24 = ssub.s32 %s1385_s21, %s1577_s23  ;;  %223 = sbr.rel (%p1155_p5) target bundleno = 19 (0x13), region = 20 }
   0x8   : > { %p42_p4 = scmp.eq.s32.totalorder %s40_s24, 0 }
   0xa   : > { %s1458_s26 = scalar_select %p42_p4, %s1377_s19, %s44_s25  }
   0xc   : > { %226 = sbr.rel (!%p53_p3) target bundleno = 19 (0x13), region = 24  ;;  %s228_s27 = sand.u32 (%p53_p3), 1, %s1377_s19  }
   0xd   : > { %s1227_s28 = smul.u32 (%p53_p3), 12, %s1385_s21 }
   0xe   : > { %s1231_s29 = smul.u32 (%p53_p3), 24, %s228_s27 }
   0xf   : > { %s236_s7 = scalar_lea.vmem (%p53_p3), %s1566_s0, %s1227_s28 }
  0x10   : > { %v251_v0 = vld [vmem:[%s236_s7] sm:$0xff] (%p53_p3)  ;;  %v1157_v2 = vld [vmem:[%s236_s7 + $0x8] sm:$0xf] (%p53_p3)  ;;  %s230_s8 = scalar_lea.vmem (%p53_p3), [#allocation3], %s1231_s29  ;;  %v1159_v3 = vld [vmem:[%s236_s7 + $0x2c] sm:$0xf] (%p53_p3) }
  0x11   : > { %v253_v1 = vld [vmem:[%s236_s7 + $0x24] sm:$0xff]  ;;  %252 = vst [vmem:[%s230_s8] sm:$0xff] %v251_v0  ;;  %1158 = vst [vmem:[%s230_s8 + $0x8] sm:$0xf] %v1157_v2 }
  0x12   : > { %254 = vst [vmem:[%s230_s8 + $0xc] sm:$0xff] %v253_v1  ;;  %1160 = vst [vmem:[%s230_s8 + $0x14] sm:$0xf] %v1159_v3 }
  0x13 PF: > { %p1161_p6 = scmp.ge.s32.totalorder %s1389_s22, 1  ;;  %p286_p7 = scmp.lt.s32.totalorder %s1389_s22, 4 }
  0x15   : > { %p287_p8 = pnand %p1161_p6, %p286_p7 }
  0x16   : > { %s293_s9 = sand.u32 (!%p287_p8), 1, %s1373_s18   ;;  %s359_s10 = smul.u32 (!%p287_p8), 48, %s1381_s20 }
  0x17   : > { %290 = sbr.rel (%p287_p8) target bundleno = 335 (0x14f), region = 54  ;;  %p1164_p10 = scmp.ne.s32.totalorder (!%p287_p8), %s1381_s20, 0 }
  0x18   : > { %s1232_s11 = smul.u32 (!%p287_p8), 24, %s293_s9  ;;  %p361_p9 = scmp.lt.s32.totalorder (!%p287_p8), %s359_s10, 143 }
  0x1a   : > { %s1475_s16 = scalar_lea.vmem (!%p287_p8), [#allocation3], %s1232_s11 }
  0x1c   : > { %s1579_s10 = smov (!%p361_p9, %s359_s10), 143  ;;  %412 = sbr.rel (%p1164_p10) target bundleno = 36 (0x24), region = 62 }
  0x1d   : > { %s1228_s12 = sshll.u32 %s1579_s10, 3 }
  0x1e   : > { %s1473_s15 = scalar_lea.vmem %s1567_s1, %s1228_s12 }
  0x21   : > { %v1391_v4 = vmov 0.0  }
  0x22   : > { %413 = vst [vmem:[#allocation2 + $0x10] sm:$0xff] %v1391_v4  ;;  %414 = vst [vmem:[#allocation2] sm:$0xff] %v1391_v4 }
  0x23   : > { %415 = vst [vmem:[#allocation2 + $0x18] sm:$0xff] %v1391_v4  ;;  %416 = vst [vmem:[#allocation2 + $0x8] sm:$0xff] %v1391_v4 }
  0x24 PF: > { %v1275_v5 = vld [vmem:[%s1473_s15 + $0x74] ss:$8 sps:$4 sm:$0xff]   ;;  %v1277_v6 = vld [vmem:[%s1473_s15 + $0x70] ss:$8 sps:$4 sm:$0xff]   ;;  %v1392_v7 = vmov 0   ;;  %p1216_p11 = scmp.ne.s32.totalorder %s1381_s20, 2 }
  0x25   : > { %804 = vmatprep.mubr.bf16.mxu1 %v1392_v7  ;;  %729 = vmatprep.subr.bf16.mxu0 %v1275_v5  ;;  %v1278_v8 = vld [vmem:[%s1473_s15 + $0x64] ss:$8 sps:$4 sm:$0xff]   ;;  %v1280_v9 = vld [vmem:[%s1473_s15 + $0x60] ss:$8 sps:$4 sm:$0xff]   ;;  %v1281_v10 = vld [vmem:[%s1473_s15 + $0x54] ss:$8 sps:$4 sm:$0xff]  }
  0x26   : > { %730 = vmatpush1.bf16.msra.mxu0 %v1277_v6  ;;  %v1283_v11 = vld [vmem:[%s1473_s15 + $0x50] ss:$8 sps:$4 sm:$0xff]   ;;  %v1284_v12 = vld [vmem:[%s1473_s15 + $0x44] ss:$8 sps:$4 sm:$0xff]   ;;  %v1296_v13 = vld [vmem:[%s1473_s15 + $0x174] ss:$8 sps:$4 sm:$0xff]  }
  0x27   : > { %731 = vmatprep.subr.bf16.mxu0 %v1278_v8  ;;  %v1298_v14 = vld [vmem:[%s1473_s15 + $0x170] ss:$8 sps:$4 sm:$0xff]   ;;  %v1286_v15 = vld [vmem:[%s1473_s15 + $0x40] ss:$8 sps:$4 sm:$0xff]   ;;  %v1287_v16 = vld [vmem:[%s1473_s15 + $0x34] ss:$8 sps:$4 sm:$0xff]   ;;  %772 = vmatprep.subr.bf16.mxu1 %v1296_v13 }
  0x28   : > { %v1302_v17 = vld [vmem:[%s1473_s15 + $0x164] ss:$8 sps:$4 sm:$0xff]   ;;  %773 = vmatpush1.bf16.msra.mxu1 %v1298_v14  ;;  %v1304_v18 = vld [vmem:[%s1473_s15 + $0x160] ss:$8 sps:$4 sm:$0xff]   ;;  %v1289_v19 = vld [vmem:[%s1473_s15 + $0x30] ss:$8 sps:$4 sm:$0xff]  }
  0x29   : > { %774 = vmatprep.subr.bf16.mxu1 %v1302_v17  ;;  %v1308_v20 = vld [vmem:[%s1473_s15 + $0x154] ss:$8 sps:$4 sm:$0xff]   ;;  %v1290_v21 = vld [vmem:[%s1473_s15 + $0x24] ss:$8 sps:$4 sm:$0xff]   ;;  %v1310_v22 = vld [vmem:[%s1473_s15 + $0x150] ss:$8 sps:$4 sm:$0xff]  }
  0x2a   : > { %732 = vmatpush1.bf16.msra.mxu0 %v1280_v9  ;;  %v1314_v23 = vld [vmem:[%s1473_s15 + $0x144] ss:$8 sps:$4 sm:$0xff]   ;;  %v1292_v24 = vld [vmem:[%s1473_s15 + $0x20] ss:$8 sps:$4 sm:$0xff]   ;;  %v1293_v25 = vld [vmem:[%s1473_s15 + $0x14] ss:$8 sps:$4 sm:$0xff]  }
  0x2b   : > { %733 = vmatprep.subr.bf16.mxu0 %v1281_v10  ;;  %v1316_v26 = vld [vmem:[%s1473_s15 + $0x140] ss:$8 sps:$4 sm:$0xff]   ;;  %v1320_v27 = vld [vmem:[%s1473_s15 + $0x134] ss:$8 sps:$4 sm:$0xff]   ;;  %v1295_v28 = vld [vmem:[%s1473_s15 + $0x10] ss:$8 sps:$4 sm:$0xff]  }
  0x2c   : > { %775 = vmatpush1.bf16.msra.mxu1 %v1304_v18  ;;  %v1299_v29 = vld [vmem:[%s1473_s15 + $0x4] ss:$8 sps:$4 sm:$0xff]   ;;  %v1322_v30 = vld [vmem:[%s1473_s15 + $0x130] ss:$8 sps:$4 sm:$0xff]   ;;  %v1301_v32 = vld [vmem:[%s1473_s15] ss:$8 sps:$4 sm:$0xff]  }
  0x2d   : > { %776 = vmatprep.subr.bf16.mxu1 %v1308_v20  ;;  %v1326_v31 = vld [vmem:[%s1473_s15 + $0x124] ss:$8 sps:$4 sm:$0xff]   ;;  %v1305_v33 = vld [vmem:[%s1473_s15 + $0xf4] ss:$8 sps:$4 sm:$0xff]   ;;  %v1328_v34 = vld [vmem:[%s1473_s15 + $0x120] ss:$8 sps:$4 sm:$0xff]  }
  0x2e   : > { %734 = vmatpush1.bf16.msra.mxu0 %v1283_v11  ;;  %v1332_v35 = vld [vmem:[%s1473_s15 + $0x114] ss:$8 sps:$4 sm:$0xff]   ;;  %v1307_v36 = vld [vmem:[%s1473_s15 + $0xf0] ss:$8 sps:$4 sm:$0xff]   ;;  %v1311_v37 = vld [vmem:[%s1473_s15 + $0xe4] ss:$8 sps:$4 sm:$0xff]  }
  0x2f   : > { %735 = vmatprep.subr.bf16.mxu0 %v1284_v12  ;;  %v1334_v38 = vld [vmem:[%s1473_s15 + $0x110] ss:$8 sps:$4 sm:$0xff]   ;;  %v1338_v39 = vld [vmem:[%s1473_s15 + $0x104] ss:$8 sps:$4 sm:$0xff]   ;;  %v1313_v41 = vld [vmem:[%s1473_s15 + $0xe0] ss:$8 sps:$4 sm:$0xff]  }
  0x30   : > { %777 = vmatpush1.bf16.msra.mxu1 %v1310_v22  ;;  %v1350_v40 = vld [vmem:[%s1475_s16 + $0x4] ss:$12 sps:$4 sm:$0xff]   ;;  %v1344_v46 = vld [vmem:[%s1475_s16 + $0x8] ss:$12 sps:$4 sm:$0xff]   ;;  %v1348_v56 = vld [vmem:[%s1475_s16] ss:$12 sps:$4 sm:$0xff]  }
  0x31   : > { %778 = vmatprep.subr.bf16.mxu1 %v1314_v23  ;;  %v1317_v42 = vld [vmem:[%s1473_s15 + $0xd4] ss:$8 sps:$4 sm:$0xff]   ;;  %761 = vmatprep.mubr.bf16.mxu0 %v1350_v40  ;;  %v1340_v43 = vld [vmem:[%s1473_s15 + $0x100] ss:$8 sps:$4 sm:$0xff]   ;;  %v1319_v44 = vld [vmem:[%s1473_s15 + $0xd0] ss:$8 sps:$4 sm:$0xff]  }
  0x32   : > { %736 = vmatpush1.bf16.msra.mxu0 %v1286_v15  ;;  %v1323_v45 = vld [vmem:[%s1473_s15 + $0xc4] ss:$8 sps:$4 sm:$0xff]   ;;  %v1325_v47 = vld [vmem:[%s1473_s15 + $0xc0] ss:$8 sps:$4 sm:$0xff]   ;;  %v1329_v48 = vld [vmem:[%s1473_s15 + $0xb4] ss:$8 sps:$4 sm:$0xff]  }
  0x33   : > { %737 = vmatprep.subr.bf16.mxu0 %v1287_v16  ;;  %v1331_v49 = vld [vmem:[%s1473_s15 + $0xb0] ss:$8 sps:$4 sm:$0xff]   ;;  %v1335_v50 = vld [vmem:[%s1473_s15 + $0xa4] ss:$8 sps:$4 sm:$0xff]   ;;  %v1337_v51 = vld [vmem:[%s1473_s15 + $0xa0] ss:$8 sps:$4 sm:$0xff]  }
  0x34   : > { %779 = vmatpush1.bf16.msra.mxu1 %v1316_v26  ;;  %v1341_v52 = vld [vmem:[%s1473_s15 + $0x94] ss:$8 sps:$4 sm:$0xff]   ;;  %v1343_v53 = vld [vmem:[%s1473_s15 + $0x90] ss:$8 sps:$4 sm:$0xff]   ;;  %v1345_v54 = vld [vmem:[%s1473_s15 + $0x84] ss:$8 sps:$4 sm:$0xff]  }
  0x35   : > { %780 = vmatprep.subr.bf16.mxu1 %v1320_v27  ;;  %v1347_v55 = vld [vmem:[%s1473_s15 + $0x80] ss:$8 sps:$4 sm:$0xff]   ;;  %v417_v59 = vld [vmem:[#allocation2 + $0x10] sm:$0xff]  ;;  %v419_v3 = vld [vmem:[#allocation2 + $0x18] sm:$0xff] }
  0x36   : > { %738 = vmatpush1.bf16.msra.mxu0 %v1289_v19  ;;  %v418_v63 = vld [vmem:[#allocation2] sm:$0xff]  ;;  %v420_v8 = vld [vmem:[#allocation2 + $0x8] sm:$0xff] }
  0x37   : > { %739 = vmatprep.subr.bf16.mxu0 %v1290_v21 }
  0x38   : > { %781 = vmatpush1.bf16.msra.mxu1 %v1322_v30 }
  0x39   : > { %782 = vmatprep.subr.bf16.mxu1 %v1326_v31 }
  0x3a   : > { %740 = vmatpush1.bf16.msra.mxu0 %v1292_v24 }
  0x3b   : > { %741 = vmatprep.subr.bf16.mxu0 %v1293_v25 }
  0x3c   : > { %783 = vmatpush1.bf16.msra.mxu1 %v1328_v34 }
  0x3d   : > { %784 = vmatprep.subr.bf16.mxu1 %v1332_v35 }
  0x3e   : > { %742 = vmatpush1.bf16.msra.mxu0 %v1295_v28 }
  0x3f   : > { %743 = vmatprep.subr.bf16.mxu0 %v1299_v29 }
  0x40   : > { %785 = vmatpush1.bf16.msra.mxu1 %v1334_v38 }
  0x41   : > { %786 = vmatprep.subr.bf16.mxu1 %v1338_v39 }
  0x42   : > { %744 = vmatpush1.bf16.msra.mxu0 %v1301_v32 }
  0x43   : > { %745 = vmatprep.subr.bf16.mxu0 %v1305_v33 }
  0x44   : > { %787 = vmatpush1.bf16.msra.mxu1 %v1340_v43 }
  0x46   : > { %746 = vmatpush2.bf16.msra.mxu0 %v1307_v36 }
  0x47   : > { %747 = vmatprep.subr.bf16.mxu0 %v1311_v37  ;;  %805 = vmatmul.mubr.bf16.vlgmr.msra.gmra.mxu1 %v1344_v46 }
  0x4a   : > { %748 = vmatpush2.bf16.msra.mxu0 %v1313_v41 }
  0x4b   : > { %749 = vmatprep.subr.bf16.mxu0 %v1317_v42 }
  0x4e   : > { %750 = vmatpush2.bf16.msra.mxu0 %v1319_v44 }
  0x4f   : > { %751 = vmatprep.subr.bf16.mxu0 %v1323_v45 }
  0x52   : > { %752 = vmatpush2.bf16.msra.mxu0 %v1325_v47 }
  0x53   : > { %753 = vmatprep.subr.bf16.mxu0 %v1329_v48 }
  0x56   : > { %754 = vmatpush2.bf16.msra.mxu0 %v1331_v49 }
  0x57   : > { %755 = vmatprep.subr.bf16.mxu0 %v1335_v50 }
  0x5a   : > { %756 = vmatpush2.bf16.msra.mxu0 %v1337_v51 }
  0x5b   : > { %757 = vmatprep.subr.bf16.mxu0 %v1341_v52 }
  0x5e   : > { %758 = vmatpush2.bf16.msra.mxu0 %v1343_v53 }
  0x5f   : > { %759 = vmatprep.subr.bf16.mxu0 %v1345_v54 }
  0x62   : > { %760 = vmatpush2.bf16.msra.mxu0 %v1347_v55 }
  0x65   : > { %762 = vmatmul.mubr.bf16.vlgmr.msra.gmra.mxu0 %v1348_v56 }
 0x107   : > { %v806_v57 = vpop.f32.mrf.mxu1 }
 0x109   : > { %v808_v58 = vpop.f32.mrf.mxu1 }
 0x10b   : > { %v810_v62 = vpop.f32.mrf.mxu1 }
 0x10d   : > { %v812_v7 = vpop.f32.mrf.mxu1 }
 0x125   : > { %v763_v60 = vpop.f32.mrf.mxu0 }
 0x126   : > { %v807_v61 = vadd.f32 %v806_v57, %v763_v60 }
 0x127   : > { %v765_v0 = vpop.f32.mrf.mxu0 }
 0x128   : > { %v815_v1 = vadd.f32 %v807_v61, %v417_v59  ;;  %v809_v2 = vadd.f32 %v808_v58, %v765_v0 }
 0x129   : > { %v767_v4 = vpop.f32.mrf.mxu0 }
 0x12a   : > { %819 = vst [vmem:[#allocation2 + $0x10] sm:$0xff] %v815_v1  ;;  %v816_v5 = vadd.f32 %v809_v2, %v418_v63  ;;  %v811_v6 = vadd.f32 %v810_v62, %v767_v4 }
 0x12b   : > { %v769_v9 = vpop.f32.mrf.mxu0 }
 0x12c   : > { %820 = vst [vmem:[#allocation2] sm:$0xff] %v816_v5  ;;  %v817_v10 = vadd.f32 %v811_v6, %v419_v3  ;;  %v813_v11 = vadd.f32 %v812_v7, %v769_v9  ;;  %826 = sbr.rel (%p1216_p11) target bundleno = 335 (0x14f), region = 66 }
 0x12e   : > { %821 = vst [vmem:[#allocation2 + $0x18] sm:$0xff] %v817_v10  ;;  %v818_v12 = vadd.f32 %v813_v11, %v420_v8 }
 0x130   : > { %822 = vst [vmem:[#allocation2 + $0x8] sm:$0xff] %v818_v12 }
 0x131   : > { %v833_v13 = vlaneseq  ;;  %v831_v15 = vld [vmem:[%s1568_s2] sm:$0x3]  ;;  %v827_v16 = vld [vmem:[#allocation2 + $0x10] sm:$0xff]  ;;  %vm922_vm5 = vcmask 1040384  }
 0x133   : > { %v834_v14 = vshrl.u32 %v833_v13, 7  ;;  %v828_v19 = vld [vmem:[#allocation2] sm:$0xff] }
 0x135   : > { %v835_v17 = vsub.s32 0, %v834_v14  ;;  %v839_v18 = vsub.s32 1, %v834_v14  ;;  %v829_v20 = vld [vmem:[#allocation2 + $0x18] sm:$0xff]  ;;  %vm880_vm0 = vcmp.lt.s32.totalorder %v834_v14, 2 }
 0x137   : > { %v830_v21 = vld [vmem:[#allocation2 + $0x8] sm:$0xff]  ;;  %v836_v22 = vrot.slane %v831_v15, %v835_v17  ;;  %v840_v23 = vrot.slane %v831_v15, %v839_v18 }
 0x139   : > { %v843_v24 = vadd.f32 %v836_v22, %v827_v16  ;;  %v844_v25 = vadd.f32 %v840_v23, %v828_v19  ;;  %v845_v26 = vadd.f32 %v836_v22, %v829_v20  ;;  %v846_v27 = vadd.f32 %v840_v23, %v830_v21 }
 0x13b   : > { %vm847_vm1 = vcmp.ge.f32.partialorder %v843_v24, 0.0  ;;  %vm848_vm2 = vcmp.ge.f32.partialorder %v844_v25, 0.0  ;;  %v851_v28 = vmul.f32 0.01, %v843_v24  ;;  %v852_v29 = vmul.f32 0.01, %v844_v25 }
 0x13c   : > { %vm849_vm3 = vcmp.ge.f32.partialorder %v845_v26, 0.0  ;;  %v853_v30 = vmul.f32 0.01, %v845_v26  ;;  %v854_v31 = vmul.f32 0.01, %v846_v27  ;;  %vm850_vm4 = vcmp.ge.f32.partialorder %v846_v27, 0.0 }
 0x13d   : > { %v855_v32 = vsel %vm847_vm1, %v843_v24, %v851_v28  ;;  %v856_v33 = vsel %vm848_vm2, %v844_v25, %v852_v29 }
 0x13e   : > { %v1229_v34 = vpack.c.bf16 %v856_v33, %v855_v32  ;;  %v886_v35 = vsel %vm880_vm0, %v855_v32, 0.0  ;;  %v887_v36 = vsel %vm880_vm0, %v856_v33, 0.0  ;;  %v857_v37 = vsel %vm849_vm3, %v845_v26, %v853_v30 }
 0x13f   : > { %v891_v38 = vrot.slane %v886_v35, 4  ;;  %v898_v39 = vrot.slane %v887_v36, 4  ;;  %v904_v40 = vmul.f32 %v886_v35, %v886_v35  ;;  %v905_v41 = vmul.f32 %v887_v36, %v887_v36 }
 0x140   : > { %871 = vst [vmem:[%s1569_s3] sm:$0xff] %v1229_v34  ;;  %v858_v42 = vsel %vm850_vm4, %v846_v27, %v854_v31 }
 0x141   : > { %v892_v43 = vadd.f32 %v891_v38, %v886_v35  ;;  %v899_v44 = vadd.f32 %v898_v39, %v887_v36  ;;  %v909_v45 = vrot.slane %v904_v40, 4  ;;  %v916_v46 = vrot.slane %v905_v41, 4 }
 0x142   : > { %v1230_v47 = vpack.c.bf16 %v858_v42, %v857_v37 }
 0x143   : > { %v893_v48 = vrot.slane %v892_v43, 2  ;;  %v900_v49 = vrot.slane %v899_v44, 2  ;;  %v910_v50 = vadd.f32 %v909_v45, %v904_v40  ;;  %v917_v51 = vadd.f32 %v916_v46, %v905_v41 }
 0x144   : > { %872 = vst [vmem:[%s1569_s3 + $0x8] sm:$0xff] %v1230_v47 }
 0x145   : > { %v894_v52 = vadd.f32 %v893_v48, %v892_v43  ;;  %v901_v53 = vadd.f32 %v900_v49, %v899_v44  ;;  %v911_v54 = vrot.slane %v910_v50, 2  ;;  %v918_v55 = vrot.slane %v917_v51, 2 }
 0x147   : > { %v895_v56 = vrot.slane %v894_v52, 1  ;;  %v902_v57 = vrot.slane %v901_v53, 1  ;;  %v912_v58 = vadd.f32 %v911_v54, %v910_v50  ;;  %v919_v59 = vadd.f32 %v918_v55, %v917_v51 }
 0x149   : > { %v896_v60 = vadd.f32 %v895_v56, %v894_v52  ;;  %v903_v61 = vadd.f32 %v902_v57, %v901_v53  ;;  %v913_v62 = vrot.slane %v912_v58, 1  ;;  %v920_v63 = vrot.slane %v919_v59, 1 }
 0x14b   : > { %v923_v0 = vsel %vm922_vm5, %v896_v60, 0.0  ;;  %v924_v1 = vsel %vm922_vm5, %v903_v61, 0.0  ;;  %v914_v2 = vadd.f32 %v913_v62, %v912_v58  ;;  %v921_v3 = vadd.f32 %v920_v63, %v919_v59 }
 0x14c   : > { %925 = vst [vmem:[%s1570_s4] sm:$0xff] %v923_v0  ;;  %926 = vst [vmem:[%s1570_s4 + $0x8] sm:$0xff] %v924_v1 }
 0x14d   : > { %v927_v4 = vsel %vm922_vm5, %v914_v2, 0.0  ;;  %v928_v5 = vsel %vm922_vm5, %v921_v3, 0.0 }
 0x14e   : > { %929 = vst [vmem:[%s1571_s5] sm:$0xff] %v927_v4  ;;  %930 = vst [vmem:[%s1571_s5 + $0x8] sm:$0xff] %v928_v5 }
 0x14f PF: > { %s16_s22 = sadd.s32 1, %s1389_s22   ;;  %s1572_s18 = smov %s1377_s19 }
 0x150   : > { %p13_p12 = scmp.ge.s32.totalorder %s16_s22, 5   ;;  %s1573_s19 = smov %s1458_s26 }
 0x151   : > { %s1574_s20 = smov %s1385_s21  ;;  %s1575_s21 = smov %s1577_s23 }
 0x152   :  { %15 = sbr.rel (!%p13_p12) target bundleno = 3 (0x3), region = 137 }

// kernel: discriminator_forward.13
= control target key start
LH: loop header
LB: loop body
LE: loop exit
PB: predicated region body
PF: predicated region fallthrough
CT: control target
= control target key end

     0   :  { %v458_v1 = vmov 0.0   ;;  %vm459_vm0 = vmmov 0   ;;  %s589_s1 = inlined_call_operand.vmem [shape: bf16[256,128], index: 1, kind: input, shape index: {}]   ;;  %s590_s0 = inlined_call_operand.vmem [shape: bf16[16,256], index: 0, kind: input, shape index: {}]   ;;  %s591_s3 = inlined_call_operand.vmem [shape: bf16[128,128], index: 3, kind: input, shape index: {}]   ;;  %s592_s2 = inlined_call_operand.vmem [shape: f32[1,128], index: 2, kind: input, shape index: {}]   ;;  %s593_s4 = inlined_call_operand.vmem [shape: f32[1,128], index: 4, kind: input, shape index: {}]   ;;  %s594_s5 = inlined_call_operand.vmem [shape: f32[16,128], index: 5, kind: output, shape index: {}]  }
   0x1   :  { %v423_v0 = vld [vmem:[%s589_s1 + $0x78] sm:$0xff]   ;;  %401 = vmatprep.subr.bf16.mxu1 %v458_v1  ;;  %v425_v3 = vld [vmem:[%s589_s1 + $0x70] sm:$0xff]   ;;  %v427_v5 = vld [vmem:[%s589_s1 + $0x68] sm:$0xff]   ;;  %417 = vmatprep.mubr.msk.bf16.mxu1 %vm459_vm0, %v458_v1 }
   0x2   :  { %v424_v2 = vld [vmem:[%s589_s1 + $0x38] sm:$0xff]   ;;  %370 = vmatprep.subr.bf16.mxu0 %v423_v0  ;;  %v426_v4 = vld [vmem:[%s589_s1 + $0x30] sm:$0xff]   ;;  %v428_v6 = vld [vmem:[%s589_s1 + $0x28] sm:$0xff]  }
   0x3   :  { %371 = vmatpush3.bf16.msra.mxu0 %v424_v2  ;;  %v429_v7 = vld [vmem:[%s589_s1 + $0x60] sm:$0xff]   ;;  %v431_v9 = vld [vmem:[%s589_s1 + $0x58] sm:$0xff]   ;;  %v433_v11 = vld [vmem:[%s589_s1 + $0x50] sm:$0xff]  }
   0x4   :  { %372 = vmatprep.subr.bf16.mxu0 %v425_v3  ;;  %v430_v8 = vld [vmem:[%s589_s1 + $0x20] sm:$0xff]   ;;  %v432_v10 = vld [vmem:[%s589_s1 + $0x18] sm:$0xff]   ;;  %v434_v12 = vld [vmem:[%s589_s1 + $0x10] sm:$0xff]  }
   0x5   :  { %v441_v13 = vld [vmem:[%s590_s0 + $0x4] ss:$8 sps:$4 sm:$0xff]   ;;  %v442_v14 = vld [vmem:[%s591_s3 + $0x38] sm:$0xff]   ;;  %v443_v16 = vld [vmem:[%s591_s3 + $0x30] sm:$0xff]  }
   0x6   :  { %v435_v15 = vld [vmem:[%s589_s1 + $0x48] sm:$0xff]   ;;  %200 = vmatprep.mubr.bf16.mxu0 %v441_v13  ;;  %402 = vmatpush3.bf16.msra.mxu1 %v442_v14  ;;  %v437_v18 = vld [vmem:[%s589_s1 + $0x40] sm:$0xff]   ;;  %v446_v23 = vld [vmem:[%s591_s3 + $0x18] sm:$0xff]  }
   0x7   :  { %373 = vmatpush3.bf16.msra.mxu0 %v426_v4  ;;  %v436_v17 = vld [vmem:[%s589_s1 + $0x8] sm:$0xff]   ;;  %403 = vmatprep.subr.bf16.mxu1 %v458_v1  ;;  %v438_v20 = vld [vmem:[%s589_s1] sm:$0xff]   ;;  %v447_v24 = vld [vmem:[%s591_s3 + $0x10] sm:$0xff]  }
   0x8   :  { %374 = vmatprep.subr.bf16.mxu0 %v427_v5  ;;  %v444_v19 = vld [vmem:[%s591_s3 + $0x28] sm:$0xff]   ;;  %v445_v21 = vld [vmem:[%s591_s3 + $0x20] sm:$0xff]  }
   0x9   :  { %v439_v22 = vld [vmem:[%s590_s0] ss:$8 sps:$4 sm:$0xff]  }
   0xa   :  { %404 = vmatpush3.bf16.msra.mxu1 %v443_v16  ;;  %v448_v25 = vld [vmem:[%s591_s3 + $0x8] sm:$0xff]   ;;  %v449_v26 = vld [vmem:[%s591_s3] sm:$0xff]  }
   0xb   :  { %375 = vmatpush3.bf16.msra.mxu0 %v428_v6  ;;  %405 = vmatprep.subr.bf16.mxu1 %v458_v1  ;;  %v342_v30 = vld [vmem:[%s592_s2] ss:$0 sm:$0xff] }
   0xc   :  { %376 = vmatprep.subr.bf16.mxu0 %v429_v7  ;;  %v361_v39 = vld [vmem:[%s593_s4] ss:$0 sm:$0xff] }
   0xe   :  { %406 = vmatpush3.bf16.msra.mxu1 %v444_v19 }
   0xf   :  { %377 = vmatpush3.bf16.msra.mxu0 %v430_v8  ;;  %407 = vmatprep.subr.bf16.mxu1 %v458_v1 }
  0x10   :  { %378 = vmatprep.subr.bf16.mxu0 %v431_v9 }
  0x12   :  { %408 = vmatpush3.bf16.msra.mxu1 %v445_v21 }
  0x13   :  { %379 = vmatpush3.bf16.msra.mxu0 %v432_v10  ;;  %409 = vmatprep.subr.bf16.mxu1 %v458_v1 }
  0x14   :  { %380 = vmatprep.subr.bf16.mxu0 %v433_v11 }
  0x16   :  { %410 = vmatpush3.bf16.msra.mxu1 %v446_v23 }
  0x17   :  { %381 = vmatpush3.bf16.msra.mxu0 %v434_v12  ;;  %411 = vmatprep.subr.bf16.mxu1 %v458_v1 }
  0x18   :  { %382 = vmatprep.subr.bf16.mxu0 %v435_v15 }
  0x1a   :  { %412 = vmatpush3.bf16.msra.mxu1 %v447_v24 }
  0x1b   :  { %383 = vmatpush3.bf16.msra.mxu0 %v436_v17  ;;  %413 = vmatprep.subr.bf16.mxu1 %v458_v1 }
  0x1c   :  { %384 = vmatprep.subr.bf16.mxu0 %v437_v18 }
  0x1e   :  { %414 = vmatpush3.bf16.msra.mxu1 %v448_v25 }
  0x1f   :  { %385 = vmatpush3.bf16.msra.mxu0 %v438_v20  ;;  %415 = vmatprep.subr.bf16.mxu1 %v458_v1 }
  0x22   :  { %201 = vmatmul.mubr.bf16.vlgmr.msra.gmra.mxu0 %v439_v22  ;;  %416 = vmatpush3.bf16.msra.mxu1 %v449_v26 }
  0xe2   :  { %v386_v27 = vpop.f32.mrf.mxu0 }
  0xe4   :  { %v387_v28 = vpop.f32.mrf.mxu0 }
  0xe5   :  { %v388_v29 = vadd.f32 %v387_v28, %v386_v27 }
  0xe6   :  { %v389_v31 = vpop.f32.mrf.mxu0 }
  0xe7   :  { %v203_v33 = vadd.f32 %v388_v29, %v342_v30 }
  0xe8   :  { %v390_v32 = vpop.f32.mrf.mxu0 }
  0xe9   :  { %v391_v34 = vadd.f32 %v390_v32, %v389_v31  ;;  %v209_v36 = vmax.f32 %v203_v33, 0.0 }
  0xeb   :  { %v206_v35 = vadd.f32 %v391_v34, %v342_v30 }
  0xed   :  { %v210_v37 = vmax.f32 %v206_v35, 0.0 }
  0xef   :  { %v211_v38 = vpack.c.bf16 %v210_v37, %v209_v36 }
  0xf1   :  { %418 = vmatmul.mubr.bf16.vlgmr.msra.gmra.mxu1 %v211_v38 }
 0x1b1   :  { %v317_v40 = vpop.f32.mrf.mxu1 }
 0x1b2   :  { %v318_v41 = vadd.f32 %v361_v39, %v317_v40 }
 0x1b3   :  { %v419_v42 = vpop.f32.mrf.mxu1 }
 0x1b4   :  { %v324_v43 = vsub.f32 0.0, %v318_v41 }
 0x1b5   :  { %v320_v44 = vpop.f32.mrf.mxu1 }
 0x1b6   :  { %v326_v45 = vmul.f32 1.442695, %v324_v43  ;;  %v321_v46 = vadd.f32 %v361_v39, %v320_v44 }
 0x1b7   :  { %v420_v47 = vpop.f32.mrf.mxu1 }
 0x1b8   :  { %450 = vpow2.f32 %v326_v45  ;;  %v325_v48 = vsub.f32 0.0, %v321_v46 }
 0x1ba   :  { %v328_v49 = vmul.f32 1.442695, %v325_v48 }
 0x1bc   :  { %452 = vpow2.f32 %v328_v49 }
 0x1c5   :  { %v451_v50 = vpop.eup %450 }
 0x1c6   :  { %v330_v51 = vadd.f32 1.0, %v451_v50 }
 0x1c8   :  { %454 = vrcp.f32 %v330_v51 }
 0x1c9   :  { %v453_v52 = vpop.eup %452 }
 0x1ca   :  { %v331_v53 = vadd.f32 1.0, %v453_v52 }
 0x1cc   :  { %456 = vrcp.f32 %v331_v53 }
 0x1d5   :  { %v455_v54 = vpop.eup %454 }
 0x1d6   :  { %336 = vst [vmem:[%s594_s5] sm:$0xff] %v455_v54 }
 0x1d9   :  { %v457_v55 = vpop.eup %456 }
 0x1da   :  { %337 = vst [vmem:[%s594_s5 + $0x8] sm:$0xff] %v457_v55 }

</bundles_post_ra>
